<compile_context>
chip_gen: v7x
topology: tpu7x:2x2x1
jax: 0.10.0
libtpu: 0.0.40
codegen_flags: <defaults>
</compile_context>

<pallas_src>
import jax
import jax.numpy as jnp
from jax import lax
from jax.experimental import pallas as pl
from jax.experimental.pallas import tpu as pltpu


POOL_K = 5
POOL_P = POOL_K // 2  # = 2 (autopad for k=5)


def sppf_kernel(x_ref, w1_ref, b1_ref, w2_ref, b2_ref, o_ref, padA, padB):
    """One batch element per grid step.

    x_ref : (1, H, W, C1)        NHWC input tile
    w1_ref: (C1, C_)             cv1 1x1 weight, BN scale folded in
    b1_ref: (1, C_)              cv1 folded BN bias
    w2_ref: (4, C_, C2)          cv2 1x1 weight, BN folded, split by concat group
    b2_ref: (1, C2)              cv2 folded BN bias
    o_ref : (1, H, W, C2)        NHWC output tile
    padA  : (H+4, W+4, C_) f32   VMEM scratch: -inf padded pool input
    padB  : (H,   W+4, C_) f32   VMEM scratch: row-maxed intermediate
    """
    h, w, c2 = o_ref.shape[1], o_ref.shape[2], o_ref.shape[3]
    c1 = x_ref.shape[3]
    c_ = w1_ref.shape[1]
    neg = jnp.finfo(jnp.float32).min

    # ---- cv1: 1x1 conv == single MXU matmul; folded BN bias; SiLU ----------
    xm = x_ref[0].reshape(h * w, c1).astype(jnp.float32)
    z1 = jnp.dot(xm, w1_ref[...], preferred_element_type=jnp.float32) + b1_ref[...]
    x1_m = z1 * jax.nn.sigmoid(z1)                     # (h*w, c_)
    x1 = x1_m.reshape(h, w, c_)

    # Fill the -inf halo once; every pool call overwrites only the interior.
    padA[...] = jnp.full((h + 2 * POOL_P, w + 2 * POOL_P, c_), neg, jnp.float32)

    def maxpool5(v):
        """MaxPool2d(k=5, s=1, p=2), padding excluded from the max.
        Separable: 5-tap max over H, then 5-tap max over W."""
        padA[POOL_P:POOL_P + h, POOL_P:POOL_P + w, :] = v
        vert = padA[0:h, :, :]
        for k in range(1, POOL_K):
            vert = jnp.maximum(vert, padA[k:k + h, :, :])
        padB[...] = vert
        out = padB[:, 0:w, :]
        for k in range(1, POOL_K):
            out = jnp.maximum(out, padB[:, k:k + w, :])
        return out

    y1 = maxpool5(x1)
    y2 = maxpool5(y1)
    y3 = maxpool5(y2)

    # ---- cv2 on cat([x1, y1, y2, y3], channel) without materializing it ----
    z2 = jnp.dot(x1_m, w2_ref[0], preferred_element_type=jnp.float32)
    z2 = z2 + jnp.dot(y1.reshape(h * w, c_), w2_ref[1],
                      preferred_element_type=jnp.float32)
    z2 = z2 + jnp.dot(y2.reshape(h * w, c_), w2_ref[2],
                      preferred_element_type=jnp.float32)
    z2 = z2 + jnp.dot(y3.reshape(h * w, c_), w2_ref[3],
                      preferred_element_type=jnp.float32)
    z2 = z2 + b2_ref[...]
    y = z2 * jax.nn.sigmoid(z2)
    o_ref[...] = y.reshape(1, h, w, c2).astype(o_ref.dtype)


def sppf_pallas(x_nhwc, params):
    """x_nhwc: (N, H, W, C1) f32.  Returns (N, H, W, C2)."""
    n, h, w, c1 = x_nhwc.shape
    c_ = params["w1"].shape[1]
    c2 = params["w2"].shape[2]

    return pl.pallas_call(
        sppf_kernel,
        out_shape=jax.ShapeDtypeStruct((n, h, w, c2), x_nhwc.dtype),
        grid_spec=pltpu.PrefetchScalarGridSpec(
            num_scalar_prefetch=0,
            grid=(n,),
            in_specs=[
                pl.BlockSpec((1, h, w, c1), lambda i: (i, 0, 0, 0)),
                pl.BlockSpec((c1, c_), lambda i: (0, 0)),
                pl.BlockSpec((1, c_), lambda i: (0, 0)),
                pl.BlockSpec((4, c_, c2), lambda i: (0, 0, 0)),
                pl.BlockSpec((1, c2), lambda i: (0, 0)),
            ],
            out_specs=pl.BlockSpec((1, h, w, c2), lambda i: (i, 0, 0, 0)),
            scratch_shapes=[
                pltpu.VMEM((h + 2 * POOL_P, w + 2 * POOL_P, c_), jnp.float32),
                pltpu.VMEM((h, w + 2 * POOL_P, c_), jnp.float32),
            ],
        ),
        compiler_params=pltpu.CompilerParams(
            dimension_semantics=("parallel",)),
    )(x_nhwc, params["w1"], params["b1"], params["w2"], params["b2"])


def make_sppf_params(key, c1, c2, dtype=jnp.float32):
    """Deterministic synthetic Conv+BN parameters with the BN scale folded into
    the 1x1 conv weights (one-time host-side fold)."""
    c_ = c1 // 2
    eps = 1e-3
    ks = jax.random.split(key, 10)

    def conv_bn(kw, kg, kb, km, kv, cin, cout):
        wmat = 0.3 * jax.random.normal(kw, (cin, cout), dtype)
        gamma = 1.0 + 0.1 * jax.random.normal(kg, (cout,), dtype)
        beta = 0.1 * jax.random.normal(kb, (cout,), dtype)
        mean = 0.1 * jax.random.normal(km, (cout,), dtype)
        var = jax.random.uniform(kv, (cout,), dtype, minval=0.5, maxval=1.5)
        scale = gamma / jnp.sqrt(var + eps)
        return wmat * scale[None, :], beta - mean * scale

    w1, b1 = conv_bn(*ks[0:5], c1, c_)
    w2, b2 = conv_bn(*ks[5:10], 4 * c_, c2)
    return {
        "w1": w1,                          # (c1, c_)
        "b1": b1.reshape(1, c_),
        "w2": w2.reshape(4, c_, c2),       # group order matches torch.cat([x,y1,y2,y3])
        "b2": b2.reshape(1, c2),
    }


class SPPFPallas:
    """JAX/Pallas port of SPPF.forward.  Accepts/returns PyTorch-convention
    NCHW; the kernel runs NHWC (channels on lanes).  The two transposes are
    boundary glue only -- at real scale keep the whole network NHWC."""

    def __init__(self, params):
        self.params = params

    def __call__(self, x_nchw):
        p_dtype = self.params["w1"].dtype
        x_nhwc = jnp.transpose(x_nchw.astype(p_dtype), (0, 2, 3, 1))
        y_nhwc = sppf_pallas(x_nhwc, self.params)
        return jnp.transpose(y_nhwc, (0, 3, 1, 2))


def reference_sppf(x_nchw, params):
    """Pure-JAX reference (einsum conv + reduce_window maxpool)."""
    x = jnp.transpose(x_nchw.astype(params["w1"].dtype), (0, 2, 3, 1))
    z = jnp.einsum("nhwc,cd->nhwd", x, params["w1"]) + params["b1"]
    x1 = z * jax.nn.sigmoid(z)

    def pool(v):
        return lax.reduce_window(
            v, -jnp.inf, lax.max,
            window_dimensions=(1, POOL_K, POOL_K, 1),
            window_strides=(1, 1, 1, 1),
            padding=((0, 0), (POOL_P, POOL_P), (POOL_P, POOL_P), (0, 0)))

    y1 = pool(x1)
    y2 = pool(y1)
    y3 = pool(y2)
    cat = jnp.concatenate([x1, y1, y2, y3], axis=-1)
    w2 = params["w2"].reshape(-1, params["w2"].shape[-1])
    z2 = jnp.einsum("nhwc,cd->nhwd", cat, w2) + params["b2"]
    y = z2 * jax.nn.sigmoid(z2)
    return jnp.transpose(y, (0, 3, 1, 2))


if __name__ == "__main__":
    key = jax.random.PRNGKey(0)
    k_x, k_p = jax.random.split(key)

    N, C1, H, W = 2, 4, 16, 16   # SPPF(c1=4, c2=8) -> c_ = 2
    C2 = 8

    x = jax.random.uniform(k_x, (N, C1, H, W), jnp.float32)   # NCHW input
    params = make_sppf_params(k_p, C1, C2)

    model = SPPFPallas(params)
    out = jax.block_until_ready(model(x))
    ref = jax.block_until_ready(reference_sppf(x, params))

    assert out.shape == (N, C2, H, W)
    assert jnp.allclose(out, ref, atol=1e-4, rtol=1e-4), "mismatch vs reference"

    print("KERNEL_OK")
</pallas_src>

<mosaic_0001>
module attributes {stable_mosaic.version = 11 : i64} {
  func.func @sppf_kernel(%arg0: i32, %arg1: memref<1x16x16x4xf32, #tpu.memory_space<vmem>>, %arg2: memref<4x2xf32, #tpu.memory_space<vmem>>, %arg3: memref<1x2xf32, #tpu.memory_space<vmem>>, %arg4: memref<4x2x8xf32, #tpu.memory_space<vmem>>, %arg5: memref<1x8xf32, #tpu.memory_space<vmem>>, %arg6: memref<1x16x16x8xf32, #tpu.memory_space<vmem>>, %arg7: memref<20x20x2xf32, #tpu.memory_space<vmem>>, %arg8: memref<16x20x2xf32, #tpu.memory_space<vmem>>) attributes {dimension_semantics = [#tpu.dimension_semantics<parallel>], iteration_bounds = array<i64: 2>, scalar_prefetch = 0 : i64, scratch_operands = 2 : i64, tpu.core_type = #tpu.core_type<tc>, window_params = [{transform_indices = @transform_0, window_bounds = array<i64: 1, 16, 16, 4>}, {pipeline_mode = #tpu.pipeline_mode<synchronous>, transform_indices = @transform_1, window_bounds = array<i64: 4, 2>}, {pipeline_mode = #tpu.pipeline_mode<synchronous>, transform_indices = @transform_2, window_bounds = array<i64: 1, 2>}, {pipeline_mode = #tpu.pipeline_mode<synchronous>, transform_indices = @transform_3, window_bounds = array<i64: 4, 2, 8>}, {pipeline_mode = #tpu.pipeline_mode<synchronous>, transform_indices = @transform_4, window_bounds = array<i64: 1, 8>}, {transform_indices = @transform_5, window_bounds = array<i64: 1, 16, 16, 8>}]} {
    %c0 = arith.constant 0 : index
    %c0_0 = arith.constant 0 : index
    %c0_1 = arith.constant 0 : index
    %c0_2 = arith.constant 0 : index
    %0 = vector.load %arg1[%c0, %c0_0, %c0_1, %c0_2] : memref<1x16x16x4xf32, #tpu.memory_space<vmem>>, vector<1x16x16x4xf32>
    %1 = vector.shape_cast %0 : vector<1x16x16x4xf32> to vector<16x16x4xf32>
    %2 = vector.shape_cast %1 : vector<16x16x4xf32> to vector<256x4xf32>
    %c0_3 = arith.constant 0 : index
    %c0_4 = arith.constant 0 : index
    %3 = vector.load %arg2[%c0_3, %c0_4] : memref<4x2xf32, #tpu.memory_space<vmem>>, vector<4x2xf32>
    %cst = arith.constant dense<0.000000e+00> : vector<256x2xf32>
    %4 = tpu.matmul %2, %3, %cst {dimension_numbers = #tpu.dot_dimension_numbers<[1], [0], [0], [1], [0, 0, 1, 1], [], []>} : vector<256x4xf32>, vector<4x2xf32>, vector<256x2xf32> -> vector<256x2xf32>
    %c0_5 = arith.constant 0 : index
    %c0_6 = arith.constant 0 : index
    %5 = vector.load %arg3[%c0_5, %c0_6] : memref<1x2xf32, #tpu.memory_space<vmem>>, vector<1x2xf32>
    %6 = vector.broadcast %5 : vector<1x2xf32> to vector<256x2xf32>
    %7 = arith.addf %4, %6 : vector<256x2xf32>
    %8 = arith.negf %7 : vector<256x2xf32>
    %9 = math.exp %8 : vector<256x2xf32>
    %cst_7 = arith.constant 1.000000e+00 : f32
    %10 = vector.broadcast %cst_7 : f32 to vector<256x2xf32>
    %11 = arith.addf %10, %9 : vector<256x2xf32>
    %12 = arith.divf %10, %11 : vector<256x2xf32>
    %13 = arith.mulf %7, %12 : vector<256x2xf32>
    %14 = vector.shape_cast %13 : vector<256x2xf32> to vector<16x16x2xf32>
    %cst_8 = arith.constant -3.40282347E+38 : f32
    %15 = vector.broadcast %cst_8 : f32 to vector<20x20x2xf32>
    %c0_9 = arith.constant 0 : index
    %c0_10 = arith.constant 0 : index
    %c0_11 = arith.constant 0 : index
    %16 = vector.load %arg7[%c0_9, %c0_10, %c0_11] : memref<20x20x2xf32, #tpu.memory_space<vmem>>, vector<20x20x2xf32>
    tpu.vector_store %arg7[%c0_9, %c0_10, %c0_11], %15 {strides = array<i32>} : memref<20x20x2xf32, #tpu.memory_space<vmem>>, vector<20x20x2xf32>,
    %c2 = arith.constant 2 : index
    %c2_12 = arith.constant 2 : index
    %c0_13 = arith.constant 0 : index
    %17 = vector.load %arg7[%c2, %c2_12, %c0_13] : memref<20x20x2xf32, #tpu.memory_space<vmem>>, vector<16x16x2xf32>
    tpu.vector_store %arg7[%c2, %c2_12, %c0_13], %14 {strides = array<i32>} : memref<20x20x2xf32, #tpu.memory_space<vmem>>, vector<16x16x2xf32>,
    %c0_14 = arith.constant 0 : index
    %c0_15 = arith.constant 0 : index
    %c0_16 = arith.constant 0 : index
    %18 = vector.load %arg7[%c0_14, %c0_15, %c0_16] : memref<20x20x2xf32, #tpu.memory_space<vmem>>, vector<16x20x2xf32>
    %c1 = arith.constant 1 : index
    %c0_17 = arith.constant 0 : index
    %c0_18 = arith.constant 0 : index
    %19 = vector.load %arg7[%c1, %c0_17, %c0_18] : memref<20x20x2xf32, #tpu.memory_space<vmem>>, vector<16x20x2xf32>
    %20 = arith.maximumf %18, %19 : vector<16x20x2xf32>
    %c2_19 = arith.constant 2 : index
    %c0_20 = arith.constant 0 : index
    %c0_21 = arith.constant 0 : index
    %21 = vector.load %arg7[%c2_19, %c0_20, %c0_21] : memref<20x20x2xf32, #tpu.memory_space<vmem>>, vector<16x20x2xf32>
    %22 = arith.maximumf %20, %21 : vector<16x20x2xf32>
    %c3 = arith.constant 3 : index
    %c0_22 = arith.constant 0 : index
    %c0_23 = arith.constant 0 : index
    %23 = vector.load %arg7[%c3, %c0_22, %c0_23] : memref<20x20x2xf32, #tpu.memory_space<vmem>>, vector<16x20x2xf32>
    %24 = arith.maximumf %22, %23 : vector<16x20x2xf32>
    %c4 = arith.constant 4 : index
    %c0_24 = arith.constant 0 : index
    %c0_25 = arith.constant 0 : index
    %25 = vector.load %arg7[%c4, %c0_24, %c0_25] : memref<20x20x2xf32, #tpu.memory_space<vmem>>, vector<16x20x2xf32>
    %26 = arith.maximumf %24, %25 : vector<16x20x2xf32>
    %c0_26 = arith.constant 0 : index
    %c0_27 = arith.constant 0 : index
    %c0_28 = arith.constant 0 : index
    %27 = vector.load %arg8[%c0_26, %c0_27, %c0_28] : memref<16x20x2xf32, #tpu.memory_space<vmem>>, vector<16x20x2xf32>
    tpu.vector_store %arg8[%c0_26, %c0_27, %c0_28], %26 {strides = array<i32>} : memref<16x20x2xf32, #tpu.memory_space<vmem>>, vector<16x20x2xf32>,
    %c0_29 = arith.constant 0 : index
    %c0_30 = arith.constant 0 : index
    %c0_31 = arith.constant 0 : index
    %28 = vector.load %arg8[%c0_29, %c0_30, %c0_31] : memref<16x20x2xf32, #tpu.memory_space<vmem>>, vector<16x16x2xf32>
    %c0_32 = arith.constant 0 : index
    %c1_33 = arith.constant 1 : index
    %c0_34 = arith.constant 0 : index
    %29 = vector.load %arg8[%c0_32, %c1_33, %c0_34] : memref<16x20x2xf32, #tpu.memory_space<vmem>>, vector<16x16x2xf32>
    %30 = arith.maximumf %28, %29 : vector<16x16x2xf32>
    %c0_35 = arith.constant 0 : index
    %c2_36 = arith.constant 2 : index
    %c0_37 = arith.constant 0 : index
    %31 = vector.load %arg8[%c0_35, %c2_36, %c0_37] : memref<16x20x2xf32, #tpu.memory_space<vmem>>, vector<16x16x2xf32>
    %32 = arith.maximumf %30, %31 : vector<16x16x2xf32>
    %c0_38 = arith.constant 0 : index
    %c3_39 = arith.constant 3 : index
    %c0_40 = arith.constant 0 : index
    %33 = vector.load %arg8[%c0_38, %c3_39, %c0_40] : memref<16x20x2xf32, #tpu.memory_space<vmem>>, vector<16x16x2xf32>
    %34 = arith.maximumf %32, %33 : vector<16x16x2xf32>
    %c0_41 = arith.constant 0 : index
    %c4_42 = arith.constant 4 : index
    %c0_43 = arith.constant 0 : index
    %35 = vector.load %arg8[%c0_41, %c4_42, %c0_43] : memref<16x20x2xf32, #tpu.memory_space<vmem>>, vector<16x16x2xf32>
    %36 = arith.maximumf %34, %35 : vector<16x16x2xf32>
    %c2_44 = arith.constant 2 : index
    %c2_45 = arith.constant 2 : index
    %c0_46 = arith.constant 0 : index
    %37 = vector.load %arg7[%c2_44, %c2_45, %c0_46] : memref<20x20x2xf32, #tpu.memory_space<vmem>>, vector<16x16x2xf32>
    tpu.vector_store %arg7[%c2_44, %c2_45, %c0_46], %36 {strides = array<i32>} : memref<20x20x2xf32, #tpu.memory_space<vmem>>, vector<16x16x2xf32>,
    %c0_47 = arith.constant 0 : index
    %c0_48 = arith.constant 0 : index
    %c0_49 = arith.constant 0 : index
    %38 = vector.load %arg7[%c0_47, %c0_48, %c0_49] : memref<20x20x2xf32, #tpu.memory_space<vmem>>, vector<16x20x2xf32>
    %c1_50 = arith.constant 1 : index
    %c0_51 = arith.constant 0 : index
    %c0_52 = arith.constant 0 : index
    %39 = vector.load %arg7[%c1_50, %c0_51, %c0_52] : memref<20x20x2xf32, #tpu.memory_space<vmem>>, vector<16x20x2xf32>
    %40 = arith.maximumf %38, %39 : vector<16x20x2xf32>
    %c2_53 = arith.constant 2 : index
    %c0_54 = arith.constant 0 : index
    %c0_55 = arith.constant 0 : index
    %41 = vector.load %arg7[%c2_53, %c0_54, %c0_55] : memref<20x20x2xf32, #tpu.memory_space<vmem>>, vector<16x20x2xf32>
    %42 = arith.maximumf %40, %41 : vector<16x20x2xf32>
    %c3_56 = arith.constant 3 : index
    %c0_57 = arith.constant 0 : index
    %c0_58 = arith.constant 0 : index
    %43 = vector.load %arg7[%c3_56, %c0_57, %c0_58] : memref<20x20x2xf32, #tpu.memory_space<vmem>>, vector<16x20x2xf32>
    %44 = arith.maximumf %42, %43 : vector<16x20x2xf32>
    %c4_59 = arith.constant 4 : index
    %c0_60 = arith.constant 0 : index
    %c0_61 = arith.constant 0 : index
    %45 = vector.load %arg7[%c4_59, %c0_60, %c0_61] : memref<20x20x2xf32, #tpu.memory_space<vmem>>, vector<16x20x2xf32>
    %46 = arith.maximumf %44, %45 : vector<16x20x2xf32>
    %c0_62 = arith.constant 0 : index
    %c0_63 = arith.constant 0 : index
    %c0_64 = arith.constant 0 : index
    %47 = vector.load %arg8[%c0_62, %c0_63, %c0_64] : memref<16x20x2xf32, #tpu.memory_space<vmem>>, vector<16x20x2xf32>
    tpu.vector_store %arg8[%c0_62, %c0_63, %c0_64], %46 {strides = array<i32>} : memref<16x20x2xf32, #tpu.memory_space<vmem>>, vector<16x20x2xf32>,
    %c0_65 = arith.constant 0 : index
    %c0_66 = arith.constant 0 : index
    %c0_67 = arith.constant 0 : index
    %48 = vector.load %arg8[%c0_65, %c0_66, %c0_67] : memref<16x20x2xf32, #tpu.memory_space<vmem>>, vector<16x16x2xf32>
    %c0_68 = arith.constant 0 : index
    %c1_69 = arith.constant 1 : index
    %c0_70 = arith.constant 0 : index
    %49 = vector.load %arg8[%c0_68, %c1_69, %c0_70] : memref<16x20x2xf32, #tpu.memory_space<vmem>>, vector<16x16x2xf32>
    %50 = arith.maximumf %48, %49 : vector<16x16x2xf32>
    %c0_71 = arith.constant 0 : index
    %c2_72 = arith.constant 2 : index
    %c0_73 = arith.constant 0 : index
    %51 = vector.load %arg8[%c0_71, %c2_72, %c0_73] : memref<16x20x2xf32, #tpu.memory_space<vmem>>, vector<16x16x2xf32>
    %52 = arith.maximumf %50, %51 : vector<16x16x2xf32>
    %c0_74 = arith.constant 0 : index
    %c3_75 = arith.constant 3 : index
    %c0_76 = arith.constant 0 : index
    %53 = vector.load %arg8[%c0_74, %c3_75, %c0_76] : memref<16x20x2xf32, #tpu.memory_space<vmem>>, vector<16x16x2xf32>
    %54 = arith.maximumf %52, %53 : vector<16x16x2xf32>
    %c0_77 = arith.constant 0 : index
    %c4_78 = arith.constant 4 : index
    %c0_79 = arith.constant 0 : index
    %55 = vector.load %arg8[%c0_77, %c4_78, %c0_79] : memref<16x20x2xf32, #tpu.memory_space<vmem>>, vector<16x16x2xf32>
    %56 = arith.maximumf %54, %55 : vector<16x16x2xf32>
    %c2_80 = arith.constant 2 : index
    %c2_81 = arith.constant 2 : index
    %c0_82 = arith.constant 0 : index
    %57 = vector.load %arg7[%c2_80, %c2_81, %c0_82] : memref<20x20x2xf32, #tpu.memory_space<vmem>>, vector<16x16x2xf32>
    tpu.vector_store %arg7[%c2_80, %c2_81, %c0_82], %56 {strides = array<i32>} : memref<20x20x2xf32, #tpu.memory_space<vmem>>, vector<16x16x2xf32>,
    %c0_83 = arith.constant 0 : index
    %c0_84 = arith.constant 0 : index
    %c0_85 = arith.constant 0 : index
    %58 = vector.load %arg7[%c0_83, %c0_84, %c0_85] : memref<20x20x2xf32, #tpu.memory_space<vmem>>, vector<16x20x2xf32>
    %c1_86 = arith.constant 1 : index
    %c0_87 = arith.constant 0 : index
    %c0_88 = arith.constant 0 : index
    %59 = vector.load %arg7[%c1_86, %c0_87, %c0_88] : memref<20x20x2xf32, #tpu.memory_space<vmem>>, vector<16x20x2xf32>
    %60 = arith.maximumf %58, %59 : vector<16x20x2xf32>
    %c2_89 = arith.constant 2 : index
    %c0_90 = arith.constant 0 : index
    %c0_91 = arith.constant 0 : index
    %61 = vector.load %arg7[%c2_89, %c0_90, %c0_91] : memref<20x20x2xf32, #tpu.memory_space<vmem>>, vector<16x20x2xf32>
    %62 = arith.maximumf %60, %61 : vector<16x20x2xf32>
    %c3_92 = arith.constant 3 : index
    %c0_93 = arith.constant 0 : index
    %c0_94 = arith.constant 0 : index
    %63 = vector.load %arg7[%c3_92, %c0_93, %c0_94] : memref<20x20x2xf32, #tpu.memory_space<vmem>>, vector<16x20x2xf32>
    %64 = arith.maximumf %62, %63 : vector<16x20x2xf32>
    %c4_95 = arith.constant 4 : index
    %c0_96 = arith.constant 0 : index
    %c0_97 = arith.constant 0 : index
    %65 = vector.load %arg7[%c4_95, %c0_96, %c0_97] : memref<20x20x2xf32, #tpu.memory_space<vmem>>, vector<16x20x2xf32>
    %66 = arith.maximumf %64, %65 : vector<16x20x2xf32>
    %c0_98 = arith.constant 0 : index
    %c0_99 = arith.constant 0 : index
    %c0_100 = arith.constant 0 : index
    %67 = vector.load %arg8[%c0_98, %c0_99, %c0_100] : memref<16x20x2xf32, #tpu.memory_space<vmem>>, vector<16x20x2xf32>
    tpu.vector_store %arg8[%c0_98, %c0_99, %c0_100], %66 {strides = array<i32>} : memref<16x20x2xf32, #tpu.memory_space<vmem>>, vector<16x20x2xf32>,
    %c0_101 = arith.constant 0 : index
    %c0_102 = arith.constant 0 : index
    %c0_103 = arith.constant 0 : index
    %68 = vector.load %arg8[%c0_101, %c0_102, %c0_103] : memref<16x20x2xf32, #tpu.memory_space<vmem>>, vector<16x16x2xf32>
    %c0_104 = arith.constant 0 : index
    %c1_105 = arith.constant 1 : index
    %c0_106 = arith.constant 0 : index
    %69 = vector.load %arg8[%c0_104, %c1_105, %c0_106] : memref<16x20x2xf32, #tpu.memory_space<vmem>>, vector<16x16x2xf32>
    %70 = arith.maximumf %68, %69 : vector<16x16x2xf32>
    %c0_107 = arith.constant 0 : index
    %c2_108 = arith.constant 2 : index
    %c0_109 = arith.constant 0 : index
    %71 = vector.load %arg8[%c0_107, %c2_108, %c0_109] : memref<16x20x2xf32, #tpu.memory_space<vmem>>, vector<16x16x2xf32>
    %72 = arith.maximumf %70, %71 : vector<16x16x2xf32>
    %c0_110 = arith.constant 0 : index
    %c3_111 = arith.constant 3 : index
    %c0_112 = arith.constant 0 : index
    %73 = vector.load %arg8[%c0_110, %c3_111, %c0_112] : memref<16x20x2xf32, #tpu.memory_space<vmem>>, vector<16x16x2xf32>
    %74 = arith.maximumf %72, %73 : vector<16x16x2xf32>
    %c0_113 = arith.constant 0 : index
    %c4_114 = arith.constant 4 : index
    %c0_115 = arith.constant 0 : index
    %75 = vector.load %arg8[%c0_113, %c4_114, %c0_115] : memref<16x20x2xf32, #tpu.memory_space<vmem>>, vector<16x16x2xf32>
    %76 = arith.maximumf %74, %75 : vector<16x16x2xf32>
    %c0_116 = arith.constant 0 : index
    %c0_117 = arith.constant 0 : index
    %c0_118 = arith.constant 0 : index
    %77 = vector.load %arg4[%c0_116, %c0_117, %c0_118] : memref<4x2x8xf32, #tpu.memory_space<vmem>>, vector<1x2x8xf32>
    %78 = vector.shape_cast %77 : vector<1x2x8xf32> to vector<2x8xf32>
    %cst_119 = arith.constant dense<0.000000e+00> : vector<256x8xf32>
    %79 = tpu.matmul %13, %78, %cst_119 {dimension_numbers = #tpu.dot_dimension_numbers<[1], [0], [0], [1], [0, 0, 1, 1], [], []>} : vector<256x2xf32>, vector<2x8xf32>, vector<256x8xf32> -> vector<256x8xf32>
    %80 = vector.shape_cast %36 : vector<16x16x2xf32> to vector<256x2xf32>
    %c1_120 = arith.constant 1 : index
    %c0_121 = arith.constant 0 : index
    %c0_122 = arith.constant 0 : index
    %81 = vector.load %arg4[%c1_120, %c0_121, %c0_122] : memref<4x2x8xf32, #tpu.memory_space<vmem>>, vector<1x2x8xf32>
    %82 = vector.shape_cast %81 : vector<1x2x8xf32> to vector<2x8xf32>
    %cst_123 = arith.constant dense<0.000000e+00> : vector<256x8xf32>
    %83 = tpu.matmul %80, %82, %cst_123 {dimension_numbers = #tpu.dot_dimension_numbers<[1], [0], [0], [1], [0, 0, 1, 1], [], []>} : vector<256x2xf32>, vector<2x8xf32>, vector<256x8xf32> -> vector<256x8xf32>
    %84 = arith.addf %79, %83 : vector<256x8xf32>
    %85 = vector.shape_cast %56 : vector<16x16x2xf32> to vector<256x2xf32>
    %c2_124 = arith.constant 2 : index
    %c0_125 = arith.constant 0 : index
    %c0_126 = arith.constant 0 : index
    %86 = vector.load %arg4[%c2_124, %c0_125, %c0_126] : memref<4x2x8xf32, #tpu.memory_space<vmem>>, vector<1x2x8xf32>
    %87 = vector.shape_cast %86 : vector<1x2x8xf32> to vector<2x8xf32>
    %cst_127 = arith.constant dense<0.000000e+00> : vector<256x8xf32>
    %88 = tpu.matmul %85, %87, %cst_127 {dimension_numbers = #tpu.dot_dimension_numbers<[1], [0], [0], [1], [0, 0, 1, 1], [], []>} : vector<256x2xf32>, vector<2x8xf32>, vector<256x8xf32> -> vector<256x8xf32>
    %89 = arith.addf %84, %88 : vector<256x8xf32>
    %90 = vector.shape_cast %76 : vector<16x16x2xf32> to vector<256x2xf32>
    %c3_128 = arith.constant 3 : index
    %c0_129 = arith.constant 0 : index
    %c0_130 = arith.constant 0 : index
    %91 = vector.load %arg4[%c3_128, %c0_129, %c0_130] : memref<4x2x8xf32, #tpu.memory_space<vmem>>, vector<1x2x8xf32>
    %92 = vector.shape_cast %91 : vector<1x2x8xf32> to vector<2x8xf32>
    %cst_131 = arith.constant dense<0.000000e+00> : vector<256x8xf32>
    %93 = tpu.matmul %90, %92, %cst_131 {dimension_numbers = #tpu.dot_dimension_numbers<[1], [0], [0], [1], [0, 0, 1, 1], [], []>} : vector<256x2xf32>, vector<2x8xf32>, vector<256x8xf32> -> vector<256x8xf32>
    %94 = arith.addf %89, %93 : vector<256x8xf32>
    %c0_132 = arith.constant 0 : index
    %c0_133 = arith.constant 0 : index
    %95 = vector.load %arg5[%c0_132, %c0_133] : memref<1x8xf32, #tpu.memory_space<vmem>>, vector<1x8xf32>
    %96 = vector.broadcast %95 : vector<1x8xf32> to vector<256x8xf32>
    %97 = arith.addf %94, %96 : vector<256x8xf32>
    %98 = arith.negf %97 : vector<256x8xf32>
    %99 = math.exp %98 : vector<256x8xf32>
    %cst_134 = arith.constant 1.000000e+00 : f32
    %100 = vector.broadcast %cst_134 : f32 to vector<256x8xf32>
    %101 = arith.addf %100, %99 : vector<256x8xf32>
    %102 = arith.divf %100, %101 : vector<256x8xf32>
    %103 = arith.mulf %97, %102 : vector<256x8xf32>
    %104 = vector.shape_cast %103 : vector<256x8xf32> to vector<1x16x16x8xf32>
    %c0_135 = arith.constant 0 : index
    %c0_136 = arith.constant 0 : index
    %c0_137 = arith.constant 0 : index
    %c0_138 = arith.constant 0 : index
    %105 = vector.load %arg6[%c0_135, %c0_136, %c0_137, %c0_138] : memref<1x16x16x8xf32, #tpu.memory_space<vmem>>, vector<1x16x16x8xf32>
    tpu.vector_store %arg6[%c0_135, %c0_136, %c0_137, %c0_138], %104 {strides = array<i32>} : memref<1x16x16x8xf32, #tpu.memory_space<vmem>>, vector<1x16x16x8xf32>,
    return
  }
  func.func @transform_0(%arg0: i32) -> (i32, i32, i32, i32) {
    %c0_i32 = arith.constant 0 : i32
    %c0_i32_0 = arith.constant 0 : i32
    %c0_i32_1 = arith.constant 0 : i32
    %c0_i32_2 = arith.constant 0 : i32
    return %arg0, %c0_i32, %c0_i32_0, %c0_i32_1 : i32, i32, i32, i32
  }
  func.func @transform_1(%arg0: i32) -> (i32, i32) {
    %c0_i32 = arith.constant 0 : i32
    %c0_i32_0 = arith.constant 0 : i32
    %c0_i32_1 = arith.constant 0 : i32
    return %c0_i32, %c0_i32_0 : i32, i32
  }
  func.func @transform_2(%arg0: i32) -> (i32, i32) {
    %c0_i32 = arith.constant 0 : i32
    %c0_i32_0 = arith.constant 0 : i32
    %c0_i32_1 = arith.constant 0 : i32
    return %c0_i32, %c0_i32_0 : i32, i32
  }
  func.func @transform_3(%arg0: i32) -> (i32, i32, i32) {
    %c0_i32 = arith.constant 0 : i32
    %c0_i32_0 = arith.constant 0 : i32
    %c0_i32_1 = arith.constant 0 : i32
    %c0_i32_2 = arith.constant 0 : i32
    return %c0_i32, %c0_i32_0, %c0_i32_1 : i32, i32, i32
  }
  func.func @transform_4(%arg0: i32) -> (i32, i32) {
    %c0_i32 = arith.constant 0 : i32
    %c0_i32_0 = arith.constant 0 : i32
    %c0_i32_1 = arith.constant 0 : i32
    return %c0_i32, %c0_i32_0 : i32, i32
  }
  func.func @transform_5(%arg0: i32) -> (i32, i32, i32, i32) {
    %c0_i32 = arith.constant 0 : i32
    %c0_i32_0 = arith.constant 0 : i32
    %c0_i32_1 = arith.constant 0 : i32
    %c0_i32_2 = arith.constant 0 : i32
    return %arg0, %c0_i32, %c0_i32_0, %c0_i32_1 : i32, i32, i32, i32
  }
}

</mosaic_0001>

<bundles_post_ra>
// kernel: tpu_custom_call.1
= control target key start
LH: loop header
LB: loop body
LE: loop exit
PB: predicated region body
PF: predicated region fallthrough
CT: control target
= control target key end

     0   :  { %s6075_s18 = smov 0   ;;  %s8520_s0 = inlined_call_operand.vmem [shape: f32[2,16,16,4], index: 0, kind: input, shape index: {}]   ;;  %s8521_s1 = inlined_call_operand.vmem [shape: f32[4,2], index: 1, kind: input, shape index: {}]   ;;  %s8522_s2 = inlined_call_operand.vmem [shape: f32[1,2], index: 2, kind: input, shape index: {}]   ;;  %s8523_s3 = inlined_call_operand.vmem [shape: f32[4,2,8], index: 3, kind: input, shape index: {}]   ;;  %s8524_s4 = inlined_call_operand.vmem [shape: f32[1,8], index: 4, kind: input, shape index: {}]   ;;  %s8525_s5 = inlined_call_operand.vmem [shape: f32[2,16,16,8], index: 5, kind: output, shape index: {}]  }
   0x1 LB: > { %s5000_s19 = sadd.s32 4294967295, %s6042_s18   ;;  %p5004_p0 = scmp.ge.s32.totalorder %s6042_s18, 1  ;;  %s6042_s18 = sphi %s6075_s18, %s15_s18  }
   0x2   : > { %p187_p1 = scmp.lt.s32.totalorder %s6042_s18, 3 }
   0x4   : > { %p188_p2 = pnand %p5004_p0, %p187_p1 }
   0x6   : > { %191 = sbr.rel (%p188_p2) target bundleno = 879 (0x36f), region = 40 }
   0xd   : > { %v257_v0 = vld [vmem:[%s8521_s1] sm:$0xf]  ;;  %vm362_vm0 = vcmask 1043456   ;;  %p215_p3 = scmp.lt.s32.totalorder %s5000_s19, 1  ;;  %vm265_vm1 = vcmask 31744   ;;  %vm818_vm2 = vcmask 11264  }
   0xe   : > { %5412 = vmatprep.subr.msk.mxu0 %vm362_vm0, %v257_v0  ;;  %vm815_vm3 = vcmask 15360   ;;  %v6044_v33 = vmov -3.4028235e+38   ;;  %v3281_v34 = vld [vmem:[%s8523_s3] sm:$0x3]  ;;  %vm3380_vm4 = vcmask 1041408  }
   0xf   : > { %5413 = vmatpush3.msk.msra.mxu0 %vm362_vm0, %v257_v0  ;;  %s8629_s19 = smov (!%p215_p3, %s5000_s19), 1  ;;  %819 = vst.msk [vmem:[#allocation2 + $0x10] sm:$0xf] %vm818_vm2, %v6044_v33  ;;  %822 = vst.msk [vmem:[#allocation2 + $0x28] sm:$0xf] %vm818_vm2, %v6044_v33  ;;  %5662 = vmatprep.subr.msk.mxu1 %vm3380_vm4, %v3281_v34  ;;  %vm4912_vm5 = vcmask 64512  }
  0x10   : > { %s5245_s22 = sshll.u32 %s8629_s19, 8  ;;  %825 = vst.msk [vmem:[#allocation2 + $0x40] sm:$0xf] %vm818_vm2, %v6044_v33  ;;  %828 = vst.msk [vmem:[#allocation2 + $0x58] sm:$0xf] %vm818_vm2, %v6044_v33  ;;  %5663 = vmatpush3.msk.msra.mxu1 %vm3380_vm4, %v3281_v34 }
  0x11   : > { %s6094_s25 = scalar_lea.vmem %s8520_s0, %s5245_s22  ;;  %831 = vst.msk [vmem:[#allocation2 + $0x70] sm:$0xf] %vm818_vm2, %v6044_v33  ;;  %834 = vst.msk [vmem:[#allocation2 + $0x88] sm:$0xf] %vm818_vm2, %v6044_v33  ;;  %v6228_v35 = vld [vmem:[%s8522_s2] ss:$0 sm:$0xff]  ;;  %s8301_s21 = scalar_lea.vmem %s8525_s5, %s5245_s22 }
  0x12   : > { %v225_v1 = vld [vmem:[%s6094_s25] sm:$0xff]  ;;  %v226_v2 = vld [vmem:[%s6094_s25 + $0x8] sm:$0xff]  ;;  %v227_v3 = vld [vmem:[%s6094_s25 + $0x10] sm:$0xff]  ;;  %837 = vst.msk [vmem:[#allocation2 + $0xa0] sm:$0xf] %vm818_vm2, %v6044_v33 }
  0x13   : > { %5414 = vmatprep.mubr.msk.f32.mxu0 %vm265_vm1, %v225_v1  ;;  %v228_v4 = vld [vmem:[%s6094_s25 + $0x18] sm:$0xff]  ;;  %v229_v5 = vld [vmem:[%s6094_s25 + $0x20] sm:$0xff]  ;;  %v230_v6 = vld [vmem:[%s6094_s25 + $0x28] sm:$0xff]  ;;  %840 = vst.msk [vmem:[#allocation2 + $0xb8] sm:$0xf] %vm818_vm2, %v6044_v33 }
  0x14   : > { %5415 = vmatmul.mubr.msk.f32.vlgmr.msra.gmra.mrb[0].mxu0 %vm265_vm1, %v226_v2  ;;  %v231_v7 = vld [vmem:[%s6094_s25 + $0x30] sm:$0xff]  ;;  %v232_v8 = vld [vmem:[%s6094_s25 + $0x38] sm:$0xff]  ;;  %v233_v9 = vld [vmem:[%s6094_s25 + $0x40] sm:$0xff]  ;;  %843 = vst.msk [vmem:[#allocation2 + $0xd0] sm:$0xf] %vm818_vm2, %v6044_v33 }
  0x15   : > { %5417 = vmatprep.mubr.msk.f32.mxu0 %vm265_vm1, %v227_v3  ;;  %v234_v10 = vld [vmem:[%s6094_s25 + $0x48] sm:$0xff]  ;;  %v235_v11 = vld [vmem:[%s6094_s25 + $0x50] sm:$0xff]  ;;  %v236_v12 = vld [vmem:[%s6094_s25 + $0x58] sm:$0xff]  ;;  %846 = vst.msk [vmem:[#allocation2 + $0xe8] sm:$0xf] %vm818_vm2, %v6044_v33 }
  0x16   : > { %v237_v13 = vld [vmem:[%s6094_s25 + $0x60] sm:$0xff]  ;;  %v238_v14 = vld [vmem:[%s6094_s25 + $0x68] sm:$0xff]  ;;  %v239_v15 = vld [vmem:[%s6094_s25 + $0x70] sm:$0xff]  ;;  %849 = vst.msk [vmem:[#allocation2 + $0x100] sm:$0xf] %vm818_vm2, %v6044_v33 }
  0x17   : > { %v240_v16 = vld [vmem:[%s6094_s25 + $0x78] sm:$0xff]  ;;  %v241_v17 = vld [vmem:[%s6094_s25 + $0x80] sm:$0xff]  ;;  %v242_v18 = vld [vmem:[%s6094_s25 + $0x88] sm:$0xff]  ;;  %852 = vst.msk [vmem:[#allocation2 + $0x118] sm:$0xf] %vm818_vm2, %v6044_v33 }
  0x18   : > { %5418 = vmatmul.mubr.msk.f32.gmra.mrb[2].mxu0 %vm265_vm1, %v228_v4  ;;  %v243_v19 = vld [vmem:[%s6094_s25 + $0x90] sm:$0xff]  ;;  %v244_v20 = vld [vmem:[%s6094_s25 + $0x98] sm:$0xff]  ;;  %v245_v21 = vld [vmem:[%s6094_s25 + $0xa0] sm:$0xff]  ;;  %855 = vst.msk [vmem:[#allocation2 + $0x130] sm:$0xf] %vm818_vm2, %v6044_v33 }
  0x19   : > { %5420 = vmatprep.mubr.msk.f32.mxu0 %vm265_vm1, %v229_v5  ;;  %v246_v22 = vld [vmem:[%s6094_s25 + $0xa8] sm:$0xff]  ;;  %v247_v23 = vld [vmem:[%s6094_s25 + $0xb0] sm:$0xff]  ;;  %v248_v24 = vld [vmem:[%s6094_s25 + $0xb8] sm:$0xff]  ;;  %858 = vst.msk [vmem:[#allocation2 + $0x148] sm:$0xf] %vm818_vm2, %v6044_v33 }
  0x1a   : > { %v249_v25 = vld [vmem:[%s6094_s25 + $0xc0] sm:$0xff]  ;;  %v250_v26 = vld [vmem:[%s6094_s25 + $0xc8] sm:$0xff]  ;;  %v251_v27 = vld [vmem:[%s6094_s25 + $0xd0] sm:$0xff]  ;;  %861 = vst.msk [vmem:[#allocation2 + $0x160] sm:$0xf] %vm818_vm2, %v6044_v33 }
  0x1b   : > { %v252_v28 = vld [vmem:[%s6094_s25 + $0xd8] sm:$0xff]  ;;  %v253_v29 = vld [vmem:[%s6094_s25 + $0xe0] sm:$0xff]  ;;  %v254_v30 = vld [vmem:[%s6094_s25 + $0xe8] sm:$0xff]  ;;  %864 = vst.msk [vmem:[#allocation2 + $0x178] sm:$0xf] %vm818_vm2, %v6044_v33 }
  0x1c   : > { %5421 = vmatmul.mubr.msk.f32.gmra.mrb[4].mxu0 %vm265_vm1, %v230_v6  ;;  %v255_v31 = vld [vmem:[%s6094_s25 + $0xf0] sm:$0xff]  ;;  %v256_v32 = vld [vmem:[%s6094_s25 + $0xf8] sm:$0xff]  ;;  %867 = vst.msk [vmem:[#allocation2 + $0x190] sm:$0xf] %vm818_vm2, %v6044_v33  ;;  %870 = vst.msk [vmem:[#allocation2 + $0x1a8] sm:$0xf] %vm818_vm2, %v6044_v33 }
  0x1d   : > { %5423 = vmatprep.mubr.msk.f32.mxu0 %vm265_vm1, %v231_v7  ;;  %873 = vst.msk [vmem:[#allocation2 + $0x1c0] sm:$0xf] %vm818_vm2, %v6044_v33  ;;  %876 = vst.msk [vmem:[#allocation2 + $0x1d8] sm:$0xf] %vm818_vm2, %v6044_v33  ;;  %v5075_v41 = vld [vmem:[%s8523_s3 + $0x2] sm:$0x3] }
  0x1e   : > { %824 = vst.msk [vmem:[#allocation2 + $0x38] sm:$0xff] %vm815_vm3, %v6044_v33  ;;  %816 = vst.msk [vmem:[#allocation2] sm:$0xff] %vm815_vm3, %v6044_v33  ;;  %5462 = vmatprep.subr.msk.mxu0 %vm3380_vm4, %v5075_v41 }
  0x1f   : > { %817 = vst.msk [vmem:[#allocation2 + $0x8] sm:$0xff] %vm815_vm3, %v6044_v33  ;;  %820 = vst.msk [vmem:[#allocation2 + $0x18] sm:$0xff] %vm815_vm3, %v6044_v33  ;;  %5463 = vmatpush3.msk.msra.mxu0 %vm3380_vm4, %v5075_v41 }
  0x20   : > { %5424 = vmatmul.mubr.msk.f32.gmra.mrb[6].mxu0 %vm265_vm1, %v232_v8  ;;  %821 = vst.msk [vmem:[#allocation2 + $0x20] sm:$0xff] %vm815_vm3, %v6044_v33  ;;  %823 = vst.msk [vmem:[#allocation2 + $0x30] sm:$0xff] %vm815_vm3, %v6044_v33  ;;  %5512 = vmatprep.subr.msk.mxu0 %vm3380_vm4, %v3281_v34 }
  0x21   : > { %5426 = vmatprep.mubr.msk.f32.mxu0 %vm265_vm1, %v233_v9  ;;  %826 = vst.msk [vmem:[#allocation2 + $0x48] sm:$0xff] %vm815_vm3, %v6044_v33  ;;  %827 = vst.msk [vmem:[#allocation2 + $0x50] sm:$0xff] %vm815_vm3, %v6044_v33 }
  0x22   : > { %829 = vst.msk [vmem:[#allocation2 + $0x60] sm:$0xff] %vm815_vm3, %v6044_v33  ;;  %830 = vst.msk [vmem:[#allocation2 + $0x68] sm:$0xff] %vm815_vm3, %v6044_v33 }
  0x23   : > { %832 = vst.msk [vmem:[#allocation2 + $0x78] sm:$0xff] %vm815_vm3, %v6044_v33  ;;  %833 = vst.msk [vmem:[#allocation2 + $0x80] sm:$0xff] %vm815_vm3, %v6044_v33 }
  0x24   : > { %5427 = vmatmul.mubr.msk.f32.gmra.mrb[8].mxu0 %vm265_vm1, %v234_v10  ;;  %835 = vst.msk [vmem:[#allocation2 + $0x90] sm:$0xff] %vm815_vm3, %v6044_v33  ;;  %836 = vst.msk [vmem:[#allocation2 + $0x98] sm:$0xff] %vm815_vm3, %v6044_v33 }
  0x25   : > { %5429 = vmatprep.mubr.msk.f32.mxu0 %vm265_vm1, %v235_v11  ;;  %838 = vst.msk [vmem:[#allocation2 + $0xa8] sm:$0xff] %vm815_vm3, %v6044_v33  ;;  %839 = vst.msk [vmem:[#allocation2 + $0xb0] sm:$0xff] %vm815_vm3, %v6044_v33 }
  0x26   : > { %841 = vst.msk [vmem:[#allocation2 + $0xc0] sm:$0xff] %vm815_vm3, %v6044_v33  ;;  %842 = vst.msk [vmem:[#allocation2 + $0xc8] sm:$0xff] %vm815_vm3, %v6044_v33 }
  0x27   : > { %844 = vst.msk [vmem:[#allocation2 + $0xd8] sm:$0xff] %vm815_vm3, %v6044_v33  ;;  %845 = vst.msk [vmem:[#allocation2 + $0xe0] sm:$0xff] %vm815_vm3, %v6044_v33 }
  0x28   : > { %5430 = vmatmul.mubr.msk.f32.gmra.mrb[10].mxu0 %vm265_vm1, %v236_v12  ;;  %847 = vst.msk [vmem:[#allocation2 + $0xf0] sm:$0xff] %vm815_vm3, %v6044_v33  ;;  %848 = vst.msk [vmem:[#allocation2 + $0xf8] sm:$0xff] %vm815_vm3, %v6044_v33 }
  0x29   : > { %5432 = vmatprep.mubr.msk.f32.mxu0 %vm265_vm1, %v237_v13  ;;  %850 = vst.msk [vmem:[#allocation2 + $0x108] sm:$0xff] %vm815_vm3, %v6044_v33  ;;  %851 = vst.msk [vmem:[#allocation2 + $0x110] sm:$0xff] %vm815_vm3, %v6044_v33 }
  0x2a   : > { %853 = vst.msk [vmem:[#allocation2 + $0x120] sm:$0xff] %vm815_vm3, %v6044_v33  ;;  %854 = vst.msk [vmem:[#allocation2 + $0x128] sm:$0xff] %vm815_vm3, %v6044_v33 }
  0x2b   : > { %856 = vst.msk [vmem:[#allocation2 + $0x138] sm:$0xff] %vm815_vm3, %v6044_v33  ;;  %857 = vst.msk [vmem:[#allocation2 + $0x140] sm:$0xff] %vm815_vm3, %v6044_v33 }
  0x2c   : > { %5433 = vmatmul.mubr.msk.f32.gmra.mrb[12].mxu0 %vm265_vm1, %v238_v14  ;;  %859 = vst.msk [vmem:[#allocation2 + $0x150] sm:$0xff] %vm815_vm3, %v6044_v33  ;;  %860 = vst.msk [vmem:[#allocation2 + $0x158] sm:$0xff] %vm815_vm3, %v6044_v33 }
  0x2d   : > { %5435 = vmatprep.mubr.msk.f32.mxu0 %vm265_vm1, %v239_v15  ;;  %862 = vst.msk [vmem:[#allocation2 + $0x168] sm:$0xff] %vm815_vm3, %v6044_v33  ;;  %863 = vst.msk [vmem:[#allocation2 + $0x170] sm:$0xff] %vm815_vm3, %v6044_v33 }
  0x2e   : > { %865 = vst.msk [vmem:[#allocation2 + $0x180] sm:$0xff] %vm815_vm3, %v6044_v33  ;;  %866 = vst.msk [vmem:[#allocation2 + $0x188] sm:$0xff] %vm815_vm3, %v6044_v33 }
  0x2f   : > { %868 = vst.msk [vmem:[#allocation2 + $0x198] sm:$0xff] %vm815_vm3, %v6044_v33  ;;  %869 = vst.msk [vmem:[#allocation2 + $0x1a0] sm:$0xff] %vm815_vm3, %v6044_v33 }
  0x30   : > { %5436 = vmatmul.mubr.msk.f32.gmra.mrb[14].mxu0 %vm265_vm1, %v240_v16  ;;  %871 = vst.msk [vmem:[#allocation2 + $0x1b0] sm:$0xff] %vm815_vm3, %v6044_v33  ;;  %872 = vst.msk [vmem:[#allocation2 + $0x1b8] sm:$0xff] %vm815_vm3, %v6044_v33 }
  0x31   : > { %5438 = vmatprep.mubr.msk.f32.mxu0 %vm265_vm1, %v241_v17  ;;  %874 = vst.msk [vmem:[#allocation2 + $0x1c8] sm:$0xff] %vm815_vm3, %v6044_v33  ;;  %875 = vst.msk [vmem:[#allocation2 + $0x1d0] sm:$0xff] %vm815_vm3, %v6044_v33 }
  0x34   : > { %5439 = vmatmul.mubr.msk.f32.gmra.mrb[16].mxu0 %vm265_vm1, %v242_v18 }
  0x35   : > { %5441 = vmatprep.mubr.msk.f32.mxu0 %vm265_vm1, %v243_v19 }
  0x38   : > { %5442 = vmatmul.mubr.msk.f32.gmra.mrb[18].mxu0 %vm265_vm1, %v244_v20 }
  0x39   : > { %5444 = vmatprep.mubr.msk.f32.mxu0 %vm265_vm1, %v245_v21 }
  0x3c   : > { %5445 = vmatmul.mubr.msk.f32.gmra.mrb[20].mxu0 %vm265_vm1, %v246_v22 }
  0x3d   : > { %5447 = vmatprep.mubr.msk.f32.mxu0 %vm265_vm1, %v247_v23 }
  0x40   : > { %5448 = vmatmul.mubr.msk.f32.gmra.mrb[22].mxu0 %vm265_vm1, %v248_v24 }
  0x41   : > { %5450 = vmatprep.mubr.msk.f32.mxu0 %vm265_vm1, %v249_v25 }
  0x44   : > { %5451 = vmatmul.mubr.msk.f32.gmra.mrb[24].mxu0 %vm265_vm1, %v250_v26 }
  0x45   : > { %5453 = vmatprep.mubr.msk.f32.mxu0 %vm265_vm1, %v251_v27 }
  0x48   : > { %5454 = vmatmul.mubr.msk.f32.gmra.mrb[26].mxu0 %vm265_vm1, %v252_v28 }
  0x49   : > { %5456 = vmatprep.mubr.msk.f32.mxu0 %vm265_vm1, %v253_v29 }
  0x4c   : > { %5457 = vmatmul.mubr.msk.f32.gmra.mrb[28].mxu0 %vm265_vm1, %v254_v30 }
  0x4d   : > { %5459 = vmatprep.mubr.msk.f32.mxu0 %vm265_vm1, %v255_v31 }
  0x50   : > { %5460 = vmatmul.mubr.msk.f32.gmra.mrb[30].mxu0 %vm265_vm1, %v256_v32 }
  0xe7   : > { %v5416_v36 = vpop.f32.mrb[0].mxu0 }
  0xe8   : > { %v6231_v37 = vadd.f32 %v5416_v36, %v6228_v35  ;;  %v432_v38 = vpop.f32.mrb[1].mxu0 }
  0xe9   : > { %v6234_v39 = vadd.f32 %v6228_v35, %v432_v38 }
  0xea   : > { %v5044_v40 = vmul.f32 -1.442695, %v6231_v37 }
  0xeb   : > { %v5043_v42 = vmul.f32 -1.442695, %v6234_v39  ;;  %v5419_v43 = vpop.f32.mrb[2].mxu0 }
  0xec   : > { %5769 = vpow2.f32 %v5044_v40  ;;  %v6243_v44 = vadd.f32 %v5419_v43, %v6228_v35  ;;  %v442_v45 = vpop.f32.mrb[3].mxu0 }
  0xed   : > { %5771 = vpow2.f32 %v5043_v42  ;;  %v6247_v46 = vadd.f32 %v6228_v35, %v442_v45 }
  0xee   : > { %v5046_v47 = vmul.f32 -1.442695, %v6243_v44 }
  0xef   : > { %v5045_v48 = vmul.f32 -1.442695, %v6247_v46  ;;  %v5422_v49 = vpop.f32.mrb[4].mxu0 }
  0xf0   : > { %5773 = vpow2.f32 %v5046_v47  ;;  %v6253_v50 = vadd.f32 %v5422_v49, %v6228_v35  ;;  %v452_v51 = vpop.f32.mrb[5].mxu0 }
  0xf1   : > { %5775 = vpow2.f32 %v5045_v48  ;;  %v6256_v52 = vadd.f32 %v6228_v35, %v452_v51 }
  0xf2   : > { %v5048_v53 = vmul.f32 -1.442695, %v6253_v50 }
  0xf3   : > { %v5047_v54 = vmul.f32 -1.442695, %v6256_v52  ;;  %v5425_v55 = vpop.f32.mrb[6].mxu0 }
  0xf4   : > { %5777 = vpow2.f32 %v5048_v53  ;;  %v6261_v56 = vadd.f32 %v5425_v55, %v6228_v35  ;;  %v462_v57 = vpop.f32.mrb[7].mxu0  ;;  %v6316_v55 = vld [vmem:[#allocation2 + $0x10] sm:$0xf] }
  0xf5   : > { %5779 = vpow2.f32 %v5047_v54  ;;  %v6264_v58 = vadd.f32 %v6228_v35, %v462_v57 }
  0xf6   : > { %v5770_v59 = vpop.eup %5769  ;;  %v5050_v60 = vmul.f32 -1.442695, %v6261_v56 }
  0xf7   : > { %v5772_v61 = vpop.eup %5771  ;;  %v688_v62 = vadd.f32 1.0, %v5770_v59  ;;  %v5049_v63 = vmul.f32 -1.442695, %v6264_v58  ;;  %v5428_v0 = vpop.f32.mrb[8].mxu0 }
  0xf8   : > { %v687_v1 = vadd.f32 1.0, %v5772_v61  ;;  %5781 = vpow2.f32 %v5050_v60  ;;  %v6269_v2 = vadd.f32 %v5428_v0, %v6228_v35  ;;  %v472_v3 = vpop.f32.mrb[9].mxu0  ;;  %v961_v61 = vld [vmem:[#allocation2 + $0x28] sm:$0xf]  ;;  %v910_v0 = vld [vmem:[#allocation2] sm:$0xff] }
  0xf9   : > { %5783 = vrcp.f32 %v688_v62  ;;  %v6272_v4 = vadd.f32 %v6228_v35, %v472_v3  ;;  %v6327_v3 = vld [vmem:[#allocation2 + $0x18] sm:$0xff] }
  0xfa   : > { %v5774_v5 = vpop.eup %5773  ;;  %5785 = vrcp.f32 %v687_v1  ;;  %v5052_v6 = vmul.f32 -1.442695, %v6269_v2  ;;  %v911_v1 = vld [vmem:[#allocation2 + $0x8] sm:$0xff] }
  0xfb   : > { %v5776_v7 = vpop.eup %5775  ;;  %v690_v8 = vadd.f32 1.0, %v5774_v5  ;;  %5787 = vpow2.f32 %v5049_v63  ;;  %v5051_v9 = vmul.f32 -1.442695, %v6272_v4  ;;  %v5431_v10 = vpop.f32.mrb[10].mxu0 }
  0xfc   : > { %v689_v11 = vadd.f32 1.0, %v5776_v7  ;;  %5789 = vpow2.f32 %v5052_v6  ;;  %v6277_v12 = vadd.f32 %v5431_v10, %v6228_v35  ;;  %v482_v13 = vpop.f32.mrb[11].mxu0  ;;  %v6331_v7 = vld [vmem:[#allocation2 + $0x20] sm:$0xff]  ;;  %v6336_v10 = vld [vmem:[#allocation2 + $0x8] sm:$0xff] }
  0xfd   : > { %5791 = vrcp.f32 %v690_v8  ;;  %v6280_v14 = vadd.f32 %v6228_v35, %v482_v13 }
  0xfe   : > { %v5778_v15 = vpop.eup %5777  ;;  %5793 = vrcp.f32 %v689_v11  ;;  %v5054_v16 = vmul.f32 -1.442695, %v6277_v12  ;;  %v6338_v11 = vld [vmem:[#allocation2 + $0x20] sm:$0xff] }
  0xff   : > { %v5780_v17 = vpop.eup %5779  ;;  %v692_v18 = vadd.f32 1.0, %v5778_v15  ;;  %5795 = vpow2.f32 %v5051_v9  ;;  %v5053_v19 = vmul.f32 -1.442695, %v6280_v14  ;;  %v5434_v20 = vpop.f32.mrb[12].mxu0  ;;  %v915_v15 = vld [vmem:[#allocation2 + $0x28] sm:$0xf] }
 0x100   : > { %v691_v21 = vadd.f32 1.0, %v5780_v17  ;;  %5797 = vpow2.f32 %v5054_v16  ;;  %v6285_v22 = vadd.f32 %v5434_v20, %v6228_v35  ;;  %v492_v23 = vpop.f32.mrb[13].mxu0 }
 0x101   : > { %5799 = vrcp.f32 %v692_v18  ;;  %v6288_v24 = vadd.f32 %v6228_v35, %v492_v23 }
 0x102   : > { %v5782_v25 = vpop.eup %5781  ;;  %5801 = vrcp.f32 %v691_v21  ;;  %v5056_v26 = vmul.f32 -1.442695, %v6285_v22  ;;  %v1009_v21 = vmax.f32 %v6316_v55, %v961_v61 }
 0x103   : > { %v5784_v27 = vpop.eup %5783  ;;  %v694_v28 = vadd.f32 1.0, %v5782_v25  ;;  %5803 = vpow2.f32 %v5053_v19  ;;  %v5055_v29 = vmul.f32 -1.442695, %v6288_v24  ;;  %v5437_v30 = vpop.f32.mrb[14].mxu0  ;;  %v6347_v19 = vld [vmem:[#allocation2] sm:$0xff] }
 0x104   : > { %v5786_v31 = vpop.eup %5785  ;;  %v6293_v32 = vmul.f32 %v5784_v27, %v6231_v37  ;;  %5805 = vpow2.f32 %v5056_v26  ;;  %v6296_v33 = vadd.f32 %v5437_v30, %v6228_v35  ;;  %v502_v34 = vpop.f32.mrb[15].mxu0  ;;  %v6356_v25 = vld [vmem:[#allocation2 + $0x28] sm:$0xf]  ;;  %v6362_v30 = vmax.f32 %v911_v1, %v6331_v7 }
 0x105   : > { %v5788_v36 = vpop.eup %5787  ;;  %v6299_v38 = vmul.f32 %v5786_v31, %v6234_v39  ;;  %5807 = vrcp.f32 %v694_v28  ;;  %v6302_v40 = vadd.f32 %v6228_v35, %v502_v34  ;;  %8561 = vst [vmem:[#allocation11_spill] sm:$0xff] %v6356_v25 }
 0x106   : > { %8554 = vst [vmem:[#allocation4_spill] sm:$0xff] %v6293_v32  ;;  %v5790_v41 = vpop.eup %5789  ;;  %879 = vst.msk [vmem:[#allocation2 + $0x3a] sm:$0xff] %vm815_vm3, %v6293_v32  ;;  %v693_v42 = vadd.f32 1.0, %v5788_v36  ;;  %5809 = vpow2.f32 %v5055_v29  ;;  %v5058_v37 = vmul.f32 -1.442695, %v6296_v33  ;;  %v6359_v29 = vmax.f32 %v910_v0, %v6327_v3 }
 0x107   : > { %8555 = vst [vmem:[#allocation5_spill] sm:$0xff] %v6299_v38  ;;  %v5792_v43 = vpop.eup %5791  ;;  %878 = vst.msk [vmem:[#allocation2 + $0x32] sm:$0xff] %vm815_vm3, %v6299_v38  ;;  %v696_v45 = vadd.f32 1.0, %v5790_v41  ;;  %v5057_v39 = vmul.f32 -1.442695, %v6302_v40  ;;  %v5440_v47 = vpop.f32.mrb[16].mxu0 }
 0x108   : > { %v5794_v48 = vpop.eup %5793  ;;  %v6311_v49 = vmul.f32 %v5792_v43, %v6243_v44  ;;  %5811 = vrcp.f32 %v693_v42  ;;  %v6314_v51 = vadd.f32 %v5440_v47, %v6228_v35  ;;  %v512_v53 = vpop.f32.mrb[17].mxu0  ;;  %8562 = vst [vmem:[#allocation12_spill] sm:$0xff] %v6359_v29  ;;  %8563 = vst [vmem:[#allocation13_spill] sm:$0xff] %v6362_v30 }
 0x109   : > { %v5796_v54 = vpop.eup %5795  ;;  %v6319_v57 = vmul.f32 %v5794_v48, %v6247_v46  ;;  %5813 = vrcp.f32 %v696_v45  ;;  %v6322_v59 = vadd.f32 %v6228_v35, %v512_v53 }
 0x10a   : > { %8556 = vst [vmem:[#allocation6_spill] sm:$0xff] %v6311_v49  ;;  %v5798_v60 = vpop.eup %5797  ;;  %881 = vst.msk [vmem:[#allocation2 + $0x52] sm:$0xff] %vm815_vm3, %v6311_v49  ;;  %v695_v44 = vadd.f32 1.0, %v5796_v54  ;;  %5815 = vpow2.f32 %v5058_v37  ;;  %v5060_v62 = vmul.f32 -1.442695, %v6314_v51 }
 0x10b   : > { %8557 = vst [vmem:[#allocation7_spill] sm:$0xff] %v6319_v57  ;;  %v5800_v63 = vpop.eup %5799  ;;  %880 = vst.msk [vmem:[#allocation2 + $0x4a] sm:$0xff] %vm815_vm3, %v6319_v57  ;;  %v698_v46 = vadd.f32 1.0, %v5798_v60  ;;  %5817 = vpow2.f32 %v5057_v39  ;;  %v5443_v5 = vpop.f32.mrb[18].mxu0  ;;  %v5059_v17 = vmul.f32 -1.442695, %v6322_v59 }
 0x10c   : > { %v5802_v6 = vpop.eup %5801  ;;  %v6334_v8 = vmul.f32 %v5800_v63, %v6253_v50  ;;  %5819 = vrcp.f32 %v695_v44  ;;  %v522_v9 = vpop.f32.mrb[19].mxu0  ;;  %v6345_v18 = vadd.f32 %v5443_v5, %v6228_v35  ;;  %v6349_v50 = vld [vmem:[#allocation2 + $0x18] sm:$0xff] }
 0x10d   : > { %v5804_v13 = vpop.eup %5803  ;;  %v6341_v16 = vmul.f32 %v5802_v6, %v6256_v52  ;;  %5821 = vrcp.f32 %v698_v46  ;;  %v6354_v52 = vld [vmem:[#allocation2 + $0x10] sm:$0xf]  ;;  %v964_v27 = vld [vmem:[#allocation2 + $0x40] sm:$0xf]  ;;  %v6381_v53 = vadd.f32 %v6228_v35, %v522_v9 }
 0x10e   : > { %8558 = vst [vmem:[#allocation8_spill] sm:$0xff] %v6334_v8  ;;  %v5806_v20 = vpop.eup %5805  ;;  %883 = vst.msk [vmem:[#allocation2 + $0x6a] sm:$0xff] %vm815_vm3, %v6334_v8  ;;  %v697_v23 = vadd.f32 1.0, %v5804_v13  ;;  %5823 = vpow2.f32 %v5060_v62  ;;  %v1057_v28 = vld [vmem:[#allocation2 + $0x40] sm:$0xf]  ;;  %v6368_v41 = vld [vmem:[#allocation2 + $0x30] sm:$0xff] }
 0x10f   : > { %8559 = vst [vmem:[#allocation9_spill] sm:$0xff] %v6341_v16  ;;  %8560 = vst [vmem:[#allocation10_spill] sm:$0xff] %v6354_v52  ;;  %v5808_v26 = vpop.eup %5807  ;;  %v5446_v31 = vpop.f32.mrb[20].mxu0  ;;  %v6370_v42 = vld [vmem:[#allocation2 + $0x38] sm:$0xff]  ;;  %v700_v43 = vadd.f32 1.0, %v5806_v20  ;;  %v1105_v60 = vmax.f32 %v1009_v21, %v1057_v28  ;;  %v1010_v1 = vmax.f32 %v6327_v3, %v6368_v41  ;;  %v1103_v5 = vmax.f32 %v6359_v29, %v6368_v41 }
 0x110   : > { %882 = vst.msk [vmem:[#allocation2 + $0x62] sm:$0xff] %vm815_vm3, %v6341_v16  ;;  %v5810_v36 = vpop.eup %5809  ;;  %v6373_v37 = vmul.f32 %v5808_v26, %v6261_v56  ;;  %5825 = vrcp.f32 %v697_v23  ;;  %v532_v45 = vpop.f32.mrb[21].mxu0  ;;  %v5062_v48 = vmul.f32 -1.442695, %v6345_v18  ;;  %v1012_v56 = vmax.f32 %v915_v15, %v964_v27  ;;  %v918_v0 = vld [vmem:[#allocation2 + $0x40] sm:$0xf] }
 0x111   : > { %v6377_v47 = vld [vmem:[#allocation2 + $0x58] sm:$0xf]  ;;  %5827 = vpow2.f32 %v5059_v17  ;;  %v699_v62 = vadd.f32 1.0, %v5810_v36  ;;  %v1011_v46 = vmax.f32 %v6331_v7, %v6370_v42  ;;  %v1104_v6 = vmax.f32 %v6362_v30, %v6370_v42 }
 0x112   : > { %8564 = vst [vmem:[#allocation14_spill] sm:$0xff] %v6373_v37  ;;  %v5812_v55 = vpop.eup %5811  ;;  %v1060_v61 = vld [vmem:[#allocation2 + $0x58] sm:$0xf]  ;;  %885 = vst.msk [vmem:[#allocation2 + $0x82] sm:$0xff] %vm815_vm3, %v6373_v37  ;;  %5829 = vrcp.f32 %v700_v43  ;;  %v6395_v9 = vld [vmem:[#allocation2 + $0x48] sm:$0xff]  ;;  %v1015_v20 = vmax.f32 %v918_v0, %v6377_v47  ;;  %v6404_v3 = vadd.f32 %v5446_v31, %v6228_v35  ;;  %v6407_v7 = vadd.f32 %v6228_v35, %v532_v45 }
 0x113   : > { %v1154_v44 = vld [vmem:[#allocation2 + $0x58] sm:$0xf]  ;;  %v5814_v63 = vpop.eup %5813  ;;  %v6397_v13 = vld [vmem:[#allocation2 + $0x50] sm:$0xff]  ;;  %v5449_v15 = vpop.f32.mrb[22].mxu0  ;;  %v6401_v21 = vmul.f32 %v5812_v55, %v6264_v58  ;;  %v1108_v27 = vmax.f32 %v1012_v56, %v1060_v61  ;;  %5831 = vrcp.f32 %v699_v62  ;;  %v1013_v58 = vmax.f32 %v6368_v41, %v6395_v9 }
 0x114   : > { %v5816_v17 = vpop.eup %5815  ;;  %v542_v23 = vpop.f32.mrb[23].mxu0  ;;  %v1202_v28 = vmax.f32 %v1105_v60, %v1154_v44  ;;  %v6412_v43 = vmul.f32 %v5814_v63, %v6269_v2  ;;  %v6419_v45 = vmax.f32 %v1010_v1, %v6395_v9  ;;  %5833 = vpow2.f32 %v5062_v48  ;;  %v6425_v60 = vld [vmem:[#allocation2 + $0x58] sm:$0xf] }
 0x115   : > { %8565 = vst [vmem:[#allocation15_spill] sm:$0xff] %v6401_v21  ;;  %v5818_v26 = vpop.eup %5817  ;;  %v6409_v36 = vld [vmem:[#allocation2 + $0x70] sm:$0xf]  ;;  %884 = vst.msk [vmem:[#allocation2 + $0x7a] sm:$0xff] %vm815_vm3, %v6401_v21  ;;  %v6428_v61 = vmax.f32 %v1011_v46, %v6397_v13  ;;  %v1200_v41 = vmax.f32 %v1103_v5, %v6395_v9  ;;  %v702_v63 = vadd.f32 1.0, %v5816_v17  ;;  %v6436_v39 = vmax.f32 %v1104_v6, %v6397_v13 }
 0x116   : > { %8566 = vst [vmem:[#allocation16_spill] sm:$0xff] %v6412_v43  ;;  %v5820_v47 = vpop.eup %5819  ;;  %v1157_v55 = vld [vmem:[#allocation2 + $0x70] sm:$0xf]  ;;  %887 = vst.msk [vmem:[#allocation2 + $0x9a] sm:$0xff] %vm815_vm3, %v6412_v43  ;;  %v1018_v48 = vmax.f32 %v6425_v60, %v6409_v36  ;;  %v6441_v46 = vadd.f32 %v5449_v15, %v6228_v35  ;;  %v6444_v5 = vadd.f32 %v6228_v35, %v542_v23  ;;  %v701_v31 = vadd.f32 1.0, %v5818_v26 }
 0x117   : > { %v1251_v0 = vld [vmem:[#allocation2 + $0x70] sm:$0xf]  ;;  %v6421_v56 = vld [vmem:[#allocation2 + $0x60] sm:$0xff]  ;;  %v5822_v2 = vpop.eup %5821  ;;  %v6433_v1 = vpop.f32.mrb[24].mxu0  ;;  %v6451_v34 = vmul.f32 %v5820_v47, %v6272_v4  ;;  %5835 = vrcp.f32 %v702_v63 }
 0x118   : > { %v1063_v44 = vld [vmem:[#allocation2 + $0x70] sm:$0xf]  ;;  %v1299_v62 = vmax.f32 %v1202_v28, %v1251_v0  ;;  %v5824_v54 = vpop.eup %5823  ;;  %v6446_v28 = vpop.f32.mrb[25].mxu0  ;;  %v1205_v0 = vmax.f32 %v1108_v27, %v1157_v55  ;;  %v1297_v17 = vmax.f32 %v1200_v41, %v6421_v56  ;;  %v6454_v6 = vmul.f32 %v5822_v2, %v6277_v12  ;;  %v6458_v27 = vld [vmem:[#allocation2 + $0x68] sm:$0xff] }
 0x119   : > { %8567 = vst [vmem:[#allocation17_spill] sm:$0xff] %v6451_v34  ;;  %v1111_v60 = vmax.f32 %v1015_v20, %v1063_v44  ;;  %v1016_v15 = vmax.f32 %v6395_v9, %v6421_v56  ;;  %v1254_v23 = vld [vmem:[#allocation2 + $0x88] sm:$0xf]  ;;  %v704_v43 = vadd.f32 1.0, %v5824_v54  ;;  %v6461_v55 = vmax.f32 %v1013_v58, %v6421_v56  ;;  %886 = vst.msk [vmem:[#allocation2 + $0x92] sm:$0xff] %vm815_vm3, %v6451_v34 }
 0x11a   : > { %1347 = vst.msk [vmem:[#allocation3 + $0x10] sm:$0xf] %vm818_vm2, %v1299_v62  ;;  %8568 = vst [vmem:[#allocation18_spill] sm:$0xff] %v6454_v6  ;;  %v5826_v36 = vpop.eup %5825  ;;  %v973_v4 = vld [vmem:[#allocation2 + $0x88] sm:$0xf]  ;;  %v1302_v12 = vmax.f32 %v1205_v0, %v1254_v23  ;;  %v1203_v58 = vmax.f32 %v6419_v45, %v6421_v56  ;;  %5837 = vrcp.f32 %v701_v31  ;;  %v1017_v31 = vmax.f32 %v6397_v13, %v6458_v27 }
 0x11b   : > { %v5828_v37 = vpop.eup %5827  ;;  %1345 = vst.msk [vmem:[#allocation3] sm:$0xff] %vm815_vm3, %v1297_v17  ;;  %v1160_v47 = vld [vmem:[#allocation2 + $0x88] sm:$0xf]  ;;  %889 = vst.msk [vmem:[#allocation2 + $0xb2] sm:$0xff] %vm815_vm3, %v6454_v6  ;;  %v6469_v9 = vmul.f32 %v5826_v36, %v6280_v14  ;;  %v6471_v54 = vpop.f32.mrb[26].mxu0  ;;  %5839 = vrcp.f32 %v704_v43  ;;  %v8571_v43 = vmax.f32 %v6370_v42, %v6397_v13 }
 0x11c   : > { %v5830_v20 = vpop.eup %5829  ;;  %v924_v26 = vld [vmem:[#allocation2 + $0x70] sm:$0xf]  ;;  %v1066_v2 = vld [vmem:[#allocation2 + $0x88] sm:$0xf]  ;;  %v703_v41 = vadd.f32 1.0, %v5828_v37  ;;  %v562_v62 = vpop.f32.mrb[27].mxu0  ;;  %v1208_v17 = vmax.f32 %v1111_v60, %v1160_v47 }
 0x11d   : > { %8569 = vst [vmem:[#allocation19_spill] sm:$0xff] %v6469_v9  ;;  %v5061_v44 = vmul.f32 -1.442695, %v6381_v53  ;;  %1350 = vst.msk [vmem:[#allocation3 + $0x28] sm:$0xf] %vm818_vm2, %v1302_v12  ;;  %v6477_v0 = vld [vmem:[#allocation2 + $0x78] sm:$0xff]  ;;  %v6484_v63 = vmul.f32 %v5830_v20, %v6285_v22  ;;  %v5832_v22 = vpop.eup %5831  ;;  %v6506_v20 = vmax.f32 %v8571_v43, %v6458_v27  ;;  %v1114_v16 = vmax.f32 %v1018_v48, %v1066_v2 }
 0x11e   : > { %v6479_v14 = vld [vmem:[#allocation2 + $0x80] sm:$0xff]  ;;  %888 = vst.msk [vmem:[#allocation2 + $0xaa] sm:$0xff] %vm815_vm3, %v6469_v9  ;;  %v6487_v45 = vmul.f32 -1.442695, %v6404_v3  ;;  %v6490_v37 = vmul.f32 -1.442695, %v6407_v7  ;;  %v1021_v9 = vmax.f32 %v924_v26, %v973_v4  ;;  %v1300_v60 = vmax.f32 %v1203_v58, %v6477_v0  ;;  %v5834_v8 = vpop.eup %5833 }
 0x11f   : > { %8570 = vst [vmem:[#allocation20_spill] sm:$0xff] %v6484_v63  ;;  %v6494_v36 = vld [vmem:[#allocation2 + $0xa0] sm:$0xf]  ;;  %v6497_v23 = vmul.f32 -1.442695, %v6441_v46  ;;  %891 = vst.msk [vmem:[#allocation2 + $0xca] sm:$0xff] %vm815_vm3, %v6484_v63  ;;  %v1019_v49 = vmax.f32 %v6421_v56, %v6477_v0  ;;  %v6516_v43 = vmul.f32 %v5832_v22, %v6288_v24  ;;  %v1020_v58 = vmax.f32 %v6458_v27, %v6479_v14 }
 0x120   : > { %v6500_v12 = vmul.f32 -1.442695, %v6444_v5  ;;  %v1069_v47 = vld [vmem:[#allocation2 + $0xa0] sm:$0xf]  ;;  %v5458_v21 = vpop.f32.mrb[28].mxu0  ;;  %v1112_v48 = vmax.f32 %v1016_v15, %v6477_v0  ;;  %v6529_v56 = vmax.f32 %v1017_v31, %v6479_v14  ;;  %1348 = vst.msk [vmem:[#allocation3 + $0x18] sm:$0xff] %vm815_vm3, %v1300_v60  ;;  %5841 = vrcp.f32 %v703_v41 }
 0x121   : > { %v1257_v34 = vld [vmem:[#allocation2 + $0xa0] sm:$0xf]  ;;  %8572 = vst [vmem:[#allocation21_spill] sm:$0xff] %v6516_v43  ;;  %v6518_v6 = vpop.f32.mrb[29].mxu0  ;;  %v6523_v4 = vld [vmem:[%s8523_s3 + $0x4] sm:$0x3]  ;;  %v1206_v24 = vmax.f32 %v6461_v55, %v6477_v0  ;;  %5843 = vpow2.f32 %v5061_v44  ;;  %v1117_v41 = vmax.f32 %v1021_v9, %v1069_v47  ;;  %v6555_v44 = vadd.f32 %v6228_v35, %v6446_v28 }
 0x122   : > { %v1163_v42 = vld [vmem:[#allocation2 + $0xa0] sm:$0xf]  ;;  %v1305_v13 = vmax.f32 %v1208_v17, %v1257_v34  ;;  %v927_v26 = vld [vmem:[#allocation2 + $0x88] sm:$0xf]  ;;  %5562 = vmatprep.subr.msk.mxu1 %vm3380_vm4, %v6523_v4  ;;  %v6540_v15 = vld [vmem:[#allocation2 + $0x90] sm:$0xff]  ;;  %890 = vst.msk [vmem:[#allocation2 + $0xc2] sm:$0xff] %vm815_vm3, %v6516_v43  ;;  %v6548_v34 = vadd.f32 %v6433_v1, %v6228_v35  ;;  %v5836_v1 = vpop.eup %5835  ;;  %v6570_v43 = vadd.f32 %v5458_v21, %v6228_v35 }
 0x123   : > { %v1024_v2 = vmax.f32 %v927_v26, %v6494_v36  ;;  %v1211_v31 = vmax.f32 %v1114_v16, %v1163_v42  ;;  %v6544_v17 = vld [vmem:[#allocation2 + $0x98] sm:$0xff]  ;;  %v706_v55 = vadd.f32 1.0, %v5834_v8  ;;  %v1303_v36 = vmax.f32 %v1206_v24, %v6540_v15  ;;  %v6564_v9 = vpop.f32.mrb[30].mxu0  ;;  %v930_v32 = vld [vmem:[#allocation2 + $0xa0] sm:$0xf] }
 0x124   : > { %1353 = vst.msk [vmem:[#allocation3 + $0x40] sm:$0xf] %vm818_vm2, %v1305_v13  ;;  %v979_v22 = vld [vmem:[#allocation2 + $0xb8] sm:$0xf]  ;;  %v6559_v16 = vadd.f32 %v6471_v54, %v6228_v35  ;;  %v6562_v8 = vadd.f32 %v6228_v35, %v562_v62  ;;  %v1022_v47 = vmax.f32 %v6477_v0, %v6540_v15  ;;  %v1209_v42 = vmax.f32 %v1112_v48, %v6540_v15  ;;  %v582_v28 = vpop.f32.mrb[31].mxu0  ;;  %v5838_v57 = vpop.eup %5837 }
 0x125   : > { %v1166_v60 = vld [vmem:[#allocation2 + $0xb8] sm:$0xf]  ;;  %v6551_v63 = vld [vmem:[#allocation2 + $0xa8] sm:$0xff]  ;;  %v1023_v54 = vmax.f32 %v6479_v14, %v6544_v17  ;;  %v1115_v62 = vmax.f32 %v1019_v49, %v6540_v15  ;;  %v1116_v29 = vmax.f32 %v1020_v58, %v6544_v17  ;;  %1351 = vst.msk [vmem:[#allocation3 + $0x30] sm:$0xff] %vm815_vm3, %v1303_v36  ;;  %v6577_v0 = vld [vmem:[#allocation2 + $0xb0] sm:$0xff]  ;;  %v5840_v48 = vpop.eup %5839  ;;  %v1210_v21 = vmax.f32 %v6529_v56, %v6544_v17 }
 0x126   : > { %v1072_v13 = vld [vmem:[#allocation2 + $0xb8] sm:$0xf]  ;;  %v1214_v38 = vmax.f32 %v1117_v41, %v1166_v60  ;;  %v1306_v30 = vmax.f32 %v1209_v42, %v6551_v63  ;;  %v6585_v25 = vld [vmem:[#allocation2 + $0xd0] sm:$0xf]  ;;  %v1025_v58 = vmax.f32 %v6540_v15, %v6551_v63  ;;  %v6592_v52 = vmul.f32 %v5836_v1, %v6296_v33 }
 0x127   : > { %v1260_v26 = vld [vmem:[#allocation2 + $0xb8] sm:$0xf]  ;;  %v1263_v49 = vld [vmem:[#allocation2 + $0xd0] sm:$0xf]  ;;  %5845 = vrcp.f32 %v706_v55  ;;  %v6607_v33 = vmax.f32 %v1022_v47, %v6551_v63  ;;  %v5068_v42 = vmul.f32 -1.442695, %v6548_v34 }
 0x128   : > { %v1308_v24 = vmax.f32 %v1211_v31, %v1260_v26  ;;  %v1027_v31 = vmax.f32 %v930_v32, %v979_v22  ;;  %v6581_v26 = vmax.f32 %v1024_v2, %v1072_v13  ;;  %v1075_v41 = vld [vmem:[#allocation2 + $0xd0] sm:$0xf]  ;;  %v1311_v36 = vmax.f32 %v1214_v38, %v1263_v49  ;;  %8573 = vst [vmem:[#allocation22_spill] sm:$0xff] %v6592_v52  ;;  %v6597_v56 = vld [vmem:[#allocation2 + $0xb8] sm:$0xf] }
 0x129   : > { %v6589_v60 = vld [vmem:[#allocation2 + $0xd0] sm:$0xf]  ;;  %v6595_v32 = vmul.f32 %v5838_v57, %v6302_v40  ;;  %v1026_v2 = vmax.f32 %v6544_v17, %v6577_v0  ;;  %v1212_v22 = vmax.f32 %v1115_v62, %v6551_v63  ;;  %1354 = vst.msk [vmem:[#allocation3 + $0x48] sm:$0xff] %vm815_vm3, %v1306_v30  ;;  %v6603_v15 = vld [vmem:[#allocation2 + $0xc0] sm:$0xff]  ;;  %v800_v13 = vmul.f32 %v5840_v48, %v6314_v51 }
 0x12a   : > { %1356 = vst.msk [vmem:[#allocation3 + $0x58] sm:$0xf] %vm818_vm2, %v1308_v24  ;;  %v6610_v38 = vmax.f32 %v1023_v54, %v6577_v0  ;;  %v1213_v40 = vmax.f32 %v1116_v29, %v6577_v0  ;;  %v1030_v57 = vmax.f32 %v6597_v56, %v6585_v25  ;;  %1359 = vst.msk [vmem:[#allocation3 + $0x70] sm:$0xf] %vm818_vm2, %v1311_v36  ;;  %v5842_v51 = vpop.eup %5841  ;;  %5847 = vpow2.f32 %v6487_v45  ;;  %v6632_v54 = vld [vmem:[#allocation2 + $0xc8] sm:$0xff] }
 0x12b   : > { %8574 = vst [vmem:[#allocation23_spill] sm:$0xff] %v6595_v32  ;;  %893 = vst.msk [vmem:[#allocation2 + $0xe2] sm:$0xff] %vm815_vm3, %v6592_v52  ;;  %v6620_v30 = vmax.f32 %v1027_v31, %v1075_v41  ;;  %v1217_v55 = vmax.f32 %v6581_v26, %v6589_v60  ;;  %v1309_v1 = vmax.f32 %v1212_v22, %v6603_v15  ;;  %v5844_v29 = vpop.eup %5843  ;;  %5849 = vpow2.f32 %v6490_v37 }
 0x12c   : > { %892 = vst.msk [vmem:[#allocation2 + $0xda] sm:$0xff] %vm815_vm3, %v6595_v32  ;;  %895 = vst.msk [vmem:[#allocation2 + $0xfa] sm:$0xff] %vm815_vm3, %v800_v13  ;;  %v1028_v47 = vmax.f32 %v6551_v63, %v6603_v15  ;;  %v5067_v24 = vmul.f32 -1.442695, %v6555_v44  ;;  %v705_v62 = vadd.f32 1.0, %v5844_v29  ;;  %5851 = vpow2.f32 %v6497_v23 }
 0x12d   : > { %1357 = vst.msk [vmem:[#allocation3 + $0x60] sm:$0xff] %vm815_vm3, %v1309_v1  ;;  %v5070_v48 = vmul.f32 -1.442695, %v6559_v16  ;;  %v6639_v45 = vadd.f32 %v6228_v35, %v6518_v6  ;;  %5853 = vpow2.f32 %v6500_v12  ;;  %v5069_v63 = vmul.f32 -1.442695, %v6562_v8 }
 0x12e   : > { %v799_v37 = vmul.f32 %v5842_v51, %v6322_v59  ;;  %v8575_v31 = vmax.f32 %v6506_v20, %v6479_v14  ;;  %5855 = vrcp.f32 %v705_v62  ;;  %v6650_v23 = vadd.f32 %v6564_v9, %v6228_v35 }
 0x12f   : > { %v6653_v49 = vadd.f32 %v6228_v35, %v582_v28  ;;  %v1307_v6 = vmax.f32 %v1210_v21, %v6577_v0  ;;  %5857 = vpow2.f32 %v5068_v42  ;;  %v5072_v12 = vmul.f32 -1.442695, %v6570_v43  ;;  %v5176_v35 = vld [vmem:[%s8523_s3 + $0x6] sm:$0x3] }
 0x130   : > { %v1304_v26 = vmax.f32 %v8575_v31, %v6544_v17  ;;  %894 = vst.msk [vmem:[#allocation2 + $0xf2] sm:$0xff] %vm815_vm3, %v799_v37  ;;  %v1310_v59 = vmax.f32 %v1213_v40, %v6632_v54  ;;  %5538 = vmatprep.mubr.msk.f32.mxu1 %vm815_vm3, %v799_v37  ;;  %v1298_v20 = vmax.f32 %v6436_v39, %v6458_v27  ;;  %v6666_v17 = vld [vmem:[#allocation2 + $0xd0] sm:$0xf]  ;;  %5859 = vpow2.f32 %v5067_v24 }
 0x131   : > { %v1029_v9 = vmax.f32 %v6577_v0, %v6632_v54  ;;  %v6673_v41 = vmul.f32 -1.442695, %v6639_v45  ;;  %1355 = vst.msk [vmem:[#allocation3 + $0x50] sm:$0xff] %vm815_vm3, %v1307_v6  ;;  %5539 = vmatmul.mubr.msk.f32.vlgmr.msra.gmra.mrb[0].mxu1 %vm815_vm3, %v800_v13  ;;  %v8576_v39 = vmax.f32 %v6428_v61, %v6458_v27  ;;  %v6682_v36 = vmax.f32 %v1025_v58, %v6603_v15  ;;  %v5846_v61 = vpop.eup %5845 }
 0x132   : > { %1352 = vst.msk [vmem:[#allocation3 + $0x38] sm:$0xff] %vm815_vm3, %v1304_v26  ;;  %v6670_v28 = vld [vmem:[#allocation2 + $0xe8] sm:$0xf]  ;;  %v6685_v0 = vmax.f32 %v1026_v2, %v6632_v54  ;;  %v1215_v22 = vmax.f32 %v6607_v33, %v6603_v15  ;;  %5861 = vpow2.f32 %v5070_v48  ;;  %1358 = vst.msk [vmem:[#allocation3 + $0x68] sm:$0xff] %vm815_vm3, %v1310_v59  ;;  %5563 = vmatpush3.msk.msra.mxu1 %vm3380_vm4, %v6523_v4  ;;  %v6700_v2 = vmul.f32 -1.442695, %v6650_v23 }
 0x133   : > { %v1078_v21 = vld [vmem:[#allocation2 + $0xe8] sm:$0xf]  ;;  %v1301_v60 = vmax.f32 %v8576_v39, %v6479_v14  ;;  %v6689_v1 = vld [vmem:[#allocation2 + $0xd8] sm:$0xff]  ;;  %1346 = vst.msk [vmem:[#allocation3 + $0x8] sm:$0xff] %vm815_vm3, %v1298_v20  ;;  %v1216_v27 = vmax.f32 %v6610_v38, %v6632_v54  ;;  %v6697_v58 = vld [vmem:[#allocation2 + $0xe0] sm:$0xff]  ;;  %5612 = vmatprep.subr.msk.mxu1 %vm3380_vm4, %v5176_v35  ;;  %v1033_v4 = vmax.f32 %v6666_v17, %v6670_v28  ;;  %5863 = vpow2.f32 %v5069_v63 }
 0x134   : > { %v1172_v40 = vld [vmem:[#allocation2 + $0xe8] sm:$0xf]  ;;  %v6703_v13 = vmul.f32 -1.442695, %v6653_v49  ;;  %v6712_v33 = vmax.f32 %v1030_v57, %v1078_v21  ;;  %v1269_v29 = vld [vmem:[#allocation2 + $0x100] sm:$0xf]  ;;  %v5848_v42 = vpop.eup %5847  ;;  %v1032_v24 = vmax.f32 %v6632_v54, %v6697_v58  ;;  %v6721_v62 = vmax.f32 %v1028_v47, %v6689_v1 }
 0x135   : > { %v1266_v51 = vld [vmem:[#allocation2 + $0xe8] sm:$0xf]  ;;  %1349 = vst.msk [vmem:[#allocation3 + $0x20] sm:$0xff] %vm815_vm3, %v1301_v60  ;;  %v1220_v38 = vmax.f32 %v6620_v30, %v1172_v40  ;;  %v6724_v48 = vmax.f32 %v1029_v9, %v6697_v58  ;;  %v1312_v25 = vmax.f32 %v1215_v22, %v6689_v1  ;;  %v6727_v56 = vld [vmem:[#allocation2 + $0x100] sm:$0xf]  ;;  %v5850_v57 = vpop.eup %5849  ;;  %v802_v26 = vmul.f32 %v5846_v61, %v6345_v18 }
 0x136   : > { %v1314_v14 = vmax.f32 %v1217_v55, %v1266_v51  ;;  %v1031_v55 = vmax.f32 %v6603_v15, %v6689_v1  ;;  %v1081_v30 = vld [vmem:[#allocation2 + $0x100] sm:$0xf]  ;;  %v708_v6 = vadd.f32 1.0, %v5848_v42  ;;  %v5852_v59 = vpop.eup %5851  ;;  %v6732_v20 = vld [vmem:[#allocation2 + $0xe8] sm:$0xf]  ;;  %v1218_v47 = vmax.f32 %v6682_v36, %v6689_v1 }
 0x137   : > { %v6729_v37 = vld [vmem:[#allocation2 + $0x100] sm:$0xf]  ;;  %v1317_v31 = vmax.f32 %v1220_v38, %v1269_v29  ;;  %1360 = vst.msk [vmem:[#allocation3 + $0x78] sm:$0xff] %vm815_vm3, %v1312_v25  ;;  %v707_v35 = vadd.f32 1.0, %v5850_v57  ;;  %5865 = vpow2.f32 %v5072_v12  ;;  %v6737_v17 = vld [vmem:[#allocation2 + $0xf0] sm:$0xff]  ;;  %v6739_v9 = vld [vmem:[#allocation2 + $0xf8] sm:$0xff]  ;;  %v1313_v28 = vmax.f32 %v1216_v27, %v6697_v58  ;;  %v5854_v21 = vpop.eup %5853 }
 0x138   : > { %1362 = vst.msk [vmem:[#allocation3 + $0x88] sm:$0xf] %vm818_vm2, %v1314_v14  ;;  %v1219_v18 = vmax.f32 %v6685_v0, %v6697_v58  ;;  %v1036_v63 = vmax.f32 %v6732_v20, %v6727_v56  ;;  %5867 = vrcp.f32 %v708_v6  ;;  %v710_v39 = vadd.f32 1.0, %v5852_v59  ;;  %v6748_v12 = vld [vmem:[#allocation3 + $0x30] sm:$0xff]  ;;  %v6750_v60 = vld [vmem:[#allocation3 + $0x48] sm:$0xff]  ;;  %v5856_v36 = vpop.eup %5855 }
 0x139   : > { %1365 = vst.msk [vmem:[#allocation3 + $0xa0] sm:$0xf] %vm818_vm2, %v1317_v31  ;;  %v6752_v22 = vmax.f32 %v1033_v4, %v1081_v30  ;;  %v1223_v40 = vmax.f32 %v6712_v33, %v6729_v37  ;;  %5869 = vrcp.f32 %v707_v35  ;;  %v709_v0 = vadd.f32 1.0, %v5854_v21  ;;  %v1398_v51 = vld [vmem:[#allocation3 + $0x38] sm:$0xff]  ;;  %v5858_v14 = vpop.eup %5857  ;;  %v1400_v42 = vld [vmem:[#allocation3 + $0x50] sm:$0xff]  ;;  %v1401_v35 = vld [vmem:[#allocation3 + $0x60] sm:$0xff] }
 0x13a   : > { %897 = vst.msk [vmem:[#allocation2 + $0x112] sm:$0xff] %vm815_vm3, %v802_v26  ;;  %1361 = vst.msk [vmem:[#allocation3 + $0x80] sm:$0xff] %vm815_vm3, %v1313_v28  ;;  %v1429_v61 = vld [vmem:[#allocation3 + $0x31] sm:$0xff]  ;;  %v1430_v27 = vld [vmem:[#allocation3 + $0x39] sm:$0xff]  ;;  %v801_v38 = vmul.f32 %v5856_v36, %v6381_v53  ;;  %5871 = vrcp.f32 %v710_v39  ;;  %v1034_v29 = vmax.f32 %v6689_v1, %v6737_v17  ;;  %v5860_v30 = vpop.eup %5859  ;;  %v712_v31 = vadd.f32 1.0, %v5858_v14 }
 0x13b   : > { %v1431_v25 = vld [vmem:[#allocation3 + $0x49] sm:$0xff]  ;;  %v1432_v57 = vld [vmem:[#allocation3 + $0x51] sm:$0xff]  ;;  %5873 = vrcp.f32 %v709_v0  ;;  %v1315_v6 = vmax.f32 %v1218_v47, %v6737_v17  ;;  %v1316_v59 = vmax.f32 %v1219_v18, %v6739_v9  ;;  %v1433_v28 = vld [vmem:[#allocation3 + $0x61] sm:$0xff]  ;;  %v711_v21 = vadd.f32 1.0, %v5860_v30 }
 0x13c   : > { %v5862_v53 = vpop.eup %5861  ;;  %896 = vst.msk [vmem:[#allocation2 + $0x10a] sm:$0xff] %vm815_vm3, %v801_v38  ;;  %5875 = vpow2.f32 %v6673_v41  ;;  %v6766_v39 = vld [vmem:[#allocation3 + $0x68] sm:$0xff]  ;;  %v1461_v4 = vmax.f32 %v6748_v12, %v1429_v61  ;;  %v1462_v0 = vmax.f32 %v1398_v51, %v1430_v27  ;;  %5541 = vmatprep.mubr.msk.f32.mxu1 %vm815_vm3, %v801_v38  ;;  %v1463_v18 = vmax.f32 %v6750_v60, %v1431_v25  ;;  %v1493_v30 = vld [vmem:[#allocation3 + $0x32] sm:$0xff]  ;;  %v1494_v61 = vld [vmem:[#allocation3 + $0x3a] sm:$0xff] }
 0x13d   : > { %v6768_v36 = vld [vmem:[#allocation3 + $0x69] sm:$0xff]  ;;  %5877 = vrcp.f32 %v712_v31  ;;  %v714_v47 = vadd.f32 1.0, %v5862_v53  ;;  %1363 = vst.msk [vmem:[#allocation3 + $0x90] sm:$0xff] %vm815_vm3, %v1315_v6  ;;  %1364 = vst.msk [vmem:[#allocation3 + $0x98] sm:$0xff] %vm815_vm3, %v1316_v59  ;;  %v1464_v14 = vmax.f32 %v1400_v42, %v1432_v57  ;;  %5542 = vmatmul.mubr.msk.f32.gmra.mrb[2].mxu1 %vm815_vm3, %v802_v26  ;;  %v6780_v41 = vmax.f32 %v1031_v55, %v6737_v17  ;;  %v1496_v27 = vld [vmem:[#allocation3 + $0x52] sm:$0xff]  ;;  %v5864_v25 = vpop.eup %5863 }
 0x13e   : > { %5879 = vrcp.f32 %v711_v21  ;;  %v6786_v12 = vmax.f32 %v1032_v24, %v6739_v9  ;;  %v1465_v51 = vmax.f32 %v1401_v35, %v1433_v28  ;;  %v1495_v60 = vld [vmem:[#allocation3 + $0x4a] sm:$0xff]  ;;  %v6788_v38 = vld [vmem:[#allocation2 + $0x100] sm:$0xf]  ;;  %v1221_v15 = vmax.f32 %v6721_v62, %v6737_v17  ;;  %v6801_v6 = vld [vmem:[#allocation3 + $0x78] sm:$0xff] }
 0x13f   : > { %5881 = vrcp.f32 %v714_v47  ;;  %v1222_v55 = vmax.f32 %v6724_v48, %v6739_v9  ;;  %v1466_v54 = vmax.f32 %v6766_v39, %v6768_v36  ;;  %v1497_v24 = vld [vmem:[#allocation3 + $0x62] sm:$0xff]  ;;  %v6803_v59 = vmax.f32 %v1461_v4, %v1493_v30  ;;  %v6830_v47 = vld [vmem:[#allocation3 + $0x33] sm:$0xff] }
 0x140   : > { %5883 = vpow2.f32 %v6700_v2  ;;  %v6805_v35 = vmax.f32 %v1462_v0, %v1494_v61  ;;  %v6807_v62 = vmax.f32 %v1463_v18, %v1495_v60  ;;  %v713_v53 = vadd.f32 1.0, %v5864_v25 }
 0x141   : > { %v6790_v26 = vld [vmem:[#allocation2 + $0x118] sm:$0xf]  ;;  %v5866_v28 = vpop.eup %5865  ;;  %5885 = vpow2.f32 %v6703_v13  ;;  %v6813_v21 = vld [vmem:[#allocation3 + $0x80] sm:$0xff]  ;;  %v6819_v4 = vmax.f32 %v1464_v14, %v1496_v27  ;;  %v6828_v13 = vmax.f32 %v1465_v51, %v1497_v24 }
 0x142   : > { %v1084_v42 = vld [vmem:[#allocation2 + $0x118] sm:$0xf]  ;;  %v6817_v2 = vld [vmem:[#allocation3 + $0x81] sm:$0xff]  ;;  %v5868_v36 = vpop.eup %5867  ;;  %v1039_v0 = vmax.f32 %v6788_v38, %v6790_v26  ;;  %v716_v37 = vadd.f32 1.0, %v5866_v28  ;;  %5887 = vrcp.f32 %v713_v53 }
 0x143   : > { %v6798_v57 = vld [vmem:[#allocation2 + $0x118] sm:$0xf]  ;;  %v6826_v33 = vmax.f32 %v1036_v63, %v1084_v42  ;;  %v5870_v18 = vpop.eup %5869  ;;  %v6835_v30 = vld [vmem:[#allocation2 + $0x108] sm:$0xff]  ;;  %v6837_v61 = vld [vmem:[#allocation2 + $0x110] sm:$0xff]  ;;  %v804_v56 = vmul.f32 %v5868_v36, %v6404_v3  ;;  %v1468_v25 = vmax.f32 %v6813_v21, %v6817_v2 }
 0x144   : > { %v1272_v31 = vld [vmem:[#allocation2 + $0x118] sm:$0xf]  ;;  %v1226_v14 = vmax.f32 %v6752_v22, %v6798_v57  ;;  %v5872_v51 = vpop.eup %5871  ;;  %v803_v60 = vmul.f32 %v5870_v18, %v6407_v7  ;;  %5889 = vrcp.f32 %v716_v37  ;;  %v1405_v27 = vld [vmem:[#allocation3 + $0x90] sm:$0xff]  ;;  %v1589_v7 = vmax.f32 %v6803_v59, %v6830_v47 }
 0x145   : > { %v1320_v48 = vmax.f32 %v1223_v40, %v1272_v31  ;;  %v6815_v39 = vld [vmem:[#allocation3 + $0x79] sm:$0xff]  ;;  %v1498_v40 = vld [vmem:[#allocation3 + $0x6a] sm:$0xff]  ;;  %v5874_v28 = vpop.eup %5873  ;;  %899 = vst.msk [vmem:[#allocation2 + $0x12a] sm:$0xff] %vm815_vm3, %v804_v56  ;;  %v806_v3 = vmul.f32 %v5872_v51, %v6441_v46  ;;  %v1318_v46 = vmax.f32 %v1221_v15, %v6835_v30  ;;  %v1319_v2 = vmax.f32 %v1222_v55, %v6837_v61 }
 0x146   : > { %v1467_v20 = vmax.f32 %v6801_v6, %v6815_v39  ;;  %v6842_v63 = vld [vmem:[#allocation3 + $0x3b] sm:$0xff]  ;;  %v1437_v24 = vld [vmem:[#allocation3 + $0x91] sm:$0xff]  ;;  %v6847_v31 = vmax.f32 %v1466_v54, %v1498_v40  ;;  %v1037_v6 = vmax.f32 %v6737_v17, %v6835_v30  ;;  %v5876_v39 = vpop.eup %5875  ;;  %898 = vst.msk [vmem:[#allocation2 + $0x122] sm:$0xff] %vm815_vm3, %v803_v60  ;;  %v805_v54 = vmul.f32 %v5874_v28, %v6444_v5 }
 0x147   : > { %1368 = vst.msk [vmem:[#allocation3 + $0xb8] sm:$0xf] %vm818_vm2, %v1320_v48  ;;  %v1406_v42 = vld [vmem:[#allocation3 + $0x98] sm:$0xff]  ;;  %v1590_v53 = vmax.f32 %v6805_v35, %v6842_v63  ;;  %5544 = vmatprep.mubr.msk.f32.mxu1 %vm815_vm3, %v803_v60  ;;  %v5878_v36 = vpop.eup %5877  ;;  %v715_v59 = vadd.f32 1.0, %v5876_v39  ;;  %v6869_v35 = vmax.f32 %v1034_v29, %v6835_v30  ;;  %v1469_v5 = vmax.f32 %v1405_v27, %v1437_v24  ;;  %v1559_v40 = vld [vmem:[#allocation3 + $0x4b] sm:$0xff]  ;;  %v1500_v29 = vld [vmem:[#allocation3 + $0x82] sm:$0xff] }
 0x148   : > { %v1438_v48 = vld [vmem:[#allocation3 + $0x99] sm:$0xff]  ;;  %901 = vst.msk [vmem:[#allocation2 + $0x142] sm:$0xff] %vm815_vm3, %v806_v3  ;;  %5545 = vmatmul.mubr.msk.f32.gmra.mrb[4].mxu1 %vm815_vm3, %v804_v56  ;;  %v5880_v15 = vpop.eup %5879  ;;  %900 = vst.msk [vmem:[#allocation2 + $0x13a] sm:$0xff] %vm815_vm3, %v805_v54  ;;  %v6874_v55 = vmul.f32 %v5878_v36, %v6548_v34  ;;  %v8577_v18 = vmax.f32 %v6697_v58, %v6739_v9  ;;  %v1591_v56 = vmax.f32 %v6807_v62, %v1559_v40  ;;  %v6892_v24 = vld [vmem:[#allocation3 + $0x63] sm:$0xff] }
 0x149   : > { %v1470_v37 = vmax.f32 %v1406_v42, %v1438_v48  ;;  %v1560_v47 = vld [vmem:[#allocation3 + $0x53] sm:$0xff]  ;;  %1366 = vst.msk [vmem:[#allocation3 + $0xa8] sm:$0xff] %vm815_vm3, %v1318_v46  ;;  %1367 = vst.msk [vmem:[#allocation3 + $0xb0] sm:$0xff] %vm815_vm3, %v1319_v2  ;;  %5547 = vmatprep.mubr.msk.f32.mxu1 %vm815_vm3, %v805_v54  ;;  %v5882_v34 = vpop.eup %5881  ;;  %v807_v60 = vmul.f32 %v5880_v15, %v6555_v44  ;;  %5891 = vrcp.f32 %v715_v59  ;;  %v6894_v28 = vld [vmem:[#allocation3 + $0x6b] sm:$0xff] }
 0x14a   : > { %v6880_v63 = vmax.f32 %v8577_v18, %v6837_v61  ;;  %v1499_v1 = vld [vmem:[#allocation3 + $0x7a] sm:$0xff]  ;;  %v1592_v51 = vmax.f32 %v6819_v4, %v1560_v47  ;;  %v1501_v27 = vld [vmem:[#allocation3 + $0x92] sm:$0xff]  ;;  %v6890_v42 = vmax.f32 %v1468_v25, %v1500_v29  ;;  %v5884_v48 = vpop.eup %5883  ;;  %903 = vst.msk [vmem:[#allocation2 + $0x15a] sm:$0xff] %vm815_vm3, %v6874_v55  ;;  %v6899_v62 = vmul.f32 %v5882_v34, %v6559_v16  ;;  %v6909_v54 = vld [vmem:[#allocation3 + $0x83] sm:$0xff] }
 0x14b   : > { %v6888_v58 = vmax.f32 %v1467_v20, %v1499_v1  ;;  %v1502_v20 = vld [vmem:[#allocation3 + $0x9a] sm:$0xff]  ;;  %v6905_v25 = vmax.f32 %v1469_v5, %v1501_v27  ;;  %v5886_v2 = vpop.eup %5885  ;;  %902 = vst.msk [vmem:[#allocation2 + $0x152] sm:$0xff] %vm815_vm3, %v807_v60  ;;  %v718_v36 = vadd.f32 1.0, %v5884_v48  ;;  %v1623_v5 = vld [vmem:[#allocation3 + $0x4c] sm:$0xff] }
 0x14c   : > { %v6907_v39 = vld [vmem:[#allocation3 + $0x7b] sm:$0xff]  ;;  %v6912_v16 = vmax.f32 %v1470_v37, %v1502_v20  ;;  %5548 = vmatmul.mubr.msk.f32.gmra.mrb[6].mxu1 %vm815_vm3, %v806_v3  ;;  %v994_v1 = vld [vmem:[#allocation2 + $0x130] sm:$0xf]  ;;  %905 = vst.msk [vmem:[#allocation2 + $0x172] sm:$0xff] %vm815_vm3, %v6899_v62  ;;  %v6927_v48 = vmax.f32 %v1591_v56, %v1623_v5  ;;  %v5888_v40 = vpop.eup %5887  ;;  %v717_v44 = vadd.f32 1.0, %v5886_v2 }
 0x14d   : > { %v1621_v46 = vld [vmem:[#allocation3 + $0x34] sm:$0xff]  ;;  %v1622_v47 = vld [vmem:[#allocation3 + $0x3c] sm:$0xff]  ;;  %v1087_v29 = vld [vmem:[#allocation2 + $0x130] sm:$0xf]  ;;  %5550 = vmatprep.mubr.msk.f32.mxu1 %vm815_vm3, %v807_v60  ;;  %5893 = vrcp.f32 %v718_v36 }
 0x14e   : > { %v1624_v15 = vld [vmem:[#allocation3 + $0x54] sm:$0xff]  ;;  %v6923_v37 = vmax.f32 %v1589_v7, %v1621_v46  ;;  %v6925_v27 = vmax.f32 %v1590_v53, %v1622_v47  ;;  %v1181_v3 = vld [vmem:[#allocation2 + $0x130] sm:$0xf]  ;;  %v6932_v4 = vld [vmem:[#allocation2 + $0x120] sm:$0xff]  ;;  %v5890_v53 = vpop.eup %5889  ;;  %v809_v47 = vmul.f32 %v5888_v40, %v6562_v8  ;;  %1687 = vst.msk [vmem:[#allocation2 + $0x7a] sm:$0xff] %vm815_vm3, %v6927_v48  ;;  %v1135_v8 = vmax.f32 %v1039_v0, %v1087_v29 }
 0x14f   : > { %v945_v18 = vld [vmem:[#allocation2 + $0x118] sm:$0xf]  ;;  %v6929_v20 = vmax.f32 %v1592_v51, %v1624_v15  ;;  %v1275_v59 = vld [vmem:[#allocation2 + $0x130] sm:$0xf]  ;;  %v1229_v56 = vmax.f32 %v6826_v33, %v1181_v3  ;;  %v6942_v60 = vld [vmem:[#allocation2 + $0x128] sm:$0xff]  ;;  %5895 = vrcp.f32 %v717_v44  ;;  %v1040_v5 = vmax.f32 %v6835_v30, %v6932_v4 }
 0x150   : > { %v6921_v34 = vld [vmem:[#allocation3 + $0x93] sm:$0xff]  ;;  %v1323_v51 = vmax.f32 %v1226_v14, %v1275_v59  ;;  %v997_v46 = vld [vmem:[#allocation2 + $0x148] sm:$0xf]  ;;  %v6945_v36 = vld [vmem:[#allocation3 + $0x9b] sm:$0xff]  ;;  %1685 = vst.msk [vmem:[#allocation2 + $0x62] sm:$0xff] %vm815_vm3, %v6923_v37  ;;  %v1042_v22 = vmax.f32 %v945_v18, %v994_v1  ;;  %v6961_v59 = vmul.f32 %v5890_v53, %v6570_v43  ;;  %5551 = vmatmul.mubr.msk.f32.gmra.mrb[8].mxu1 %vm815_vm3, %v6874_v55 }
 0x151   : > { %1686 = vst.msk [vmem:[#allocation2 + $0x6a] sm:$0xff] %vm815_vm3, %v6925_v27  ;;  %1688 = vst.msk [vmem:[#allocation2 + $0x82] sm:$0xff] %vm815_vm3, %v6929_v20  ;;  %v1090_v57 = vld [vmem:[#allocation2 + $0x148] sm:$0xf]  ;;  %v948_v40 = vld [vmem:[#allocation2 + $0x130] sm:$0xf]  ;;  %v1041_v38 = vmax.f32 %v6837_v61, %v6942_v60  ;;  %5553 = vmatprep.mubr.msk.f32.mxu1 %vm815_vm3, %v809_v47  ;;  %v6984_v53 = vmax.f32 %v1037_v6, %v6932_v4 }
 0x152   : > { %v1184_v33 = vld [vmem:[#allocation2 + $0x148] sm:$0xf]  ;;  %1371 = vst.msk [vmem:[#allocation3 + $0xd0] sm:$0xf] %vm818_vm2, %v1323_v51  ;;  %v6970_v0 = vld [vmem:[#allocation2 + $0x138] sm:$0xff]  ;;  %v6972_v15 = vld [vmem:[#allocation2 + $0x140] sm:$0xff]  ;;  %v1045_v44 = vmax.f32 %v948_v40, %v997_v46  ;;  %v1138_v18 = vmax.f32 %v1042_v22, %v1090_v57 }
 0x153   : > { %v1278_v14 = vld [vmem:[#allocation2 + $0x148] sm:$0xf]  ;;  %904 = vst.msk [vmem:[#allocation2 + $0x16a] sm:$0xff] %vm815_vm3, %v809_v47  ;;  %v1232_v1 = vmax.f32 %v1135_v8, %v1184_v33  ;;  %v1000_v29 = vld [vmem:[#allocation2 + $0x160] sm:$0xf]  ;;  %907 = vst.msk [vmem:[#allocation2 + $0x18a] sm:$0xff] %vm815_vm3, %v6961_v59  ;;  %v1044_v51 = vmax.f32 %v6942_v60, %v6972_v15  ;;  %v1136_v46 = vmax.f32 %v1040_v5, %v6970_v0  ;;  %v5892_v17 = vpop.eup %5891 }
 0x154   : > { %v1326_v26 = vmax.f32 %v1229_v56, %v1278_v14  ;;  %v951_v55 = vld [vmem:[#allocation2 + $0x148] sm:$0xf]  ;;  %v1093_v3 = vld [vmem:[#allocation2 + $0x160] sm:$0xf]  ;;  %v1043_v56 = vmax.f32 %v6932_v4, %v6970_v0  ;;  %v6993_v47 = vmax.f32 %v1041_v38, %v6972_v15  ;;  %v6995_v57 = vld [vmem:[#allocation2 + $0x150] sm:$0xff]  ;;  %5554 = vmatmul.mubr.msk.f32.gmra.mrb[10].mxu1 %vm815_vm3, %v6899_v62 }
 0x155   : > { %v1187_v22 = vld [vmem:[#allocation2 + $0x160] sm:$0xf]  ;;  %v1048_v6 = vmax.f32 %v951_v55, %v1000_v29  ;;  %v1141_v33 = vmax.f32 %v1045_v44, %v1093_v3  ;;  %v6999_v43 = vld [vmem:[#allocation2 + $0x178] sm:$0xf]  ;;  %v1046_v5 = vmax.f32 %v6970_v0, %v6995_v57  ;;  %v8578_v55 = vmax.f32 %v6739_v9, %v6837_v61 }
 0x156   : > { %1374 = vst.msk [vmem:[#allocation3 + $0xe8] sm:$0xf] %vm818_vm2, %v1326_v26  ;;  %v1281_v8 = vld [vmem:[#allocation2 + $0x160] sm:$0xf]  ;;  %v1235_v14 = vmax.f32 %v1138_v18, %v1187_v22  ;;  %v6997_v26 = vld [vmem:[#allocation2 + $0x158] sm:$0xff]  ;;  %v7006_v38 = vmax.f32 %v1043_v56, %v6995_v57  ;;  %v1227_v18 = vmax.f32 %v6869_v35, %v6932_v4  ;;  %v1233_v3 = vmax.f32 %v1136_v46, %v6995_v57  ;;  %v1407_v22 = vld [vmem:[#allocation3 + $0xa8] sm:$0xff] }
 0x157   : > { %v1329_v40 = vmax.f32 %v1232_v1, %v1281_v8  ;;  %v1096_v2 = vld [vmem:[#allocation2 + $0x178] sm:$0xf]  ;;  %v1134_v44 = vmax.f32 %v8578_v55, %v6942_v60  ;;  %v7014_v1 = vld [vmem:[#allocation2 + $0x160] sm:$0xf]  ;;  %v1047_v62 = vmax.f32 %v6972_v15, %v6997_v26  ;;  %v7020_v29 = vmax.f32 %v1044_v51, %v6997_v26  ;;  %v1439_v8 = vld [vmem:[#allocation3 + $0xa9] sm:$0xff]  ;;  %v5894_v52 = vpop.eup %5893 }
 0x158   : > { %v1190_v7 = vld [vmem:[#allocation2 + $0x178] sm:$0xf]  ;;  %v1234_v9 = vmax.f32 %v6993_v47, %v6997_v26  ;;  %v1051_v35 = vmax.f32 %v7014_v1, %v6999_v43  ;;  %v7027_v55 = vmax.f32 %v1048_v6, %v1096_v2  ;;  %v8580_v2 = vmax.f32 %v6786_v12, %v6837_v61 }
 0x159   : > { %v1284_v21 = vld [vmem:[#allocation2 + $0x178] sm:$0xf]  ;;  %1377 = vst.msk [vmem:[#allocation3 + $0x100] sm:$0xf] %vm818_vm2, %v1329_v40  ;;  %v811_v40 = vmul.f32 %v5892_v17, %v6639_v45  ;;  %v1238_v32 = vmax.f32 %v1141_v33, %v1190_v7  ;;  %v1324_v45 = vmax.f32 %v1227_v18, %v6970_v0  ;;  %v1228_v7 = vmax.f32 %v6880_v63, %v6942_v60 }
 0x15a   : > { %v1332_v56 = vmax.f32 %v1235_v14, %v1284_v21  ;;  %v7031_v51 = vld [vmem:[#allocation2 + $0x168] sm:$0xff]  ;;  %v7033_v46 = vld [vmem:[#allocation2 + $0x170] sm:$0xff]  ;;  %v8579_v21 = vmax.f32 %v6780_v41, %v6835_v30  ;;  %v1322_v6 = vmax.f32 %v8580_v2, %v6942_v60  ;;  %v1230_v17 = vmax.f32 %v6984_v53, %v6970_v0  ;;  %v5896_v41 = vpop.eup %5895 }
 0x15b   : > { %906 = vst.msk [vmem:[#allocation2 + $0x182] sm:$0xff] %vm815_vm3, %v811_v40  ;;  %v1231_v33 = vmax.f32 %v1134_v44, %v6972_v15  ;;  %v1471_v14 = vmax.f32 %v1407_v22, %v1439_v8  ;;  %5556 = vmatprep.mubr.msk.f32.mxu1 %vm815_vm3, %v811_v40  ;;  %v1049_v12 = vmax.f32 %v6995_v57, %v7031_v51  ;;  %1372 = vst.msk [vmem:[#allocation3 + $0xd8] sm:$0xff] %vm815_vm3, %v1324_v45  ;;  %v1408_v60 = vld [vmem:[#allocation3 + $0xb0] sm:$0xff]  ;;  %v1625_v53 = vld [vmem:[#allocation3 + $0x64] sm:$0xff] }
 0x15c   : > { %1380 = vst.msk [vmem:[#allocation3 + $0x118] sm:$0xf] %vm818_vm2, %v1332_v56  ;;  %v1321_v47 = vmax.f32 %v8579_v21, %v6932_v4  ;;  %v1050_v30 = vmax.f32 %v6997_v26, %v7033_v46  ;;  %v7056_v61 = vmax.f32 %v1046_v5, %v7031_v51  ;;  %v1330_v63 = vmax.f32 %v1233_v3, %v7031_v51  ;;  %v1287_v4 = vld [vmem:[#allocation2 + $0x190] sm:$0xf]  ;;  %v1627_v22 = vld [vmem:[#allocation3 + $0x7c] sm:$0xff]  ;;  %v1628_v8 = vld [vmem:[#allocation3 + $0x84] sm:$0xff] }
 0x15d   : > { %1370 = vst.msk [vmem:[#allocation3 + $0xc8] sm:$0xff] %vm815_vm3, %v1322_v6  ;;  %v1440_v0 = vld [vmem:[#allocation3 + $0xb1] sm:$0xff]  ;;  %5557 = vmatmul.mubr.msk.f32.gmra.mrb[12].mxu1 %vm815_vm3, %v6961_v59  ;;  %v7065_v44 = vmax.f32 %v1047_v62, %v7033_v46  ;;  %v1236_v5 = vmax.f32 %v7006_v38, %v7031_v51  ;;  %v1335_v18 = vmax.f32 %v1238_v32, %v1287_v4  ;;  %v7070_v21 = vld [vmem:[#allocation3] sm:$0xff] }
 0x15e   : > { %1369 = vst.msk [vmem:[#allocation3 + $0xc0] sm:$0xff] %vm815_vm3, %v1321_v47  ;;  %v814_v3 = vmul.f32 %v5894_v52, %v6650_v23  ;;  %v1626_v56 = vld [vmem:[#allocation3 + $0x6c] sm:$0xff]  ;;  %v1629_v40 = vld [vmem:[#allocation3 + $0x94] sm:$0xff]  ;;  %1378 = vst.msk [vmem:[#allocation3 + $0x108] sm:$0xff] %vm815_vm3, %v1330_v63  ;;  %v813_v59 = vmul.f32 %v5896_v41, %v6653_v49  ;;  %v1325_v62 = vmax.f32 %v1228_v7, %v6972_v15 }
 0x15f   : > { %v1099_v47 = vld [vmem:[#allocation2 + $0x190] sm:$0xf]  ;;  %v1327_v2 = vmax.f32 %v1230_v17, %v6995_v57  ;;  %v1328_v6 = vmax.f32 %v1231_v33, %v6997_v26  ;;  %v1630_v45 = vld [vmem:[#allocation3 + $0x9c] sm:$0xff]  ;;  %1383 = vst.msk [vmem:[#allocation3 + $0x130] sm:$0xf] %vm818_vm2, %v1335_v18  ;;  %v1331_v49 = vmax.f32 %v1234_v9, %v7033_v46  ;;  %v1472_v41 = vmax.f32 %v1408_v60, %v1440_v0  ;;  %v7091_v33 = vld [vmem:[#allocation3 + $0x8] sm:$0xff] }
 0x160   : > { %v1503_v32 = vld [vmem:[#allocation3 + $0xaa] sm:$0xff]  ;;  %v7077_v52 = vld [vmem:[#allocation3 + $0x1] sm:$0xff]  ;;  %v7079_v23 = vld [vmem:[#allocation3 + $0x18] sm:$0xff]  ;;  %909 = vst.msk [vmem:[#allocation2 + $0x1a2] sm:$0xff] %vm815_vm3, %v814_v3  ;;  %v8581_v7 = vmax.f32 %v6828_v13, %v6892_v24  ;;  %v8583_v13 = vmax.f32 %v6888_v58, %v6907_v39  ;;  %v8584_v0 = vmax.f32 %v6890_v42, %v6909_v54  ;;  %v8585_v18 = vmax.f32 %v6905_v25, %v6921_v34 }
 0x161   : > { %v7081_v4 = vld [vmem:[#allocation2 + $0x190] sm:$0xf]  ;;  %v1535_v15 = vmax.f32 %v1471_v14, %v1503_v32  ;;  %908 = vst.msk [vmem:[#allocation2 + $0x19a] sm:$0xff] %vm815_vm3, %v813_v59  ;;  %1373 = vst.msk [vmem:[#allocation3 + $0xe0] sm:$0xff] %vm815_vm3, %v1325_v62  ;;  %v8582_v14 = vmax.f32 %v6847_v31, %v6894_v28  ;;  %v7121_v31 = vld [vmem:[#allocation3 + $0x19] sm:$0xff]  ;;  %5559 = vmatprep.mubr.msk.f32.mxu1 %vm815_vm3, %v813_v59  ;;  %v1237_v58 = vmax.f32 %v7020_v29, %v7033_v46 }
 0x162   : > { %v7089_v17 = vmax.f32 %v8581_v7, %v1625_v53  ;;  %v7093_v63 = vld [vmem:[#allocation3 + $0x9] sm:$0xff]  ;;  %1375 = vst.msk [vmem:[#allocation3 + $0xf0] sm:$0xff] %vm815_vm3, %v1327_v2  ;;  %1376 = vst.msk [vmem:[#allocation3 + $0xf8] sm:$0xff] %vm815_vm3, %v1328_v6  ;;  %v7107_v24 = vmax.f32 %v8583_v13, %v1627_v22  ;;  %v7112_v53 = vmax.f32 %v8584_v0, %v1628_v8  ;;  %v7119_v2 = vld [vmem:[#allocation2 + $0x78] sm:$0xff]  ;;  %5560 = vmatmul.mubr.msk.f32.gmra.mrb[14].mxu1 %vm815_vm3, %v814_v3 }
 0x163   : > { %v1567_v9 = vld [vmem:[#allocation3 + $0xab] sm:$0xff]  ;;  %v7102_v60 = vmax.f32 %v8582_v14, %v1626_v56  ;;  %v7117_v62 = vmax.f32 %v8585_v18, %v1629_v40  ;;  %v7129_v42 = vmax.f32 %v1051_v35, %v1099_v47  ;;  %1379 = vst.msk [vmem:[#allocation3 + $0x110] sm:$0xff] %vm815_vm3, %v1331_v49  ;;  %v8586_v39 = vmax.f32 %v6912_v16, %v6945_v36  ;;  %v7142_v43 = vld [vmem:[#allocation2 + $0x180] sm:$0xff]  ;;  %v7166_v40 = vld [vmem:[#allocation3 + $0xb3] sm:$0xff] }
 0x164   : > { %v1504_v28 = vld [vmem:[#allocation3 + $0xb2] sm:$0xff]  ;;  %v1599_v25 = vmax.f32 %v1535_v15, %v1567_v9  ;;  %1689 = vst.msk [vmem:[#allocation2 + $0x92] sm:$0xff] %vm815_vm3, %v7089_v17  ;;  %v1241_v34 = vmax.f32 %v7027_v55, %v7081_v4  ;;  %v7144_v1 = vld [vmem:[#allocation2 + $0x188] sm:$0xff]  ;;  %1691 = vst.msk [vmem:[#allocation2 + $0xaa] sm:$0xff] %vm815_vm3, %v7107_v24  ;;  %v1457_v36 = vmax.f32 %v7070_v21, %v7077_v52 }
 0x165   : > { %v7135_v54 = vmax.f32 %v8586_v39, %v1630_v45  ;;  %v7146_v29 = vmax.f32 %v1472_v41, %v1504_v28  ;;  %v1631_v35 = vld [vmem:[#allocation3 + $0xac] sm:$0xff]  ;;  %1690 = vst.msk [vmem:[#allocation2 + $0x9a] sm:$0xff] %vm815_vm3, %v7102_v60  ;;  %1692 = vst.msk [vmem:[#allocation2 + $0xb2] sm:$0xff] %vm815_vm3, %v7112_v53  ;;  %v7156_v16 = vld [vmem:[#allocation2 + $0x60] sm:$0xff]  ;;  %v1458_v55 = vmax.f32 %v7091_v33, %v7093_v63 }
 0x166   : > { %1693 = vst.msk [vmem:[#allocation2 + $0xc2] sm:$0xff] %vm815_vm3, %v7117_v62  ;;  %v1052_v3 = vmax.f32 %v7031_v51, %v7142_v43  ;;  %v1053_v56 = vmax.f32 %v7033_v46, %v7144_v1  ;;  %v1409_v22 = vld [vmem:[#allocation3 + $0xc0] sm:$0xff]  ;;  %v1410_v8 = vld [vmem:[#allocation3 + $0xc8] sm:$0xff]  ;;  %v1821_v47 = vmax.f32 %v7156_v16, %v7119_v2  ;;  %v1459_v6 = vmax.f32 %v7079_v23, %v7121_v31  ;;  %v7197_v26 = vld [vmem:[#allocation3 + $0xd8] sm:$0xff] }
 0x167   : > { %1694 = vst.msk [vmem:[#allocation2 + $0xca] sm:$0xff] %vm815_vm3, %v7135_v54  ;;  %v1489_v21 = vld [vmem:[#allocation3 + $0x2] sm:$0xff]  ;;  %v1490_v59 = vld [vmem:[#allocation3 + $0xa] sm:$0xff]  ;;  %v1145_v45 = vmax.f32 %v1049_v12, %v7142_v43  ;;  %v7184_v52 = vmax.f32 %v1050_v30, %v7144_v1  ;;  %v1333_v4 = vmax.f32 %v1236_v5, %v7142_v43  ;;  %v1334_v23 = vmax.f32 %v1237_v58, %v7144_v1  ;;  %v1491_v38 = vld [vmem:[#allocation3 + $0x1a] sm:$0xff] }
 0x168   : > { %v7174_v32 = vld [vmem:[#allocation3 + $0x20] sm:$0xff]  ;;  %v1442_v15 = vld [vmem:[#allocation3 + $0xc9] sm:$0xff]  ;;  %v1239_v57 = vmax.f32 %v7056_v61, %v7142_v43  ;;  %v7199_v63 = vmax.f32 %v1599_v25, %v1631_v35  ;;  %v1240_v51 = vmax.f32 %v7065_v44, %v7144_v1  ;;  %v1600_v13 = vmax.f32 %v7146_v29, %v7166_v40  ;;  %v1100_v44 = vld [vmem:[#allocation2 + $0x198] sm:$0xff] }
 0x169   : > { %v1293_v49 = vld [vmem:[#allocation2 + $0x1c0] sm:$0xf]  ;;  %v7195_v12 = vld [vmem:[#allocation2 + $0x1b0] sm:$0xff]  ;;  %v1474_v30 = vmax.f32 %v1410_v8, %v1442_v15  ;;  %1381 = vst.msk [vmem:[#allocation3 + $0x120] sm:$0xff] %vm815_vm3, %v1333_v4  ;;  %v1196_v5 = vld [vmem:[#allocation2 + $0x1a8] sm:$0xf]  ;;  %v7209_v0 = vmax.f32 %v1457_v36, %v1489_v21  ;;  %v7211_v18 = vmax.f32 %v1458_v55, %v1490_v59  ;;  %v7218_v39 = vmax.f32 %v1459_v6, %v1491_v38 }
 0x16a   : > { %v1441_v41 = vld [vmem:[#allocation3 + $0xc1] sm:$0xff]  ;;  %1382 = vst.msk [vmem:[#allocation3 + $0x128] sm:$0xff] %vm815_vm3, %v1334_v23  ;;  %v1506_v14 = vld [vmem:[#allocation3 + $0xca] sm:$0xff]  ;;  %v1244_v31 = vmax.f32 %v7129_v42, %v1196_v5  ;;  %1695 = vst.msk [vmem:[#allocation2 + $0xda] sm:$0xff] %vm815_vm3, %v7199_v63  ;;  %v7222_v1 = vmax.f32 %v1052_v3, %v1100_v44  ;;  %v1242_v29 = vmax.f32 %v1145_v45, %v1100_v44 }
 0x16b   : > { %v7191_v7 = vld [vmem:[#allocation3 + $0x21] sm:$0xff]  ;;  %v1473_v46 = vmax.f32 %v1409_v22, %v1441_v41  ;;  %v1413_v35 = vld [vmem:[#allocation3 + $0xf0] sm:$0xff]  ;;  %v1414_v36 = vld [vmem:[#allocation3 + $0xf8] sm:$0xff]  ;;  %v1336_v40 = vmax.f32 %v1239_v57, %v1100_v44 }
 0x16c   : > { %v1505_v33 = vld [vmem:[#allocation3 + $0xc2] sm:$0xff]  ;;  %v1460_v43 = vmax.f32 %v7174_v32, %v7191_v7  ;;  %v1416_v55 = vld [vmem:[#allocation3 + $0x110] sm:$0xff]  ;;  %v1341_v22 = vmax.f32 %v1244_v31, %v1293_v49  ;;  %v1443_v59 = vld [vmem:[#allocation3 + $0xd9] sm:$0xff]  ;;  %v1339_v41 = vmax.f32 %v1242_v29, %v7195_v12 }
 0x16d   : > { %v1290_v9 = vld [vmem:[#allocation2 + $0x1a8] sm:$0xf]  ;;  %v7214_v28 = vld [vmem:[#allocation2 + $0x1a0] sm:$0xff]  ;;  %v7224_v42 = vmax.f32 %v1473_v46, %v1505_v33  ;;  %v1445_v6 = vld [vmem:[#allocation3 + $0xf1] sm:$0xff]  ;;  %1384 = vst.msk [vmem:[#allocation3 + $0x138] sm:$0xff] %vm815_vm3, %v1336_v40 }
 0x16e   : > { %v7205_v61 = vld [vmem:[#allocation3 + $0x108] sm:$0xff]  ;;  %v1338_v58 = vmax.f32 %v1241_v34, %v1290_v9  ;;  %v1412_v25 = vld [vmem:[#allocation3 + $0xe0] sm:$0xff]  ;;  %v7226_v34 = vmax.f32 %v1474_v30, %v1506_v14  ;;  %v7230_v8 = vmax.f32 %v1053_v56, %v7214_v28  ;;  %v1337_v21 = vmax.f32 %v1240_v51, %v7214_v28  ;;  %v1632_v45 = vld [vmem:[#allocation3 + $0xb4] sm:$0xff]  ;;  %1389 = vst.msk [vmem:[#allocation3 + $0x160] sm:$0xf] %vm818_vm2, %v1341_v22 }
 0x16f   : > { %v1444_v3 = vld [vmem:[#allocation3 + $0xe1] sm:$0xff]  ;;  %v1243_v23 = vmax.f32 %v7184_v52, %v7214_v28  ;;  %v1446_v15 = vld [vmem:[#allocation3 + $0xf9] sm:$0xff]  ;;  %v1447_v49 = vld [vmem:[#allocation3 + $0x109] sm:$0xff]  ;;  %v1475_v30 = vmax.f32 %v7197_v26, %v1443_v59  ;;  %v1477_v57 = vmax.f32 %v1413_v35, %v1445_v6  ;;  %v1245_v26 = vmax.f32 %v7222_v1, %v7195_v12  ;;  %1387 = vst.msk [vmem:[#allocation3 + $0x150] sm:$0xff] %vm815_vm3, %v1339_v41 }
 0x170   : > { %1386 = vst.msk [vmem:[#allocation3 + $0x148] sm:$0xf] %vm818_vm2, %v1338_v58  ;;  %v1553_v4 = vld [vmem:[#allocation3 + $0x3] sm:$0xff]  ;;  %v1448_v46 = vld [vmem:[#allocation3 + $0x111] sm:$0xff]  ;;  %v1476_v56 = vmax.f32 %v1412_v25, %v1444_v3  ;;  %v1478_v38 = vmax.f32 %v1414_v36, %v1446_v15  ;;  %v1479_v52 = vmax.f32 %v7205_v61, %v1447_v49  ;;  %v1507_v5 = vld [vmem:[#allocation3 + $0xda] sm:$0xff]  ;;  %v7248_v35 = vmax.f32 %v1600_v13, %v1632_v45 }
 0x171   : > { %v7237_v33 = vld [vmem:[#allocation2 + $0x1b8] sm:$0xff]  ;;  %1385 = vst.msk [vmem:[#allocation3 + $0x140] sm:$0xff] %vm815_vm3, %v1337_v21  ;;  %v1480_v51 = vmax.f32 %v1416_v55, %v1448_v46  ;;  %v1508_v9 = vld [vmem:[#allocation3 + $0xe2] sm:$0xff]  ;;  %v1554_v31 = vld [vmem:[#allocation3 + $0xb] sm:$0xff]  ;;  %v7246_v29 = vmax.f32 %v1475_v30, %v1507_v5  ;;  %v1585_v61 = vmax.f32 %v7209_v0, %v1553_v4 }
 0x172   : > { %v1617_v14 = vld [vmem:[#allocation3 + $0x4] sm:$0xff]  ;;  %v1555_v58 = vld [vmem:[#allocation3 + $0x1b] sm:$0xff]  ;;  %v1509_v44 = vld [vmem:[#allocation3 + $0xf2] sm:$0xff]  ;;  %v7251_v21 = vmax.f32 %v1476_v56, %v1508_v9  ;;  %1696 = vst.msk [vmem:[#allocation2 + $0xe2] sm:$0xff] %vm815_vm3, %v7248_v35  ;;  %v1586_v4 = vmax.f32 %v7211_v18, %v1554_v31  ;;  %v1246_v7 = vmax.f32 %v7230_v8, %v7237_v33 }
 0x173   : > { %v1510_v28 = vld [vmem:[#allocation3 + $0xfa] sm:$0xff]  ;;  %v1511_v25 = vld [vmem:[#allocation3 + $0x10a] sm:$0xff]  ;;  %v1492_v36 = vld [vmem:[#allocation3 + $0x22] sm:$0xff]  ;;  %v7253_v59 = vmax.f32 %v1477_v57, %v1509_v44  ;;  %v1649_v0 = vmax.f32 %v1585_v61, %v1617_v14  ;;  %v1587_v46 = vmax.f32 %v7218_v39, %v1555_v58  ;;  %v1340_v14 = vmax.f32 %v1243_v23, %v7237_v33 }
 0x174   : > { %v1417_v55 = vld [vmem:[#allocation3 + $0x120] sm:$0xff]  ;;  %v1418_v22 = vld [vmem:[#allocation3 + $0x128] sm:$0xff]  ;;  %v7255_v3 = vmax.f32 %v1478_v38, %v1510_v28  ;;  %v7257_v6 = vmax.f32 %v1479_v52, %v1511_v25  ;;  %v1512_v13 = vld [vmem:[#allocation3 + $0x112] sm:$0xff]  ;;  %v1524_v28 = vmax.f32 %v1460_v43, %v1492_v36 }
 0x175   : > { %v1449_v40 = vld [vmem:[#allocation3 + $0x121] sm:$0xff]  ;;  %v1450_v15 = vld [vmem:[#allocation3 + $0x129] sm:$0xff]  ;;  %v7265_v38 = vmax.f32 %v1480_v51, %v1512_v13  ;;  %v7277_v58 = vld [vmem:[#allocation3 + $0xf3] sm:$0xff]  ;;  %1681 = vst.msk [vmem:[#allocation2 + $0x32] sm:$0xff] %vm815_vm3, %v1649_v0  ;;  %5464 = vmatprep.mubr.msk.f32.mxu0 %vm815_vm3, %v1649_v0 }
 0x176   : > { %v7259_v41 = vld [vmem:[#allocation3 + $0xc3] sm:$0xff]  ;;  %v1481_v49 = vmax.f32 %v1417_v55, %v1449_v40  ;;  %v1482_v56 = vmax.f32 %v1418_v22, %v1450_v15  ;;  %v7267_v52 = vld [vmem:[#allocation3 + $0xcb] sm:$0xff]  ;;  %v7269_v5 = vld [vmem:[#allocation3 + $0xdb] sm:$0xff]  ;;  %v1605_v22 = vmax.f32 %v7253_v59, %v7277_v58  ;;  %1388 = vst.msk [vmem:[#allocation3 + $0x158] sm:$0xff] %vm815_vm3, %v1340_v14 }
 0x177   : > { %v1513_v45 = vld [vmem:[#allocation3 + $0x122] sm:$0xff]  ;;  %v1514_v57 = vld [vmem:[#allocation3 + $0x12a] sm:$0xff]  ;;  %v1601_v25 = vmax.f32 %v7224_v42, %v7259_v41  ;;  %v1602_v61 = vmax.f32 %v7226_v34, %v7267_v52  ;;  %v7291_v36 = vld [vmem:[#allocation3 + $0x113] sm:$0xff]  ;;  %v1603_v42 = vmax.f32 %v7246_v29, %v7269_v5 }
 0x178   : > { %v1294_v30 = vld [vmem:[#allocation2 + $0x1c8] sm:$0xff]  ;;  %v1619_v44 = vld [vmem:[#allocation3 + $0x1c] sm:$0xff]  ;;  %v1295_v18 = vld [vmem:[#allocation2 + $0x1d0] sm:$0xff]  ;;  %v7275_v31 = vmax.f32 %v1481_v49, %v1513_v45  ;;  %v7289_v43 = vmax.f32 %v1482_v56, %v1514_v57  ;;  %v1608_v59 = vmax.f32 %v7265_v38, %v7291_v36 }
 0x179   : > { %v1618_v9 = vld [vmem:[#allocation3 + $0xc] sm:$0xff]  ;;  %v1572_v39 = vld [vmem:[#allocation3 + $0xe3] sm:$0xff]  ;;  %v7279_v51 = vld [vmem:[#allocation3 + $0xfb] sm:$0xff]  ;;  %v1651_v13 = vmax.f32 %v1587_v46, %v1619_v44  ;;  %v1342_v52 = vmax.f32 %v1245_v26, %v1294_v30  ;;  %v1343_v38 = vmax.f32 %v1246_v7, %v1295_v18 }
 0x17a   : > { %v1556_v32 = vld [vmem:[#allocation3 + $0x23] sm:$0xff]  ;;  %v1575_v23 = vld [vmem:[#allocation3 + $0x10b] sm:$0xff]  ;;  %v1604_v34 = vmax.f32 %v7251_v21, %v1572_v39  ;;  %v1419_v40 = vld [vmem:[#allocation3 + $0x138] sm:$0xff]  ;;  %v1606_v33 = vmax.f32 %v7255_v3, %v7279_v51  ;;  %v1650_v49 = vmax.f32 %v1586_v4, %v1618_v9 }
 0x17b   : > { %v7293_v55 = vld [vmem:[#allocation3 + $0x123] sm:$0xff]  ;;  %v1451_v8 = vld [vmem:[#allocation3 + $0x139] sm:$0xff]  ;;  %v1607_v15 = vmax.f32 %v7257_v6, %v1575_v23  ;;  %v1578_v21 = vld [vmem:[#allocation3 + $0x12b] sm:$0xff]  ;;  %v1588_v57 = vmax.f32 %v1524_v28, %v1556_v32  ;;  %1683 = vst.msk [vmem:[#allocation2 + $0x4a] sm:$0xff] %vm815_vm3, %v1651_v13 }
 0x17c   : > { %v1420_v41 = vld [vmem:[#allocation3 + $0x140] sm:$0xff]  ;;  %v1483_v29 = vmax.f32 %v1419_v40, %v1451_v8  ;;  %v1609_v6 = vmax.f32 %v7275_v31, %v7293_v55  ;;  %v1610_v4 = vmax.f32 %v7289_v43, %v1578_v21  ;;  %1682 = vst.msk [vmem:[#allocation2 + $0x3a] sm:$0xff] %vm815_vm3, %v1650_v49  ;;  %5465 = vmatmul.mubr.msk.f32.vlgmr.msra.gmra.mrb[32].mxu0 %vm815_vm3, %v1650_v49  ;;  %v1634_v26 = vld [vmem:[#allocation3 + $0xcc] sm:$0xff]  ;;  %1390 = vst.msk [vmem:[#allocation3 + $0x168] sm:$0xff] %vm815_vm3, %v1342_v52 }
 0x17d   : > { %v1620_v45 = vld [vmem:[#allocation3 + $0x24] sm:$0xff]  ;;  %v1515_v56 = vld [vmem:[#allocation3 + $0x13a] sm:$0xff]  ;;  %5467 = vmatprep.mubr.msk.f32.mxu0 %vm815_vm3, %v1651_v13  ;;  %v1639_v32 = vld [vmem:[#allocation3 + $0x10c] sm:$0xff]  ;;  %v7325_v7 = vmax.f32 %v1602_v61, %v1634_v26  ;;  %1391 = vst.msk [vmem:[#allocation3 + $0x170] sm:$0xff] %vm815_vm3, %v1343_v38 }
 0x17e   : > { %v1452_v0 = vld [vmem:[#allocation3 + $0x141] sm:$0xff]  ;;  %v1547_v12 = vmax.f32 %v1483_v29, %v1515_v56  ;;  %v1652_v31 = vmax.f32 %v1588_v57, %v1620_v45  ;;  %v1637_v18 = vld [vmem:[#allocation3 + $0xf4] sm:$0xff]  ;;  %v7338_v13 = vmax.f32 %v1607_v15, %v1639_v32 }
 0x17f   : > { %v1484_v5 = vmax.f32 %v1420_v41, %v1452_v0  ;;  %v1516_v14 = vld [vmem:[#allocation3 + $0x142] sm:$0xff]  ;;  %v6025_v39 = vld [vmem:[%s8523_s3] sm:$0x3]  ;;  %v1640_v55 = vld [vmem:[#allocation3 + $0x114] sm:$0xff]  ;;  %v7334_v8 = vmax.f32 %v1605_v22, %v1637_v18  ;;  %1698 = vst.msk [vmem:[#allocation2 + $0xfa] sm:$0xff] %vm815_vm3, %v7325_v7 }
 0x180   : > { %v1579_v3 = vld [vmem:[#allocation3 + $0x13b] sm:$0xff]  ;;  %v1633_v46 = vld [vmem:[#allocation3 + $0xc4] sm:$0xff]  ;;  %5513 = vmatpush3.msk.msra.mxu0 %vm3380_vm4, %v6025_v39  ;;  %v1642_v41 = vld [vmem:[#allocation3 + $0x12c] sm:$0xff]  ;;  %8587 = vst [vmem:[#allocation24_spill] sm:$0xff] %v7338_v13  ;;  %v7343_v45 = vmax.f32 %v1608_v59, %v1640_v55 }
 0x181   : > { %v7312_v9 = vld [vmem:[#allocation2 + $0x80] sm:$0xff]  ;;  %v7317_v28 = vmax.f32 %v1601_v25, %v1633_v46  ;;  %v1548_v58 = vmax.f32 %v1484_v5, %v1516_v14  ;;  %v7331_v23 = vld [vmem:[#allocation2 + $0x68] sm:$0xff]  ;;  %v1611_v36 = vmax.f32 %v1547_v12, %v1579_v3  ;;  %1684 = vst.msk [vmem:[#allocation2 + $0x52] sm:$0xff] %vm815_vm3, %v1652_v31  ;;  %v7347_v29 = vmax.f32 %v1610_v4, %v1642_v41  ;;  %v7355_v22 = vld [vmem:[#allocation2 + $0x90] sm:$0xff] }
 0x182   : > { %v1580_v1 = vld [vmem:[#allocation3 + $0x143] sm:$0xff]  ;;  %8588 = vst [vmem:[#allocation25_spill] sm:$0xff] %v7343_v45  ;;  %5468 = vmatmul.mubr.msk.f32.gmra.mrb[34].mxu0 %vm815_vm3, %v1652_v31  ;;  %1701 = vst.msk [vmem:[#allocation2 + $0x122] sm:$0xff] %vm815_vm3, %v7334_v8  ;;  %v7366_v15 = vld [vmem:[#allocation2 + $0x98] sm:$0xff]  ;;  %v1822_v59 = vmax.f32 %v7331_v23, %v7312_v9  ;;  %v1824_v57 = vmax.f32 %v7119_v2, %v7355_v22  ;;  %v7380_v52 = vmax.f32 %v1821_v47, %v7355_v22 }
 0x183   : > { %v1635_v30 = vld [vmem:[#allocation3 + $0xdc] sm:$0xff]  ;;  %v1636_v44 = vld [vmem:[#allocation3 + $0xe4] sm:$0xff]  ;;  %1697 = vst.msk [vmem:[#allocation2 + $0xf2] sm:$0xff] %vm815_vm3, %v7317_v28  ;;  %v1612_v61 = vmax.f32 %v1548_v58, %v1580_v1  ;;  %8590 = vst [vmem:[#allocation27_spill] sm:$0xff] %v7347_v29  ;;  %5470 = vmatprep.mubr.msk.f32.mxu0 %vm815_vm3, %v6923_v37  ;;  %v1825_v37 = vmax.f32 %v7312_v9, %v7366_v15 }
 0x184   : > { %v1638_v51 = vld [vmem:[#allocation3 + $0xfc] sm:$0xff]  ;;  %v7327_v43 = vmax.f32 %v1603_v42, %v1635_v30  ;;  %v7329_v25 = vmax.f32 %v1604_v34, %v1636_v44  ;;  %v1641_v40 = vld [vmem:[#allocation3 + $0x124] sm:$0xff]  ;;  %1703 = vst.msk [vmem:[#allocation2 + $0x13a] sm:$0xff] %vm815_vm3, %v7338_v13  ;;  %v7370_v21 = vld [vmem:[#allocation2 + $0xb0] sm:$0xff]  ;;  %v1918_v30 = vmax.f32 %v1822_v59, %v7366_v15 }
 0x185   : > { %v7336_v49 = vmax.f32 %v1606_v33, %v1638_v51  ;;  %v1643_v42 = vld [vmem:[#allocation3 + $0x13c] sm:$0xff]  ;;  %v1644_v34 = vld [vmem:[#allocation3 + $0x144] sm:$0xff]  ;;  %v7345_v0 = vmax.f32 %v1609_v6, %v1641_v40  ;;  %8593 = vst [vmem:[#allocation30_spill] sm:$0xff] %v7370_v21  ;;  %1704 = vst.msk [vmem:[#allocation2 + $0x142] sm:$0xff] %vm815_vm3, %v7343_v45  ;;  %v1828_v4 = vmax.f32 %v7366_v15, %v7370_v21 }
 0x186   : > { %1699 = vst.msk [vmem:[#allocation2 + $0x10a] sm:$0xff] %vm815_vm3, %v7327_v43  ;;  %1700 = vst.msk [vmem:[#allocation2 + $0x112] sm:$0xff] %vm815_vm3, %v7329_v25  ;;  %v7358_v33 = vmax.f32 %v1611_v36, %v1643_v42  ;;  %v7368_v56 = vld [vmem:[#allocation2 + $0xa8] sm:$0xff]  ;;  %v7384_v5 = vmax.f32 %v1612_v61, %v1644_v34  ;;  %v7392_v14 = vld [vmem:[#allocation2 + $0xc0] sm:$0xff]  ;;  %v1921_v39 = vmax.f32 %v1825_v37, %v7370_v21  ;;  %5471 = vmatmul.mubr.msk.f32.gmra.mrb[36].mxu0 %vm815_vm3, %v6925_v27 }
 0x187   : > { %8589 = vst [vmem:[#allocation26_spill] sm:$0xff] %v7345_v0  ;;  %1702 = vst.msk [vmem:[#allocation2 + $0x12a] sm:$0xff] %vm815_vm3, %v7336_v49  ;;  %v7394_v3 = vld [vmem:[#allocation2 + $0xc8] sm:$0xff]  ;;  %v7396_v47 = vld [vmem:[#allocation2 + $0xd8] sm:$0xff]  ;;  %v1827_v6 = vmax.f32 %v7355_v22, %v7368_v56  ;;  %v1830_v12 = vmax.f32 %v7368_v56, %v7392_v14  ;;  %v1920_v31 = vmax.f32 %v1824_v57, %v7368_v56  ;;  %5473 = vmatprep.mubr.msk.f32.mxu0 %vm815_vm3, %v6927_v48 }
 0x188   : > { %8591 = vst [vmem:[#allocation28_spill] sm:$0xff] %v7358_v33  ;;  %8592 = vst [vmem:[#allocation29_spill] sm:$0xff] %v7368_v56  ;;  %v7404_v46 = vld [vmem:[#allocation2 + $0x178] sm:$0xf]  ;;  %v7408_v38 = vld [vmem:[#allocation2 + $0xe0] sm:$0xff]  ;;  %v1831_v1 = vmax.f32 %v7370_v21, %v7394_v3  ;;  %v1833_v26 = vmax.f32 %v7392_v14, %v7396_v47  ;;  %v1924_v18 = vmax.f32 %v1828_v4, %v7394_v3 }
 0x189   : > { %8594 = vst [vmem:[#allocation31_spill] sm:$0xff] %v7384_v5  ;;  %1705 = vst.msk [vmem:[#allocation2 + $0x152] sm:$0xff] %vm815_vm3, %v7345_v0  ;;  %v1834_v44 = vmax.f32 %v7394_v3, %v7408_v38  ;;  %v1923_v58 = vmax.f32 %v1827_v6, %v7392_v14  ;;  %v1926_v51 = vmax.f32 %v1830_v12, %v7396_v47  ;;  %v7439_v4 = vld [vmem:[#allocation2 + $0x120] sm:$0xff] }
 0x18a   : > { %1706 = vst.msk [vmem:[#allocation2 + $0x15a] sm:$0xff] %vm815_vm3, %v7347_v29  ;;  %8595 = vst [vmem:[#allocation32_spill] sm:$0xff] %v7404_v46  ;;  %v1927_v32 = vmax.f32 %v1831_v1, %v7408_v38  ;;  %v2013_v36 = vmax.f32 %v7380_v52, %v7368_v56  ;;  %v1743_v55 = vld [vmem:[#allocation2 + $0xf0] sm:$0xff]  ;;  %v2014_v40 = vmax.f32 %v1918_v30, %v7370_v21  ;;  %v1744_v42 = vld [vmem:[#allocation2 + $0xf8] sm:$0xff]  ;;  %5474 = vmatmul.mubr.msk.f32.gmra.mrb[38].mxu0 %vm815_vm3, %v6929_v20 }
 0x18b   : > { %1707 = vst.msk [vmem:[#allocation2 + $0x16a] sm:$0xff] %vm815_vm3, %v7358_v33  ;;  %1708 = vst.msk [vmem:[#allocation2 + $0x172] sm:$0xff] %vm815_vm3, %v7384_v5  ;;  %v2016_v41 = vmax.f32 %v1920_v31, %v7392_v14  ;;  %v2017_v61 = vmax.f32 %v1921_v39, %v7394_v3  ;;  %v2019_v27 = vmax.f32 %v1923_v58, %v7396_v47  ;;  %v7443_v12 = vld [vmem:[#allocation2 + $0x138] sm:$0xff]  ;;  %5476 = vmatprep.mubr.msk.f32.mxu0 %vm815_vm3, %v7089_v17 }
 0x18c   : > { %v1836_v57 = vmax.f32 %v7396_v47, %v1743_v55  ;;  %v1929_v37 = vmax.f32 %v1833_v26, %v1743_v55  ;;  %v2020_v52 = vmax.f32 %v1924_v18, %v7408_v38  ;;  %v2022_v6 = vmax.f32 %v1926_v51, %v1743_v55  ;;  %v7448_v58 = vld [vmem:[#allocation2 + $0x140] sm:$0xff] }
 0x18d   : > { %v1746_v34 = vld [vmem:[#allocation2 + $0x108] sm:$0xff]  ;;  %v1747_v59 = vld [vmem:[#allocation2 + $0x110] sm:$0xff]  ;;  %v1837_v1 = vmax.f32 %v7408_v38, %v1744_v42  ;;  %v1930_v39 = vmax.f32 %v1834_v44, %v1744_v42  ;;  %v2023_v46 = vmax.f32 %v1927_v32, %v1744_v42 }
 0x18e   : > { %v7441_v48 = vld [vmem:[#allocation2 + $0x128] sm:$0xff]  ;;  %v1839_v30 = vmax.f32 %v1743_v55, %v1746_v34  ;;  %v1840_v31 = vmax.f32 %v1744_v42, %v1747_v59  ;;  %v1842_v26 = vmax.f32 %v1746_v34, %v7439_v4  ;;  %v1932_v51 = vmax.f32 %v1836_v57, %v1746_v34  ;;  %5477 = vmatmul.mubr.msk.f32.gmra.mrb[40].mxu0 %vm815_vm3, %v7102_v60  ;;  %v7473_v60 = vld [vmem:[#allocation2 + $0x38] sm:$0xff] }
 0x18f   : > { %v1843_v18 = vmax.f32 %v1747_v59, %v7441_v48  ;;  %v1933_v5 = vmax.f32 %v1837_v1, %v1747_v59  ;;  %v2025_v45 = vmax.f32 %v1929_v37, %v1746_v34  ;;  %v2026_v21 = vmax.f32 %v1930_v39, %v1747_v59  ;;  %5479 = vmatprep.mubr.msk.f32.mxu0 %vm815_vm3, %v7107_v24 }
 0x190   : > { %v1935_v33 = vmax.f32 %v1839_v30, %v7439_v4  ;;  %v1936_v29 = vmax.f32 %v1840_v31, %v7441_v48  ;;  %v1986_v44 = vld [vmem:[#allocation2 + $0x150] sm:$0xff]  ;;  %v1938_v20 = vmax.f32 %v1842_v26, %v7443_v12  ;;  %v2028_v56 = vmax.f32 %v1932_v51, %v7439_v4  ;;  %v7518_v51 = vld [vmem:[#allocation2 + $0x40] sm:$0xf] }
 0x191   : > { %v1987_v0 = vld [vmem:[#allocation2 + $0x158] sm:$0xff]  ;;  %v1939_v13 = vmax.f32 %v1843_v18, %v7448_v58  ;;  %v2029_v32 = vmax.f32 %v1933_v5, %v7441_v48  ;;  %v2109_v1 = vmax.f32 %v2013_v36, %v7392_v14  ;;  %v2110_v26 = vmax.f32 %v2014_v40, %v7394_v3  ;;  %v7469_v5 = vld [vmem:[#allocation2 + $0x28] sm:$0xf] }
 0x192   : > { %v2031_v57 = vmax.f32 %v1935_v33, %v7443_v12  ;;  %v2032_v17 = vmax.f32 %v1936_v29, %v7448_v58  ;;  %v2034_v30 = vmax.f32 %v1938_v20, %v1986_v44  ;;  %v2082_v31 = vld [vmem:[#allocation2 + $0x168] sm:$0xff]  ;;  %v2112_v39 = vmax.f32 %v2016_v41, %v7396_v47  ;;  %v2083_v33 = vld [vmem:[#allocation2 + $0x170] sm:$0xff]  ;;  %v1859_v41 = vld [vmem:[#allocation2 + $0x40] sm:$0xf]  ;;  %5480 = vmatmul.mubr.msk.f32.gmra.mrb[42].mxu0 %vm815_vm3, %v7112_v53 }
 0x193   : > { %v2035_v37 = vmax.f32 %v1939_v13, %v1987_v0  ;;  %v2113_v29 = vmax.f32 %v2017_v61, %v7408_v38  ;;  %v2115_v18 = vmax.f32 %v2019_v27, %v1743_v55  ;;  %v2116_v14 = vmax.f32 %v2020_v52, %v1744_v42  ;;  %2157 = vst.msk [vmem:[#allocation3 + $0x60] sm:$0xff] %vm815_vm3, %v2109_v1  ;;  %v7475_v13 = vld [vmem:[#allocation2 + $0x50] sm:$0xff]  ;;  %v7484_v55 = vld [vmem:[#allocation2 + $0x40] sm:$0xf]  ;;  %v8599_v20 = vld [vmem:[#allocation11_spill] sm:$0xff] }
 0x194   : > { %v2118_v36 = vmax.f32 %v2022_v6, %v1746_v34  ;;  %v2119_v3 = vmax.f32 %v2023_v46, %v1747_v59  ;;  %v2121_v47 = vmax.f32 %v2025_v45, %v7439_v4  ;;  %v2122_v40 = vmax.f32 %v2026_v21, %v7441_v48  ;;  %2158 = vst.msk [vmem:[#allocation3 + $0x68] sm:$0xff] %vm815_vm3, %v2110_v26  ;;  %v7482_v38 = vld [vmem:[#allocation2 + $0x30] sm:$0xff]  ;;  %v7493_v45 = vld [vmem:[#allocation2 + $0x48] sm:$0xff]  ;;  %v1955_v6 = vld [vmem:[#allocation2 + $0x58] sm:$0xf] }
 0x195   : > { %v2124_v24 = vmax.f32 %v2028_v56, %v7443_v12  ;;  %2160 = vst.msk [vmem:[#allocation3 + $0x78] sm:$0xff] %vm815_vm3, %v2112_v39  ;;  %v2125_v61 = vmax.f32 %v2029_v32, %v7448_v58  ;;  %v2127_v27 = vmax.f32 %v2031_v57, %v1986_v44  ;;  %v2128_v42 = vmax.f32 %v2032_v17, %v1987_v0  ;;  %v7495_v56 = vld [vmem:[#allocation2 + $0x58] sm:$0xf]  ;;  %v6026_v0 = vld [vmem:[#allocation2 + $0x20] sm:$0xff]  ;;  %v8598_v44 = vld [vmem:[#allocation10_spill] sm:$0xff] }
 0x196   : > { %v2130_v46 = vmax.f32 %v2034_v30, %v2082_v31  ;;  %2161 = vst.msk [vmem:[#allocation3 + $0x80] sm:$0xff] %vm815_vm3, %v2113_v29  ;;  %2163 = vst.msk [vmem:[#allocation3 + $0x90] sm:$0xff] %vm815_vm3, %v2115_v18  ;;  %v2131_v21 = vmax.f32 %v2035_v37, %v2083_v33  ;;  %v1813_v34 = vmax.f32 %v6026_v0, %v7473_v60  ;;  %5482 = vmatprep.mubr.msk.f32.mxu0 %vm815_vm3, %v7117_v62  ;;  %v2051_v57 = vld [vmem:[#allocation2 + $0x70] sm:$0xf]  ;;  %v6027_v17 = vld [vmem:[#allocation2 + $0x18] sm:$0xff] }
 0x197   : > { %2164 = vst.msk [vmem:[#allocation3 + $0x98] sm:$0xff] %vm815_vm3, %v2116_v14  ;;  %2166 = vst.msk [vmem:[#allocation3 + $0xa8] sm:$0xff] %vm815_vm3, %v2118_v36  ;;  %v8596_v53 = vmax.f32 %v6336_v10, %v6338_v11  ;;  %v1816_v52 = vmax.f32 %v7473_v60, %v7475_v13  ;;  %v8597_v10 = vmax.f32 %v6347_v19, %v6349_v50  ;;  %v7524_v30 = vld [vmem:[#allocation2 + $0x70] sm:$0xf]  ;;  %v7531_v31 = vld [vmem:[#allocation2 + $0x58] sm:$0xf]  ;;  %5483 = vmatmul.mubr.msk.f32.gmra.mrb[44].mxu0 %vm815_vm3, %v7135_v54 }
 0x198   : > { %2167 = vst.msk [vmem:[#allocation3 + $0xb0] sm:$0xff] %vm815_vm3, %v2119_v3  ;;  %2169 = vst.msk [vmem:[#allocation3 + $0xc0] sm:$0xff] %vm815_vm3, %v2121_v47  ;;  %v8600_v32 = vmax.f32 %v8598_v44, %v8599_v20  ;;  %v1812_v1 = vmax.f32 %v6027_v17, %v7482_v38  ;;  %v1814_v37 = vmax.f32 %v7469_v5, %v7484_v55  ;;  %v7533_v26 = vld [vmem:[#allocation2 + $0x70] sm:$0xf]  ;;  %v7535_v39 = vld [vmem:[#allocation2 + $0x88] sm:$0xf]  ;;  %5485 = vmatprep.mubr.msk.f32.mxu0 %vm815_vm3, %v7199_v63 }
 0x199   : > { %2170 = vst.msk [vmem:[#allocation3 + $0xc8] sm:$0xff] %vm815_vm3, %v2122_v40  ;;  %2172 = vst.msk [vmem:[#allocation3 + $0xd8] sm:$0xff] %vm815_vm3, %v2124_v24  ;;  %v1906_v59 = vmax.f32 %v8596_v53, %v7473_v60  ;;  %v1905_v11 = vmax.f32 %v8597_v10, %v7482_v38  ;;  %v1909_v19 = vmax.f32 %v1813_v34, %v7475_v13  ;;  %v7545_v36 = vld [vmem:[#allocation2 + $0x88] sm:$0xf]  ;;  %v7547_v3 = vld [vmem:[#allocation2 + $0xa0] sm:$0xf] }
 0x19a   : > { %2173 = vst.msk [vmem:[#allocation3 + $0xe0] sm:$0xff] %vm815_vm3, %v2125_v61  ;;  %2175 = vst.msk [vmem:[#allocation3 + $0xf0] sm:$0xff] %vm815_vm3, %v2127_v27  ;;  %v1907_v62 = vmax.f32 %v8600_v32, %v1859_v41  ;;  %v1815_v33 = vmax.f32 %v7482_v38, %v7493_v45  ;;  %v1817_v29 = vmax.f32 %v7518_v51, %v7495_v56  ;;  %v1862_v40 = vld [vmem:[#allocation2 + $0x58] sm:$0xf]  ;;  %v1865_v24 = vld [vmem:[#allocation2 + $0x70] sm:$0xf] }
 0x19b   : > { %2176 = vst.msk [vmem:[#allocation3 + $0xf8] sm:$0xff] %vm815_vm3, %v2128_v42  ;;  %2178 = vst.msk [vmem:[#allocation3 + $0x108] sm:$0xff] %vm815_vm3, %v2130_v46  ;;  %v2002_v50 = vmax.f32 %v1906_v59, %v7475_v13  ;;  %v2001_v5 = vmax.f32 %v1905_v11, %v7493_v45  ;;  %v1908_v14 = vmax.f32 %v1812_v1, %v7493_v45  ;;  %v2201_v38 = vld [vmem:[#allocation3 + $0x60] sm:$0xff]  ;;  %v1868_v27 = vld [vmem:[#allocation2 + $0x88] sm:$0xf]  ;;  %5486 = vmatmul.mubr.msk.f32.gmra.mrb[46].mxu0 %vm815_vm3, %v7248_v35 }
 0x19c   : > { %2179 = vst.msk [vmem:[#allocation3 + $0x110] sm:$0xff] %vm815_vm3, %v2131_v21  ;;  %v2003_v18 = vmax.f32 %v1907_v62, %v1955_v6  ;;  %v1818_v47 = vmax.f32 %v7493_v45, %v7156_v16  ;;  %v2005_v55 = vmax.f32 %v1909_v19, %v7331_v23  ;;  %v1819_v41 = vmax.f32 %v7475_v13, %v7331_v23  ;;  %v1871_v42 = vld [vmem:[#allocation2 + $0xa0] sm:$0xf]  ;;  %v2203_v46 = vld [vmem:[#allocation3 + $0x78] sm:$0xff]  ;;  %v7569_v32 = vld [vmem:[#allocation2 + $0x70] sm:$0xf] }
 0x19d   : > { %v2098_v54 = vmax.f32 %v2002_v50, %v7331_v23  ;;  %v1820_v61 = vmax.f32 %v7531_v31, %v7524_v30  ;;  %v2233_v45 = vld [vmem:[#allocation3 + $0x61] sm:$0xff]  ;;  %v2097_v21 = vmax.f32 %v2001_v5, %v7156_v16  ;;  %v2004_v63 = vmax.f32 %v1908_v14, %v7156_v16  ;;  %v1874_v53 = vld [vmem:[#allocation2 + $0xb8] sm:$0xf]  ;;  %v2205_v59 = vld [vmem:[#allocation3 + $0x90] sm:$0xff]  ;;  %5488 = vmatprep.mubr.msk.f32.mxu0 %vm815_vm3, %v7317_v28 }
 0x19e   : > { %v2297_v56 = vld [vmem:[#allocation3 + $0x62] sm:$0xff]  ;;  %v2099_v0 = vmax.f32 %v2003_v18, %v2051_v57  ;;  %v1823_v34 = vmax.f32 %v7533_v26, %v7535_v39  ;;  %v2235_v10 = vld [vmem:[#allocation3 + $0x79] sm:$0xff]  ;;  %v2265_v11 = vmax.f32 %v2201_v38, %v2233_v45  ;;  %v2101_v51 = vmax.f32 %v2005_v55, %v7312_v9  ;;  %v2237_v17 = vld [vmem:[#allocation3 + $0x91] sm:$0xff] }
 0x19f   : > { %v2207_v6 = vld [vmem:[#allocation3 + $0xa8] sm:$0xff]  ;;  %2146 = vst.msk [vmem:[#allocation3 + $0x8] sm:$0xff] %vm815_vm3, %v2098_v54  ;;  %v1826_v44 = vmax.f32 %v7545_v36, %v7547_v3  ;;  %v7567_v20 = vmax.f32 %v1814_v37, %v1862_v40  ;;  %v2209_v62 = vld [vmem:[#allocation3 + $0xc0] sm:$0xff]  ;;  %v2267_v1 = vmax.f32 %v2203_v46, %v2235_v10  ;;  %2145 = vst.msk [vmem:[#allocation3] sm:$0xff] %vm815_vm3, %v2097_v21  ;;  %5489 = vmatmul.mubr.msk.f32.gmra.mrb[48].mxu0 %vm815_vm3, %v7325_v7 }
 0x1a0   : > { %v2211_v57 = vld [vmem:[#allocation3 + $0xd8] sm:$0xff]  ;;  %2147 = vst.msk [vmem:[#allocation3 + $0x10] sm:$0xf] %vm818_vm2, %v2099_v0  ;;  %v2100_v30 = vmax.f32 %v2004_v63, %v7119_v2  ;;  %v7577_v19 = vmax.f32 %v1815_v33, %v7156_v16  ;;  %v7583_v37 = vmax.f32 %v1816_v52, %v7331_v23  ;;  %v2239_v35 = vld [vmem:[#allocation3 + $0xa9] sm:$0xff]  ;;  %v2269_v39 = vmax.f32 %v2205_v59, %v2237_v17  ;;  %v7597_v23 = vld [vmem:[#allocation2 + $0x80] sm:$0xff] }
 0x1a1   : > { %v7585_v50 = vld [vmem:[#allocation2 + $0x78] sm:$0xff]  ;;  %v2213_v31 = vld [vmem:[#allocation3 + $0xf0] sm:$0xff]  ;;  %v7587_v5 = vmax.f32 %v2265_v11, %v2297_v56  ;;  %2149 = vst.msk [vmem:[#allocation3 + $0x20] sm:$0xff] %vm815_vm3, %v2101_v51  ;;  %v7592_v16 = vmax.f32 %v1817_v29, %v1865_v24  ;;  %v7595_v33 = vmax.f32 %v1818_v47, %v7119_v2  ;;  %v2241_v60 = vld [vmem:[#allocation3 + $0xc1] sm:$0xff]  ;;  %v2271_v18 = vmax.f32 %v2207_v6, %v2239_v35 }
 0x1a2   : > { %v2215_v26 = vld [vmem:[#allocation3 + $0x108] sm:$0xff]  ;;  %v2243_v13 = vld [vmem:[#allocation3 + $0xd9] sm:$0xff]  ;;  %v2245_v52 = vld [vmem:[#allocation3 + $0xf1] sm:$0xff]  ;;  %2148 = vst.msk [vmem:[#allocation3 + $0x18] sm:$0xff] %vm815_vm3, %v2100_v30  ;;  %v7601_v14 = vmax.f32 %v1819_v41, %v7312_v9  ;;  %v7603_v36 = vmax.f32 %v1820_v61, %v1868_v27  ;;  %v7605_v28 = vmax.f32 %v1823_v34, %v1871_v42  ;;  %v2273_v2 = vmax.f32 %v2209_v62, %v2241_v60 }
 0x1a3   : > { %v7607_v29 = vld [vmem:[#allocation2 + $0x88] sm:$0xf]  ;;  %v2275_v47 = vmax.f32 %v2211_v57, %v2243_v13  ;;  %v2277_v40 = vmax.f32 %v2213_v31, %v2245_v52  ;;  %v2299_v24 = vld [vmem:[#allocation3 + $0x7a] sm:$0xff]  ;;  %v2301_v38 = vld [vmem:[#allocation3 + $0x92] sm:$0xff]  ;;  %v7609_v54 = vmax.f32 %v1826_v44, %v1874_v53  ;;  %v2006_v61 = vmax.f32 %v7567_v20, %v7569_v32  ;;  %5491 = vmatprep.mubr.msk.f32.mxu0 %vm815_vm3, %v7327_v43 }
 0x1a4   : > { %v2247_v3 = vld [vmem:[#allocation3 + $0x109] sm:$0xff]  ;;  %v2307_v56 = vld [vmem:[#allocation3 + $0xda] sm:$0xff]  ;;  %v2331_v9 = vmax.f32 %v2267_v1, %v2299_v24  ;;  %v2333_v41 = vmax.f32 %v2269_v39, %v2301_v38  ;;  %v2309_v27 = vld [vmem:[#allocation3 + $0xf2] sm:$0xff]  ;;  %v2007_v59 = vmax.f32 %v7577_v19, %v7585_v50  ;;  %v2008_v57 = vmax.f32 %v7583_v37, %v7597_v23  ;;  %5492 = vmatmul.mubr.msk.f32.gmra.mrb[50].mxu0 %vm815_vm3, %v7329_v25 }
 0x1a5   : > { %v2279_v55 = vmax.f32 %v2215_v26, %v2247_v3  ;;  %v2303_v46 = vld [vmem:[#allocation3 + $0xaa] sm:$0xff]  ;;  %v2305_v45 = vld [vmem:[#allocation3 + $0xc2] sm:$0xff]  ;;  %v2339_v63 = vmax.f32 %v2275_v47, %v2307_v56  ;;  %v2341_v6 = vmax.f32 %v2277_v40, %v2309_v27  ;;  %v2365_v11 = vld [vmem:[#allocation3 + $0x93] sm:$0xff]  ;;  %v2009_v19 = vmax.f32 %v7592_v16, %v7607_v29  ;;  %5494 = vmatprep.mubr.msk.f32.mxu0 %vm815_vm3, %v7334_v8 }
 0x1a6   : > { %v2311_v42 = vld [vmem:[#allocation3 + $0x10a] sm:$0xff]  ;;  %v2335_v21 = vmax.f32 %v2271_v18, %v2303_v46  ;;  %v2337_v0 = vmax.f32 %v2273_v2, %v2305_v45  ;;  %v7617_v53 = vld [vmem:[#allocation2 + $0xa0] sm:$0xf]  ;;  %v7622_v62 = vld [vmem:[#allocation2 + $0xb8] sm:$0xf]  ;;  %v2397_v31 = vmax.f32 %v2333_v41, %v2365_v11  ;;  %v2010_v3 = vmax.f32 %v7595_v33, %v7355_v22 }
 0x1a7   : > { %v2361_v34 = vld [vmem:[#allocation3 + $0x63] sm:$0xff]  ;;  %v2343_v10 = vmax.f32 %v2279_v55, %v2311_v42  ;;  %v2363_v7 = vld [vmem:[#allocation3 + $0x7b] sm:$0xff]  ;;  %v2367_v51 = vld [vmem:[#allocation3 + $0xab] sm:$0xff]  ;;  %v2011_v29 = vmax.f32 %v7601_v14, %v7366_v15 }
 0x1a8   : > { %v2393_v44 = vmax.f32 %v7587_v5, %v2361_v34  ;;  %v2369_v17 = vld [vmem:[#allocation3 + $0xc3] sm:$0xff]  ;;  %v2371_v1 = vld [vmem:[#allocation3 + $0xdb] sm:$0xff]  ;;  %v2373_v43 = vld [vmem:[#allocation3 + $0xf3] sm:$0xff]  ;;  %v2395_v30 = vmax.f32 %v2331_v9, %v2363_v7  ;;  %v2399_v26 = vmax.f32 %v2335_v21, %v2367_v51  ;;  %v2012_v21 = vmax.f32 %v7603_v36, %v7617_v53  ;;  %5495 = vmatmul.mubr.msk.f32.gmra.mrb[52].mxu0 %vm815_vm3, %v7336_v49 }
 0x1a9   : > { %v7626_v35 = vld [vmem:[#allocation2 + $0xd0] sm:$0xf]  ;;  %v2054_v50 = vld [vmem:[#allocation2 + $0x88] sm:$0xf]  ;;  %v2401_v60 = vmax.f32 %v2337_v0, %v2369_v17  ;;  %v2403_v5 = vmax.f32 %v2339_v63, %v2371_v1  ;;  %v2405_v13 = vmax.f32 %v2341_v6, %v2373_v43  ;;  %v2427_v18 = vld [vmem:[#allocation3 + $0x7c] sm:$0xff]  ;;  %v2015_v6 = vmax.f32 %v7605_v28, %v7622_v62 }
 0x1aa   : > { %v2375_v39 = vld [vmem:[#allocation3 + $0x10b] sm:$0xff]  ;;  %v2057_v2 = vld [vmem:[#allocation2 + $0xa0] sm:$0xf]  ;;  %v2429_v40 = vld [vmem:[#allocation3 + $0x94] sm:$0xff]  ;;  %v7636_v16 = vmax.f32 %v2395_v30, %v2427_v18  ;;  %v2018_v11 = vmax.f32 %v7609_v54, %v7626_v35  ;;  %v2102_v28 = vmax.f32 %v2006_v61, %v2054_v50  ;;  %v2103_v51 = vmax.f32 %v2007_v59, %v7355_v22 }
 0x1ab   : > { %v2425_v52 = vld [vmem:[#allocation3 + $0x64] sm:$0xff]  ;;  %v2407_v47 = vmax.f32 %v2343_v10, %v2375_v39  ;;  %v2431_v24 = vld [vmem:[#allocation3 + $0xac] sm:$0xff]  ;;  %v2060_v46 = vld [vmem:[#allocation2 + $0xb8] sm:$0xf]  ;;  %v7642_v9 = vmax.f32 %v2397_v31, %v2429_v40  ;;  %v2104_v22 = vmax.f32 %v2008_v57, %v7366_v15  ;;  %v2105_v20 = vmax.f32 %v2009_v19, %v2057_v2 }
 0x1ac   : > { %v2433_v38 = vld [vmem:[#allocation3 + $0xc4] sm:$0xff]  ;;  %v7634_v55 = vmax.f32 %v2393_v44, %v2425_v52  ;;  %v2063_v45 = vld [vmem:[#allocation2 + $0xd0] sm:$0xf]  ;;  %v2435_v25 = vld [vmem:[#allocation3 + $0xdc] sm:$0xff]  ;;  %v7644_v41 = vmax.f32 %v2399_v26, %v2431_v24  ;;  %2491 = vst.msk [vmem:[#allocation2 + $0xaa] sm:$0xff] %vm815_vm3, %v7636_v16  ;;  %v2108_v50 = vmax.f32 %v2012_v21, %v2060_v46 }
 0x1ad   : > { %v2437_v56 = vld [vmem:[#allocation3 + $0xf4] sm:$0xff]  ;;  %v2439_v33 = vld [vmem:[#allocation3 + $0x10c] sm:$0xff]  ;;  %v7646_v27 = vmax.f32 %v2401_v60, %v2433_v38  ;;  %v7652_v14 = vmax.f32 %v2403_v5, %v2435_v25  ;;  %v2193_v8 = vld [vmem:[#allocation3] sm:$0xff]  ;;  %2493 = vst.msk [vmem:[#allocation2 + $0xc2] sm:$0xff] %vm815_vm3, %v7642_v9  ;;  %v2111_v39 = vmax.f32 %v2015_v6, %v2063_v45 }
 0x1ae   : > { %v7648_v42 = vld [vmem:[#allocation2 + $0xb8] sm:$0xf]  ;;  %v7654_v0 = vmax.f32 %v2405_v13, %v2437_v56  ;;  %v7656_v63 = vmax.f32 %v2407_v47, %v2439_v33  ;;  %2489 = vst.msk [vmem:[#allocation2 + $0x92] sm:$0xff] %vm815_vm3, %v7634_v55  ;;  %v2225_v34 = vld [vmem:[#allocation3 + $0x1] sm:$0xff]  ;;  %2495 = vst.msk [vmem:[#allocation2 + $0xda] sm:$0xff] %vm815_vm3, %v7644_v41 }
 0x1af   : > { %v2066_v10 = vld [vmem:[#allocation2 + $0xe8] sm:$0xf]  ;;  %2497 = vst.msk [vmem:[#allocation2 + $0xf2] sm:$0xff] %vm815_vm3, %v7646_v27  ;;  %v2257_v36 = vmax.f32 %v2193_v8, %v2225_v34  ;;  %v1733_v7 = vld [vmem:[#allocation2 + $0xa0] sm:$0xf]  ;;  %v1421_v44 = vld [vmem:[#allocation3 + $0x150] sm:$0xff] }
 0x1b0   : > { %v2194_v53 = vld [vmem:[#allocation3 + $0x8] sm:$0xff]  ;;  %v1453_v62 = vld [vmem:[#allocation3 + $0x151] sm:$0xff]  ;;  %2499 = vst.msk [vmem:[#allocation2 + $0x10a] sm:$0xff] %vm815_vm3, %v7652_v14  ;;  %2501 = vst.msk [vmem:[#allocation2 + $0x122] sm:$0xff] %vm815_vm3, %v7654_v0  ;;  %v2114_v19 = vmax.f32 %v2018_v11, %v2066_v10  ;;  %v1829_v60 = vmax.f32 %v1733_v7, %v7648_v42 }
 0x1b1   : > { %2503 = vst.msk [vmem:[#allocation2 + $0x13a] sm:$0xff] %vm815_vm3, %v7656_v63  ;;  %v2289_v54 = vld [vmem:[#allocation3 + $0x2] sm:$0xff]  ;;  %v8602_v61 = vld [vmem:[#allocation30_spill] sm:$0xff]  ;;  %v2195_v26 = vld [vmem:[#allocation3 + $0x18] sm:$0xff]  ;;  %v1485_v5 = vmax.f32 %v1421_v44, %v1453_v62 }
 0x1b2   : > { %v2226_v17 = vld [vmem:[#allocation3 + $0x9] sm:$0xff]  ;;  %v2107_v59 = vmax.f32 %v2011_v29, %v8602_v61  ;;  %v8603_v1 = vld [vmem:[#allocation24_spill] sm:$0xff]  ;;  %v2321_v30 = vmax.f32 %v2257_v36, %v2289_v54  ;;  %2150 = vst.msk [vmem:[#allocation3 + $0x28] sm:$0xf] %vm818_vm2, %v2102_v28  ;;  %2153 = vst.msk [vmem:[#allocation3 + $0x40] sm:$0xf] %vm818_vm2, %v2105_v20 }
 0x1b3   : > { %v8601_v49 = vld [vmem:[#allocation29_spill] sm:$0xff]  ;;  %5497 = vmatprep.mubr.msk.f32.mxu0 %vm815_vm3, %v8603_v1  ;;  %v1877_v43 = vld [vmem:[#allocation2 + $0xd0] sm:$0xf]  ;;  %v2258_v31 = vmax.f32 %v2194_v53, %v2226_v17  ;;  %v2227_v35 = vld [vmem:[#allocation3 + $0x19] sm:$0xff]  ;;  %2151 = vst.msk [vmem:[#allocation3 + $0x30] sm:$0xff] %vm815_vm3, %v2103_v51 }
 0x1b4   : > { %v2106_v32 = vmax.f32 %v2010_v3, %v8601_v49  ;;  %v1973_v15 = vld [vmem:[#allocation2 + $0xe8] sm:$0xf]  ;;  %v2259_v57 = vmax.f32 %v2195_v26, %v2227_v35  ;;  %2152 = vst.msk [vmem:[#allocation3 + $0x38] sm:$0xff] %vm815_vm3, %v2104_v22  ;;  %2155 = vst.msk [vmem:[#allocation3 + $0x50] sm:$0xff] %vm815_vm3, %v2107_v59  ;;  %v1517_v13 = vld [vmem:[#allocation3 + $0x152] sm:$0xff]  ;;  %v1925_v56 = vmax.f32 %v1829_v60, %v1877_v43 }
 0x1b5   : > { %v2353_v37 = vld [vmem:[#allocation3 + $0x3] sm:$0xff]  ;;  %v2354_v2 = vld [vmem:[#allocation3 + $0xb] sm:$0xff]  ;;  %v2291_v47 = vld [vmem:[#allocation3 + $0x1a] sm:$0xff]  ;;  %2156 = vst.msk [vmem:[#allocation3 + $0x58] sm:$0xf] %vm818_vm2, %v2108_v50  ;;  %v1549_v33 = vmax.f32 %v1485_v5, %v1517_v13 }
 0x1b6   : > { %v2290_v23 = vld [vmem:[#allocation3 + $0xa] sm:$0xff]  ;;  %2154 = vst.msk [vmem:[#allocation3 + $0x48] sm:$0xff] %vm815_vm3, %v2106_v32  ;;  %v2385_v52 = vmax.f32 %v2321_v30, %v2353_v37  ;;  %v2069_v24 = vld [vmem:[#allocation2 + $0x100] sm:$0xf]  ;;  %v2323_v29 = vmax.f32 %v2259_v57, %v2291_v47  ;;  %v1581_v6 = vld [vmem:[#allocation3 + $0x153] sm:$0xff]  ;;  %v2021_v28 = vmax.f32 %v1925_v56, %v1973_v15 }
 0x1b7   : > { %v2417_v18 = vld [vmem:[#allocation3 + $0x4] sm:$0xff]  ;;  %v2322_v3 = vmax.f32 %v2258_v31, %v2290_v23  ;;  %2159 = vst.msk [vmem:[#allocation3 + $0x70] sm:$0xf] %vm818_vm2, %v2111_v39  ;;  %v2418_v38 = vld [vmem:[#allocation3 + $0xc] sm:$0xff]  ;;  %v2355_v46 = vld [vmem:[#allocation3 + $0x1b] sm:$0xff]  ;;  %v1613_v51 = vmax.f32 %v1549_v33, %v1581_v6 }
 0x1b8   : > { %v8604_v40 = vld [vmem:[#allocation25_spill] sm:$0xff]  ;;  %2162 = vst.msk [vmem:[#allocation3 + $0x88] sm:$0xf] %vm818_vm2, %v2114_v19  ;;  %v7704_v45 = vld [vmem:[#allocation3 + $0x20] sm:$0xff]  ;;  %v8605_v25 = vld [vmem:[#allocation26_spill] sm:$0xff]  ;;  %v2449_v8 = vmax.f32 %v2385_v52, %v2417_v18  ;;  %v2387_v11 = vmax.f32 %v2323_v29, %v2355_v46  ;;  %v2117_v26 = vmax.f32 %v2021_v28, %v2069_v24 }
 0x1b9   : > { %5498 = vmatmul.mubr.msk.f32.gmra.mrb[54].mxu0 %vm815_vm3, %v8604_v40  ;;  %v2531_v42 = vld [vmem:[#allocation2 + $0x90] sm:$0xff]  ;;  %v2534_v21 = vld [vmem:[#allocation2 + $0xa8] sm:$0xff]  ;;  %v2386_v34 = vmax.f32 %v2322_v3, %v2354_v2  ;;  %v2537_v10 = vld [vmem:[#allocation2 + $0xc0] sm:$0xff] }
 0x1ba   : > { %5500 = vmatprep.mubr.msk.f32.mxu0 %vm815_vm3, %v8605_v25  ;;  %v2540_v36 = vld [vmem:[#allocation2 + $0xd8] sm:$0xff]  ;;  %v2543_v53 = vld [vmem:[#allocation2 + $0xf0] sm:$0xff]  ;;  %v2627_v7 = vmax.f32 %v2531_v42, %v2534_v21  ;;  %v2591_v44 = vld [vmem:[#allocation2 + $0x108] sm:$0xff]  ;;  %v2630_v62 = vmax.f32 %v2534_v21, %v2537_v10  ;;  %2481 = vst.msk [vmem:[#allocation2 + $0x32] sm:$0xff] %vm815_vm3, %v2449_v8  ;;  %5564 = vmatprep.mubr.msk.f32.mxu1 %vm815_vm3, %v2449_v8 }
 0x1bb   : > { %v2633_v54 = vmax.f32 %v2537_v10, %v2540_v36  ;;  %v2636_v17 = vmax.f32 %v2540_v36, %v2543_v53  ;;  %v7708_v22 = vld [vmem:[#allocation2 + $0x120] sm:$0xff]  ;;  %v2450_v20 = vmax.f32 %v2386_v34, %v2418_v38  ;;  %v2639_v32 = vmax.f32 %v2543_v53, %v2591_v44  ;;  %v2197_v1 = vld [vmem:[#allocation3 + $0x30] sm:$0xff]  ;;  %v2202_v43 = vld [vmem:[#allocation3 + $0x68] sm:$0xff]  ;;  %2165 = vst.msk [vmem:[#allocation3 + $0xa0] sm:$0xf] %vm818_vm2, %v2117_v26 }
 0x1bc   : > { %v2419_v49 = vld [vmem:[#allocation3 + $0x1c] sm:$0xff]  ;;  %v2723_v61 = vmax.f32 %v2627_v7, %v2537_v10  ;;  %v1645_v35 = vld [vmem:[#allocation3 + $0x154] sm:$0xff]  ;;  %v2726_v50 = vmax.f32 %v2630_v62, %v2540_v36  ;;  %v6028_v52 = vld [vmem:[%s8523_s3 + $0x6] sm:$0x3] }
 0x1bd   : > { %v2451_v59 = vmax.f32 %v2387_v11, %v2419_v49  ;;  %v2228_v30 = vld [vmem:[#allocation3 + $0x21] sm:$0xff]  ;;  %v8606_v31 = vld [vmem:[#allocation27_spill] sm:$0xff]  ;;  %v2729_v39 = vmax.f32 %v2633_v54, %v2543_v53  ;;  %v7714_v15 = vmax.f32 %v2636_v17, %v2591_v44  ;;  %2482 = vst.msk [vmem:[#allocation2 + $0x3a] sm:$0xff] %vm815_vm3, %v2450_v20  ;;  %5565 = vmatmul.mubr.msk.f32.vlgmr.msra.gmra.mrb[16].mxu1 %vm815_vm3, %v2450_v20  ;;  %v2200_v57 = vld [vmem:[#allocation3 + $0x50] sm:$0xff] }
 0x1be   : > { %5501 = vmatmul.mubr.msk.f32.gmra.mrb[56].mxu0 %vm815_vm3, %v8606_v31  ;;  %v2198_v37 = vld [vmem:[#allocation3 + $0x38] sm:$0xff]  ;;  %v2199_v23 = vld [vmem:[#allocation3 + $0x48] sm:$0xff]  ;;  %v2204_v19 = vld [vmem:[#allocation3 + $0x80] sm:$0xff]  ;;  %v2260_v60 = vmax.f32 %v7704_v45, %v2228_v30  ;;  %v7720_v5 = vmax.f32 %v2639_v32, %v7708_v22  ;;  %v2819_v13 = vmax.f32 %v2723_v61, %v2540_v36  ;;  %5613 = vmatpush3.msk.msra.mxu1 %vm3380_vm4, %v6028_v52 }
 0x1bf   : > { %5567 = vmatprep.mubr.msk.f32.mxu1 %vm815_vm3, %v2451_v59  ;;  %v2229_v18 = vld [vmem:[#allocation3 + $0x31] sm:$0xff]  ;;  %v2230_v3 = vld [vmem:[#allocation3 + $0x39] sm:$0xff]  ;;  %v2231_v2 = vld [vmem:[#allocation3 + $0x49] sm:$0xff]  ;;  %2483 = vst.msk [vmem:[#allocation2 + $0x4a] sm:$0xff] %vm815_vm3, %v2451_v59  ;;  %v1677_v47 = vmax.f32 %v1613_v51, %v1645_v35  ;;  %v2822_v40 = vmax.f32 %v2726_v50, %v2543_v53  ;;  %v2825_v24 = vmax.f32 %v2729_v39, %v2591_v44 }
 0x1c0   : > { %v2828_v38 = vmax.f32 %v7714_v15, %v7708_v22  ;;  %v2232_v29 = vld [vmem:[#allocation3 + $0x51] sm:$0xff]  ;;  %v2234_v46 = vld [vmem:[#allocation3 + $0x69] sm:$0xff]  ;;  %v2236_v45 = vld [vmem:[#allocation3 + $0x81] sm:$0xff]  ;;  %v2261_v25 = vmax.f32 %v2197_v1, %v2229_v18  ;;  %v2915_v33 = vmax.f32 %v2819_v13, %v2543_v53  ;;  %v2262_v42 = vmax.f32 %v2198_v37, %v2230_v3 }
 0x1c1   : > { %v8607_v56 = vld [vmem:[#allocation28_spill] sm:$0xff]  ;;  %v2263_v21 = vmax.f32 %v2199_v23, %v2231_v2  ;;  %v8608_v34 = vld [vmem:[#allocation31_spill] sm:$0xff]  ;;  %1709 = vst.msk [vmem:[#allocation2 + $0x182] sm:$0xff] %vm815_vm3, %v1677_v47  ;;  %v2918_v6 = vmax.f32 %v2822_v40, %v2591_v44  ;;  %v2921_v10 = vmax.f32 %v2825_v24, %v7708_v22  ;;  %v2264_v36 = vmax.f32 %v2200_v57, %v2232_v29  ;;  %v2295_v51 = vld [vmem:[#allocation3 + $0x4a] sm:$0xff] }
 0x1c2   : > { %5503 = vmatprep.mubr.msk.f32.mxu0 %vm815_vm3, %v8607_v56  ;;  %v2292_v8 = vld [vmem:[#allocation3 + $0x22] sm:$0xff]  ;;  %v2266_v7 = vmax.f32 %v2202_v43, %v2234_v46  ;;  %v2293_v11 = vld [vmem:[#allocation3 + $0x32] sm:$0xff]  ;;  %v2294_v28 = vld [vmem:[#allocation3 + $0x3a] sm:$0xff]  ;;  %2963 = vst.msk [vmem:[#allocation3 + $0x90] sm:$0xff] %vm815_vm3, %v2915_v33  ;;  %v2268_v53 = vmax.f32 %v2204_v19, %v2236_v45 }
 0x1c3   : > { %5504 = vmatmul.mubr.msk.f32.gmra.mrb[58].mxu0 %vm815_vm3, %v8608_v34  ;;  %v2296_v62 = vld [vmem:[#allocation3 + $0x52] sm:$0xff]  ;;  %v2298_v54 = vld [vmem:[#allocation3 + $0x6a] sm:$0xff]  ;;  %v2300_v17 = vld [vmem:[#allocation3 + $0x82] sm:$0xff]  ;;  %v2324_v20 = vmax.f32 %v2260_v60, %v2292_v8  ;;  %v2325_v49 = vmax.f32 %v2261_v25, %v2293_v11  ;;  %v2326_v32 = vmax.f32 %v2262_v42, %v2294_v28  ;;  %2966 = vst.msk [vmem:[#allocation3 + $0xa8] sm:$0xff] %vm815_vm3, %v2918_v6 }
 0x1c4   : > { %5506 = vmatprep.mubr.msk.f32.mxu0 %vm815_vm3, %v1677_v47  ;;  %2969 = vst.msk [vmem:[#allocation3 + $0xc0] sm:$0xff] %vm815_vm3, %v2921_v10  ;;  %v2327_v44 = vmax.f32 %v2263_v21, %v2295_v51  ;;  %v2328_v61 = vmax.f32 %v2264_v36, %v2296_v62  ;;  %v2330_v59 = vmax.f32 %v2266_v7, %v2298_v54  ;;  %v2356_v1 = vld [vmem:[#allocation3 + $0x23] sm:$0xff]  ;;  %v2357_v43 = vld [vmem:[#allocation3 + $0x33] sm:$0xff]  ;;  %v2358_v30 = vld [vmem:[#allocation3 + $0x3b] sm:$0xff] }
 0x1c5   : > { %v1784_v31 = vld [vmem:[#allocation2 + $0xd0] sm:$0xf]  ;;  %v2206_v26 = vld [vmem:[#allocation3 + $0x98] sm:$0xff]  ;;  %v2332_v35 = vmax.f32 %v2268_v53, %v2300_v17  ;;  %v2388_v23 = vmax.f32 %v2324_v20, %v2356_v1  ;;  %v2389_v57 = vmax.f32 %v2325_v49, %v2357_v43  ;;  %v2390_v19 = vmax.f32 %v2326_v32, %v2358_v30  ;;  %v2364_v13 = vld [vmem:[#allocation3 + $0x83] sm:$0xff] }
 0x1c6   : > { %v2359_v50 = vld [vmem:[#allocation3 + $0x4b] sm:$0xff]  ;;  %v2360_v39 = vld [vmem:[#allocation3 + $0x53] sm:$0xff]  ;;  %v2422_v24 = vld [vmem:[#allocation3 + $0x3c] sm:$0xff] }
 0x1c7   : > { %v2362_v37 = vld [vmem:[#allocation3 + $0x6b] sm:$0xff]  ;;  %v1736_v60 = vld [vmem:[#allocation2 + $0xb8] sm:$0xf]  ;;  %v2391_v52 = vmax.f32 %v2327_v44, %v2359_v50  ;;  %v2392_v18 = vmax.f32 %v2328_v61, %v2360_v39  ;;  %v2396_v40 = vmax.f32 %v2332_v35, %v2364_v13  ;;  %v2454_v42 = vmax.f32 %v2390_v19, %v2422_v24  ;;  %v1976_v53 = vld [vmem:[#allocation2 + $0x100] sm:$0xf] }
 0x1c8   : > { %v2420_v3 = vld [vmem:[#allocation3 + $0x24] sm:$0xff]  ;;  %v2421_v2 = vld [vmem:[#allocation3 + $0x34] sm:$0xff]  ;;  %v2394_v47 = vmax.f32 %v2330_v59, %v2362_v37  ;;  %v2423_v29 = vld [vmem:[#allocation3 + $0x4c] sm:$0xff]  ;;  %v1832_v7 = vmax.f32 %v1736_v60, %v1784_v31 }
 0x1c9   : > { %v2424_v46 = vld [vmem:[#allocation3 + $0x54] sm:$0xff]  ;;  %v2452_v45 = vmax.f32 %v2388_v23, %v2420_v3  ;;  %v2453_v25 = vmax.f32 %v2389_v57, %v2421_v2  ;;  %v2426_v56 = vld [vmem:[#allocation3 + $0x6c] sm:$0xff]  ;;  %v2428_v33 = vld [vmem:[#allocation3 + $0x84] sm:$0xff]  ;;  %v2455_v21 = vmax.f32 %v2391_v52, %v2423_v29  ;;  %2486 = vst.msk [vmem:[#allocation2 + $0x6a] sm:$0xff] %vm815_vm3, %v2454_v42 }
 0x1ca   : > { %v2456_v8 = vmax.f32 %v2392_v18, %v2424_v46  ;;  %v2238_v34 = vld [vmem:[#allocation3 + $0x99] sm:$0xff]  ;;  %v7741_v6 = vmax.f32 %v2394_v47, %v2426_v56  ;;  %v7743_v10 = vmax.f32 %v2396_v40, %v2428_v33  ;;  %v2518_v11 = vld [vmem:[#allocation2 + $0x28] sm:$0xf]  ;;  %v7759_v37 = vld [vmem:[#allocation2 + $0xd0] sm:$0xf] }
 0x1cb   : > { %2484 = vst.msk [vmem:[#allocation2 + $0x52] sm:$0xff] %vm815_vm3, %v2452_v45  ;;  %2485 = vst.msk [vmem:[#allocation2 + $0x62] sm:$0xff] %vm815_vm3, %v2453_v25  ;;  %5568 = vmatmul.mubr.msk.f32.gmra.mrb[18].mxu1 %vm815_vm3, %v2452_v45  ;;  %v2270_v36 = vmax.f32 %v2206_v26, %v2238_v34  ;;  %v2302_v28 = vld [vmem:[#allocation3 + $0x9a] sm:$0xff]  ;;  %v1880_v51 = vld [vmem:[#allocation2 + $0xe8] sm:$0xf] }
 0x1cc   : > { %2487 = vst.msk [vmem:[#allocation2 + $0x7a] sm:$0xff] %vm815_vm3, %v2455_v21  ;;  %2488 = vst.msk [vmem:[#allocation2 + $0x82] sm:$0xff] %vm815_vm3, %v2456_v8  ;;  %5570 = vmatprep.mubr.msk.f32.mxu1 %vm815_vm3, %v2453_v25  ;;  %v2520_v62 = vld [vmem:[#allocation2 + $0x38] sm:$0xff]  ;;  %v2566_v54 = vld [vmem:[#allocation2 + $0x40] sm:$0xf]  ;;  %v1928_v20 = vmax.f32 %v1832_v7, %v1880_v51 }
 0x1cd   : > { %2490 = vst.msk [vmem:[#allocation2 + $0x9a] sm:$0xff] %vm815_vm3, %v7741_v6  ;;  %2492 = vst.msk [vmem:[#allocation2 + $0xb2] sm:$0xff] %vm815_vm3, %v7743_v10  ;;  %v2334_v17 = vmax.f32 %v2270_v36, %v2302_v28  ;;  %v1422_v49 = vld [vmem:[#allocation3 + $0x158] sm:$0xff]  ;;  %v1423_v30 = vld [vmem:[#allocation3 + $0x168] sm:$0xff]  ;;  %v2614_v60 = vmax.f32 %v2518_v11, %v2566_v54 }
 0x1ce   : > { %v2366_v32 = vld [vmem:[#allocation3 + $0x9b] sm:$0xff]  ;;  %v2024_v1 = vmax.f32 %v1928_v20, %v1976_v53  ;;  %v1455_v31 = vld [vmem:[#allocation3 + $0x169] sm:$0xff] }
 0x1cf   : > { %v2072_v44 = vld [vmem:[#allocation2 + $0x118] sm:$0xf]  ;;  %5571 = vmatmul.mubr.msk.f32.gmra.mrb[20].mxu1 %vm815_vm3, %v2454_v42  ;;  %v2398_v59 = vmax.f32 %v2334_v17, %v2366_v32  ;;  %v6029_v26 = vld [vmem:[#allocation2 + $0x20] sm:$0xff]  ;;  %v8609_v50 = vld [vmem:[#allocation13_spill] sm:$0xff]  ;;  %v1487_v19 = vmax.f32 %v1423_v30, %v1455_v31 }
 0x1d0   : > { %v1454_v61 = vld [vmem:[#allocation3 + $0x159] sm:$0xff]  ;;  %v2613_v35 = vmax.f32 %v6029_v26, %v2520_v62  ;;  %v2706_v39 = vmax.f32 %v8609_v50, %v2520_v62  ;;  %5573 = vmatprep.mubr.msk.f32.mxu1 %vm815_vm3, %v2455_v21  ;;  %v2120_v18 = vmax.f32 %v2024_v1, %v2072_v44  ;;  %v1519_v47 = vld [vmem:[#allocation3 + $0x16a] sm:$0xff] }
 0x1d1   : > { %v1486_v43 = vmax.f32 %v1422_v49, %v1454_v61  ;;  %v2430_v23 = vld [vmem:[#allocation3 + $0x9c] sm:$0xff]  ;;  %v1583_v40 = vld [vmem:[#allocation3 + $0x16b] sm:$0xff]  ;;  %v1551_v45 = vmax.f32 %v1487_v19, %v1519_v47 }
 0x1d2   : > { %v1518_v57 = vld [vmem:[#allocation3 + $0x15a] sm:$0xff]  ;;  %v7761_v52 = vmax.f32 %v2398_v59, %v2430_v23  ;;  %v2523_v24 = vld [vmem:[#allocation2 + $0x50] sm:$0xff]  ;;  %v2571_v25 = vld [vmem:[#allocation2 + $0x68] sm:$0xff]  ;;  %2168 = vst.msk [vmem:[#allocation3 + $0xb8] sm:$0xf] %vm818_vm2, %v2120_v18 }
 0x1d3   : > { %v2521_v13 = vld [vmem:[#allocation2 + $0x40] sm:$0xf]  ;;  %v1550_v3 = vmax.f32 %v1486_v43, %v1518_v57  ;;  %v2662_v29 = vld [vmem:[#allocation2 + $0x58] sm:$0xf]  ;;  %v2616_v56 = vmax.f32 %v2520_v62, %v2523_v24  ;;  %v2709_v42 = vmax.f32 %v2613_v35, %v2523_v24  ;;  %v2758_v34 = vld [vmem:[#allocation2 + $0x70] sm:$0xf]  ;;  %v2802_v36 = vmax.f32 %v2706_v39, %v2523_v24  ;;  %5574 = vmatmul.mubr.msk.f32.gmra.mrb[22].mxu1 %vm815_vm3, %v2456_v8 }
 0x1d4   : > { %v1582_v2 = vld [vmem:[#allocation3 + $0x15b] sm:$0xff]  ;;  %v2710_v21 = vmax.f32 %v2614_v60, %v2662_v29  ;;  %2494 = vst.msk [vmem:[#allocation2 + $0xca] sm:$0xff] %vm815_vm3, %v7761_v52  ;;  %v2619_v7 = vmax.f32 %v2523_v24, %v2571_v25  ;;  %v2854_v11 = vld [vmem:[#allocation2 + $0x88] sm:$0xf]  ;;  %5576 = vmatprep.mubr.msk.f32.mxu1 %vm815_vm3, %v7634_v55  ;;  %v1615_v62 = vmax.f32 %v1551_v45, %v1583_v40  ;;  %v1647_v54 = vld [vmem:[#allocation3 + $0x16c] sm:$0xff] }
 0x1d5   : > { %v2569_v46 = vld [vmem:[#allocation2 + $0x58] sm:$0xf]  ;;  %v2667_v33 = vld [vmem:[#allocation2 + $0x80] sm:$0xff]  ;;  %v1614_v51 = vmax.f32 %v1550_v3, %v1582_v2  ;;  %v7769_v17 = vld [vmem:[#allocation2 + $0x190] sm:$0xf]  ;;  %v2712_v20 = vmax.f32 %v2616_v56, %v2571_v25  ;;  %v2805_v8 = vmax.f32 %v2709_v42, %v2571_v25  ;;  %v2898_v44 = vmax.f32 %v2802_v36, %v2571_v25 }
 0x1d6   : > { %v2617_v28 = vmax.f32 %v2521_v13, %v2569_v46  ;;  %v1646_v53 = vld [vmem:[#allocation3 + $0x15c] sm:$0xff]  ;;  %v2806_v32 = vmax.f32 %v2710_v21, %v2758_v34  ;;  %v2665_v61 = vld [vmem:[#allocation2 + $0x70] sm:$0xf]  ;;  %v2761_v59 = vld [vmem:[#allocation2 + $0x88] sm:$0xf]  ;;  %v2715_v1 = vmax.f32 %v2619_v7, %v2667_v33  ;;  %v1679_v39 = vmax.f32 %v1615_v62, %v1647_v54 }
 0x1d7   : > { %v2763_v49 = vld [vmem:[#allocation2 + $0x98] sm:$0xff]  ;;  %v2572_v31 = vld [vmem:[#allocation2 + $0x70] sm:$0xf]  ;;  %v2668_v26 = vld [vmem:[#allocation2 + $0x88] sm:$0xf]  ;;  %v1678_v50 = vmax.f32 %v1614_v51, %v1646_v53  ;;  %v2808_v23 = vmax.f32 %v2712_v20, %v2667_v33  ;;  %v2901_v19 = vmax.f32 %v2805_v8, %v2667_v33  ;;  %2946 = vst.msk [vmem:[#allocation3 + $0x8] sm:$0xff] %vm815_vm3, %v2898_v44  ;;  %5577 = vmatmul.mubr.msk.f32.gmra.mrb[24].mxu1 %vm815_vm3, %v7741_v6 }
 0x1d8   : > { %v2713_v43 = vmax.f32 %v2617_v28, %v2665_v61  ;;  %v2524_v30 = vld [vmem:[#allocation2 + $0x58] sm:$0xf]  ;;  %v1787_v35 = vld [vmem:[#allocation2 + $0xe8] sm:$0xf]  ;;  %v2208_v55 = vld [vmem:[#allocation3 + $0xb0] sm:$0xff]  ;;  %v2902_v60 = vmax.f32 %v2806_v32, %v2854_v11  ;;  %v2811_v2 = vmax.f32 %v2715_v1, %v2763_v49  ;;  %5579 = vmatprep.mubr.msk.f32.mxu1 %vm815_vm3, %v7636_v16  ;;  %1711 = vst.msk [vmem:[#allocation2 + $0x19a] sm:$0xff] %vm815_vm3, %v1679_v39 }
 0x1d9   : > { %v2859_v57 = vld [vmem:[#allocation2 + $0xb0] sm:$0xff]  ;;  %v2857_v13 = vld [vmem:[#allocation2 + $0xa0] sm:$0xf]  ;;  %v2620_v18 = vmax.f32 %v2524_v30, %v2572_v31  ;;  %v2575_v24 = vld [vmem:[#allocation2 + $0x88] sm:$0xf]  ;;  %1710 = vst.msk [vmem:[#allocation2 + $0x18a] sm:$0xff] %vm815_vm3, %v1678_v50  ;;  %5507 = vmatmul.mubr.msk.f32.gmra.mrb[60].mxu0 %vm815_vm3, %v1678_v50  ;;  %v2904_v45 = vmax.f32 %v2808_v23, %v2763_v49  ;;  %v1835_v62 = vmax.f32 %v7759_v37, %v1787_v35 }
 0x1da   : > { %v2764_v3 = vld [vmem:[#allocation2 + $0xa0] sm:$0xf]  ;;  %v2809_v47 = vmax.f32 %v2713_v43, %v2761_v59  ;;  %v2527_v40 = vld [vmem:[#allocation2 + $0x70] sm:$0xf]  ;;  %v1102_v46 = vld [vmem:[#allocation2 + $0x1a8] sm:$0xf]  ;;  %5509 = vmatprep.mubr.msk.f32.mxu0 %vm815_vm3, %v1679_v39  ;;  %v2907_v42 = vmax.f32 %v2811_v2, %v2859_v57 }
 0x1db   : > { %v2671_v29 = vld [vmem:[#allocation2 + $0xa0] sm:$0xf]  ;;  %2950 = vst.msk [vmem:[#allocation3 + $0x28] sm:$0xf] %vm818_vm2, %v2902_v60  ;;  %v2716_v6 = vmax.f32 %v2620_v18, %v2668_v26  ;;  %v2623_v25 = vmax.f32 %v2527_v40, %v2575_v24  ;;  %v2860_v34 = vld [vmem:[#allocation2 + $0xb8] sm:$0xf]  ;;  %5580 = vmatmul.mubr.msk.f32.gmra.mrb[26].mxu1 %vm815_vm3, %v7743_v10 }
 0x1dc   : > { %2949 = vst.msk [vmem:[#allocation3 + $0x20] sm:$0xff] %vm815_vm3, %v2901_v19  ;;  %v7781_v56 = vld [vmem:[#allocation2 + $0x180] sm:$0xff]  ;;  %v2905_v21 = vmax.f32 %v2809_v47, %v2857_v13  ;;  %v2767_v36 = vld [vmem:[#allocation2 + $0xb8] sm:$0xf]  ;;  %2952 = vst.msk [vmem:[#allocation3 + $0x38] sm:$0xff] %vm815_vm3, %v2904_v45  ;;  %5582 = vmatprep.mubr.msk.f32.mxu1 %vm815_vm3, %v7642_v9 }
 0x1dd   : > { %v8610_v16 = vld [vmem:[#allocation32_spill] sm:$0xff]  ;;  %v2240_v7 = vld [vmem:[#allocation3 + $0xb1] sm:$0xff]  ;;  %v2812_v11 = vmax.f32 %v2716_v6, %v2764_v3  ;;  %v2719_v28 = vmax.f32 %v2623_v25, %v2671_v29  ;;  %v7789_v53 = vld [vmem:[#allocation2 + $0x168] sm:$0xff]  ;;  %2955 = vst.msk [vmem:[#allocation3 + $0x50] sm:$0xff] %vm815_vm3, %v2907_v42  ;;  %v1846_v3 = vmax.f32 %v7441_v48, %v7448_v58 }
 0x1de   : > { %v1054_v33 = vmax.f32 %v8610_v16, %v7769_v17  ;;  %v2272_v51 = vmax.f32 %v2208_v55, %v2240_v7  ;;  %2953 = vst.msk [vmem:[#allocation3 + $0x40] sm:$0xf] %vm818_vm2, %v2905_v21  ;;  %v2863_v54 = vld [vmem:[#allocation2 + $0xd0] sm:$0xf]  ;;  %v1854_v20 = vmax.f32 %v7789_v53, %v7781_v56  ;;  %v1883_v49 = vld [vmem:[#allocation2 + $0x100] sm:$0xf] }
 0x1df   : > { %v2304_v17 = vld [vmem:[#allocation3 + $0xb2] sm:$0xff]  ;;  %v2908_v32 = vmax.f32 %v2812_v11, %v2860_v34  ;;  %v2815_v10 = vmax.f32 %v2719_v28, %v2767_v36  ;;  %v1931_v61 = vmax.f32 %v1835_v62, %v1883_v49  ;;  %v1790_v35 = vld [vmem:[#allocation2 + $0x100] sm:$0xf]  ;;  %5583 = vmatmul.mubr.msk.f32.gmra.mrb[28].mxu1 %vm815_vm3, %v7761_v52  ;;  %v1742_v60 = vld [vmem:[#allocation2 + $0xe8] sm:$0xf] }
 0x1e0   : > { %v1150_v8 = vmax.f32 %v1054_v33, %v1102_v46  ;;  %v2336_v44 = vmax.f32 %v2272_v51, %v2304_v17  ;;  %v1979_v59 = vld [vmem:[#allocation2 + $0x118] sm:$0xf]  ;;  %v7798_v1 = vld [vmem:[#allocation2 + $0x1b0] sm:$0xff]  ;;  %v1199_v9 = vld [vmem:[#allocation2 + $0x1c0] sm:$0xf]  ;;  %5585 = vmatprep.mubr.msk.f32.mxu1 %vm815_vm3, %v7644_v41  ;;  %v1838_v29 = vmax.f32 %v1742_v60, %v1790_v35 }
 0x1e1   : > { %v2368_v37 = vld [vmem:[#allocation3 + $0xb3] sm:$0xff]  ;;  %2956 = vst.msk [vmem:[#allocation3 + $0x58] sm:$0xf] %vm818_vm2, %v2908_v32  ;;  %v2911_v30 = vmax.f32 %v2815_v10, %v2863_v54  ;;  %v2027_v55 = vmax.f32 %v1931_v61, %v1979_v59  ;;  %v2530_v52 = vld [vmem:[#allocation2 + $0x88] sm:$0xf] }
 0x1e2   : > { %v2075_v43 = vld [vmem:[#allocation2 + $0x130] sm:$0xf]  ;;  %v2400_v31 = vmax.f32 %v2336_v44, %v2368_v37  ;;  %v7801_v26 = vld [vmem:[#allocation2 + $0x198] sm:$0xff]  ;;  %v1247_v23 = vmax.f32 %v1150_v8, %v1199_v9  ;;  %v2578_v2 = vld [vmem:[#allocation2 + $0xa0] sm:$0xf] }
 0x1e3   : > { %v2432_v50 = vld [vmem:[#allocation3 + $0xb4] sm:$0xff]  ;;  %v1950_v39 = vmax.f32 %v1854_v20, %v7801_v26  ;;  %2959 = vst.msk [vmem:[#allocation3 + $0x70] sm:$0xf] %vm818_vm2, %v2911_v30  ;;  %v2123_v18 = vmax.f32 %v2027_v55, %v2075_v43  ;;  %v1982_v45 = vld [vmem:[#allocation2 + $0x130] sm:$0xf]  ;;  %v7820_v25 = vld [vmem:[#allocation2 + $0x188] sm:$0xff]  ;;  %v2626_v34 = vmax.f32 %v2530_v52, %v2578_v2 }
 0x1e4   : > { %v1296_v57 = vld [vmem:[#allocation2 + $0x1d8] sm:$0xf]  ;;  %v2464_v13 = vmax.f32 %v2400_v31, %v2432_v50  ;;  %v7814_v24 = vld [vmem:[#allocation2 + $0x170] sm:$0xff]  ;;  %v6030_v16 = vld [vmem:[#allocation2 + $0x1c8] sm:$0xff] }
 0x1e5   : > { %v7806_v19 = vld [vmem:[#allocation2 + $0x158] sm:$0xff]  ;;  %v2046_v47 = vmax.f32 %v1950_v39, %v7798_v1  ;;  %v1344_v40 = vmax.f32 %v1247_v23, %v1296_v57  ;;  %2171 = vst.msk [vmem:[#allocation3 + $0xd0] sm:$0xf] %vm818_vm2, %v2123_v18  ;;  %v1745_v42 = vld [vmem:[#allocation2 + $0x100] sm:$0xf]  ;;  %v2210_v8 = vld [vmem:[#allocation3 + $0xc8] sm:$0xff] }
 0x1e6   : > { %2496 = vst.msk [vmem:[#allocation2 + $0xe2] sm:$0xff] %vm815_vm3, %v2464_v13  ;;  %v1793_v41 = vld [vmem:[#allocation2 + $0x118] sm:$0xf]  ;;  %5586 = vmatmul.mubr.msk.f32.gmra.mrb[30].mxu1 %vm815_vm3, %v2464_v13  ;;  %v1942_v6 = vmax.f32 %v1846_v3, %v7806_v19  ;;  %v2770_v36 = vld [vmem:[#allocation2 + $0xd0] sm:$0xf] }
 0x1e7   : > { %v1886_v46 = vld [vmem:[#allocation2 + $0x118] sm:$0xf]  ;;  %v2142_v33 = vmax.f32 %v2046_v47, %v6030_v16  ;;  %1392 = vst.msk [vmem:[#allocation3 + $0x178] sm:$0xf] %vm818_vm2, %v1344_v40  ;;  %5588 = vmatprep.mubr.msk.f32.mxu1 %vm815_vm3, %v7646_v27  ;;  %v2078_v7 = vld [vmem:[#allocation2 + $0x148] sm:$0xf]  ;;  %v1841_v28 = vmax.f32 %v1745_v42, %v1793_v41  ;;  %v1849_v41 = vmax.f32 %v7448_v58, %v7806_v19 }
 0x1e8   : > { %v2674_v48 = vld [vmem:[#allocation2 + $0xb8] sm:$0xf]  ;;  %v1934_v21 = vmax.f32 %v1838_v29, %v1886_v46  ;;  %v1796_v11 = vld [vmem:[#allocation2 + $0x130] sm:$0xf]  ;;  %v2038_v51 = vmax.f32 %v1942_v6, %v7814_v24  ;;  %v1985_v20 = vld [vmem:[#allocation2 + $0x148] sm:$0xf]  ;;  %v1852_v46 = vmax.f32 %v7806_v19, %v7814_v24 }
 0x1e9   : > { %2190 = vst.msk [vmem:[#allocation3 + $0x168] sm:$0xff] %vm815_vm3, %v2142_v33  ;;  %v1748_v62 = vld [vmem:[#allocation2 + $0x118] sm:$0xf]  ;;  %v1889_v17 = vld [vmem:[#allocation2 + $0x130] sm:$0xf]  ;;  %v2722_v49 = vmax.f32 %v2626_v34, %v2674_v48  ;;  %v2212_v42 = vld [vmem:[#allocation3 + $0xe0] sm:$0xff]  ;;  %v7845_v19 = vmax.f32 %v1849_v41, %v7814_v24 }
 0x1ea   : > { %v2030_v54 = vmax.f32 %v1934_v21, %v1982_v45  ;;  %v1937_v32 = vmax.f32 %v1841_v28, %v1889_v17  ;;  %v1844_v10 = vmax.f32 %v1748_v62, %v1796_v11  ;;  %v2134_v44 = vmax.f32 %v2038_v51, %v7820_v25  ;;  %v2081_v61 = vld [vmem:[#allocation2 + $0x160] sm:$0xf]  ;;  %v1892_v59 = vld [vmem:[#allocation2 + $0x148] sm:$0xf]  ;;  %v1424_v30 = vld [vmem:[#allocation3 + $0x170] sm:$0xff] }
 0x1eb   : > { %v1988_v37 = vld [vmem:[#allocation2 + $0x160] sm:$0xf]  ;;  %v2818_v43 = vmax.f32 %v2722_v49, %v2770_v36  ;;  %v1799_v35 = vld [vmem:[#allocation2 + $0x148] sm:$0xf]  ;;  %v7829_v9 = vld [vmem:[#allocation2 + $0x10] sm:$0xf] }
 0x1ec   : > { %v2126_v27 = vmax.f32 %v2030_v54, %v2078_v7  ;;  %v2033_v31 = vmax.f32 %v1937_v32, %v1985_v20  ;;  %v1940_v55 = vmax.f32 %v1844_v10, %v1892_v59  ;;  %2182 = vst.msk [vmem:[#allocation3 + $0x128] sm:$0xff] %vm815_vm3, %v2134_v44  ;;  %v7831_v50 = vld [vmem:[#allocation2 + $0x28] sm:$0xf]  ;;  %v2084_v57 = vld [vmem:[#allocation2 + $0x178] sm:$0xf]  ;;  %v2434_v54 = vld [vmem:[#allocation3 + $0xcc] sm:$0xff] }
 0x1ed   : > { %v2866_v39 = vld [vmem:[#allocation2 + $0xe8] sm:$0xf]  ;;  %v2533_v18 = vld [vmem:[#allocation2 + $0xa0] sm:$0xf]  ;;  %v2581_v3 = vld [vmem:[#allocation2 + $0xb8] sm:$0xf]  ;;  %v2611_v51 = vmax.f32 %v7829_v9, %v7831_v50 }
 0x1ee   : > { %v2242_v23 = vld [vmem:[#allocation3 + $0xc9] sm:$0xff]  ;;  %2174 = vst.msk [vmem:[#allocation3 + $0xe8] sm:$0xf] %vm818_vm2, %v2126_v27  ;;  %v2914_v60 = vmax.f32 %v2818_v43, %v2866_v39  ;;  %v2129_v2 = vmax.f32 %v2033_v31, %v2081_v61  ;;  %v2036_v47 = vmax.f32 %v1940_v55, %v1988_v37  ;;  %v1456_v29 = vld [vmem:[#allocation3 + $0x171] sm:$0xff]  ;;  %v2629_v58 = vmax.f32 %v2533_v18, %v2581_v3  ;;  %v1895_v28 = vld [vmem:[#allocation2 + $0x160] sm:$0xf] }
 0x1ef   : > { %v2274_v13 = vmax.f32 %v2210_v8, %v2242_v23  ;;  %v2677_v52 = vld [vmem:[#allocation2 + $0xd0] sm:$0xf]  ;;  %v1488_v48 = vmax.f32 %v1424_v30, %v1456_v29  ;;  %v7839_v16 = vld [vmem:[#allocation2 + $0x178] sm:$0xf]  ;;  %v7849_v17 = vld [vmem:[#allocation2 + $0xe8] sm:$0xf]  ;;  %v1855_v27 = vmax.f32 %v7814_v24, %v7820_v25  ;;  %v1845_v31 = vmax.f32 %v7439_v4, %v7443_v12 }
 0x1f0   : > { %v2306_v40 = vld [vmem:[#allocation3 + $0xca] sm:$0xff]  ;;  %2962 = vst.msk [vmem:[#allocation3 + $0x88] sm:$0xf] %vm818_vm2, %v2914_v60  ;;  %2177 = vst.msk [vmem:[#allocation3 + $0x100] sm:$0xf] %vm818_vm2, %v2129_v2  ;;  %v2132_v34 = vmax.f32 %v2036_v47, %v2084_v57  ;;  %v1520_v11 = vld [vmem:[#allocation3 + $0x172] sm:$0xff]  ;;  %v7852_v10 = vmax.f32 %v2629_v58, %v2677_v52  ;;  %v7861_v23 = vmax.f32 %v1852_v46, %v7820_v25 }
 0x1f1   : > { %v1751_v45 = vld [vmem:[#allocation2 + $0x130] sm:$0xf]  ;;  %v2338_v6 = vmax.f32 %v2274_v13, %v2306_v40  ;;  %v1552_v20 = vmax.f32 %v1488_v48, %v1520_v11  ;;  %v2536_v49 = vld [vmem:[#allocation2 + $0xb8] sm:$0xf]  ;;  %v1754_v37 = vld [vmem:[#allocation2 + $0x148] sm:$0xf]  ;;  %v2041_v3 = vmax.f32 %v7845_v19, %v7820_v25 }
 0x1f2   : > { %v7841_v33 = vld [vmem:[#allocation2 + $0x190] sm:$0xf]  ;;  %v1847_v36 = vmax.f32 %v1751_v45, %v1799_v35  ;;  %2180 = vst.msk [vmem:[#allocation3 + $0x118] sm:$0xf] %vm818_vm2, %v2132_v34  ;;  %v1991_v32 = vld [vmem:[#allocation2 + $0x178] sm:$0xf]  ;;  %v2821_v18 = vmax.f32 %v7852_v10, %v7849_v17 }
 0x1f3   : > { %v2584_v21 = vld [vmem:[#allocation2 + $0xd0] sm:$0xf]  ;;  %v1856_v61 = vmax.f32 %v7839_v16, %v7841_v33  ;;  %v2214_v59 = vld [vmem:[#allocation3 + $0xf8] sm:$0xff]  ;;  %v1802_v43 = vld [vmem:[#allocation2 + $0x160] sm:$0xf] }
 0x1f4   : > { %v2370_v7 = vld [vmem:[#allocation3 + $0xcb] sm:$0xff]  ;;  %v1943_v8 = vmax.f32 %v1847_v36, %v1895_v28  ;;  %v1584_v44 = vld [vmem:[#allocation3 + $0x173] sm:$0xff]  ;;  %v2632_v2 = vmax.f32 %v2536_v49, %v2584_v21  ;;  %v1850_v45 = vmax.f32 %v1754_v37, %v1802_v43  ;;  %v7875_v21 = vld [vmem:[#allocation2 + $0x160] sm:$0xf] }
 0x1f5   : > { %v2402_v62 = vmax.f32 %v2338_v6, %v2370_v7  ;;  %v2087_v30 = vld [vmem:[#allocation2 + $0x190] sm:$0xf]  ;;  %v1616_v55 = vmax.f32 %v1552_v20, %v1584_v44  ;;  %v1648_v39 = vld [vmem:[#allocation3 + $0x174] sm:$0xff]  ;;  %v2244_v57 = vld [vmem:[#allocation3 + $0xe1] sm:$0xff] }
 0x1f6   : > { %v2680_v60 = vld [vmem:[#allocation2 + $0xe8] sm:$0xf]  ;;  %v2039_v13 = vmax.f32 %v1943_v8, %v1991_v32  ;;  %v2276_v52 = vmax.f32 %v2212_v42, %v2244_v57  ;;  %v7867_v47 = vld [vmem:[#allocation2 + $0x178] sm:$0xf]  ;;  %v1893_v40 = vld [vmem:[#allocation2 + $0x150] sm:$0xff] }
 0x1f7   : > { %v2466_v35 = vmax.f32 %v2402_v62, %v2434_v54  ;;  %v1898_v4 = vld [vmem:[#allocation2 + $0x178] sm:$0xf]  ;;  %v1680_v29 = vmax.f32 %v1616_v55, %v1648_v39  ;;  %v2308_v41 = vld [vmem:[#allocation3 + $0xe2] sm:$0xff]  ;;  %v1941_v6 = vmax.f32 %v1845_v31, %v1893_v40  ;;  %v7871_v34 = vmax.f32 %v2632_v2, %v2680_v60  ;;  %v2216_v42 = vld [vmem:[#allocation3 + $0x110] sm:$0xff] }
 0x1f8   : > { %v2135_v46 = vmax.f32 %v2039_v13, %v2087_v30  ;;  %v2340_v48 = vmax.f32 %v2276_v52, %v2308_v41  ;;  %v2246_v36 = vld [vmem:[#allocation3 + $0xf9] sm:$0xff]  ;;  %v1848_v7 = vmax.f32 %v7443_v12, %v1893_v40  ;;  %v1851_v58 = vmax.f32 %v1893_v40, %v7789_v53  ;;  %v2372_v11 = vld [vmem:[#allocation3 + $0xe3] sm:$0xff]  ;;  %v7887_v20 = vld [vmem:[#allocation2 + $0x30] sm:$0xff] }
 0x1f9   : > { %2498 = vst.msk [vmem:[#allocation2 + $0xfa] sm:$0xff] %vm815_vm3, %v2466_v35  ;;  %5589 = vmatmul.mubr.msk.f32.gmra.mrb[0].mxu1 %vm815_vm3, %v2466_v35  ;;  %1712 = vst.msk [vmem:[#allocation2 + $0x1a2] sm:$0xff] %vm815_vm3, %v1680_v29  ;;  %5510 = vmatmul.mubr.msk.f32.gmra.mrb[62].mxu0 %vm815_vm3, %v1680_v29  ;;  %v2278_v28 = vmax.f32 %v2214_v59, %v2246_v36  ;;  %v7882_v62 = vmax.f32 %v1850_v45, %v1898_v4  ;;  %v8611_v12 = vld [vmem:[#allocation5_spill] sm:$0xff]  ;;  %v2310_v8 = vld [vmem:[#allocation3 + $0xfa] sm:$0xff] }
 0x1fa   : > { %5591 = vmatprep.mubr.msk.f32.mxu1 %vm815_vm3, %v7652_v14  ;;  %2183 = vst.msk [vmem:[#allocation3 + $0x130] sm:$0xf] %vm818_vm2, %v2135_v46  ;;  %v2037_v54 = vmax.f32 %v1941_v6, %v7789_v53  ;;  %v1853_v14 = vmax.f32 %v7875_v21, %v7867_v47  ;;  %5514 = vmatprep.mubr.msk.f32.mxu0 %vm815_vm3, %v8611_v12  ;;  %v7891_v32 = vld [vmem:[#allocation2 + $0xe8] sm:$0xf]  ;;  %v2248_v44 = vld [vmem:[#allocation3 + $0x111] sm:$0xff]  ;;  %v8612_v30 = vld [vmem:[#allocation12_spill] sm:$0xff] }
 0x1fb   : > { %v2404_v49 = vmax.f32 %v2340_v48, %v2372_v11  ;;  %v7893_v59 = vld [vmem:[#allocation2 + $0x190] sm:$0xf]  ;;  %v1944_v37 = vmax.f32 %v1848_v7, %v7789_v53  ;;  %v1947_v43 = vmax.f32 %v1851_v58, %v7781_v56  ;;  %v2705_v31 = vmax.f32 %v8612_v30, %v7887_v20  ;;  %v2436_v35 = vld [vmem:[#allocation3 + $0xe4] sm:$0xff]  ;;  %v6031_v52 = vld [vmem:[#allocation2 + $0x18] sm:$0xff] }
 0x1fc   : > { %v2342_v55 = vmax.f32 %v2278_v28, %v2310_v8  ;;  %v2280_v39 = vmax.f32 %v2216_v42, %v2248_v44  ;;  %v2133_v57 = vmax.f32 %v2037_v54, %v7781_v56  ;;  %v7900_v60 = vld [vmem:[#allocation2 + $0x48] sm:$0xff]  ;;  %v7902_v13 = vld [vmem:[#allocation2 + $0x60] sm:$0xff]  ;;  %v2612_v2 = vmax.f32 %v6031_v52, %v7887_v20  ;;  %v2312_v53 = vld [vmem:[#allocation3 + $0x112] sm:$0xff] }
 0x1fd   : > { %v2468_v47 = vmax.f32 %v2404_v49, %v2436_v35  ;;  %v2374_v4 = vld [vmem:[#allocation3 + $0xfb] sm:$0xff]  ;;  %v2040_v40 = vmax.f32 %v1944_v37, %v7781_v56  ;;  %v2043_v29 = vmax.f32 %v1947_v43, %v7801_v26  ;;  %v2801_v41 = vmax.f32 %v2705_v31, %v7900_v60  ;;  %v1901_v36 = vld [vmem:[#allocation2 + $0x190] sm:$0xf]  ;;  %v2218_v37 = vld [vmem:[#allocation3 + $0x128] sm:$0xff] }
 0x1fe   : > { %v2659_v46 = vld [vmem:[#allocation2 + $0x40] sm:$0xf]  ;;  %v2406_v6 = vmax.f32 %v2342_v55, %v2374_v4  ;;  %v2344_v48 = vmax.f32 %v2280_v39, %v2312_v53  ;;  %2181 = vst.msk [vmem:[#allocation3 + $0x120] sm:$0xff] %vm815_vm3, %v2133_v57  ;;  %v2755_v21 = vld [vmem:[#allocation2 + $0x58] sm:$0xf]  ;;  %v7915_v56 = vmax.f32 %v2612_v2, %v7900_v60  ;;  %v7939_v17 = vmax.f32 %v1853_v14, %v1901_v36  ;;  %v8615_v39 = vld [vmem:[#allocation6_spill] sm:$0xff] }
 0x1ff   : > { %v8613_v45 = vld [vmem:[#allocation4_spill] sm:$0xff]  ;;  %v2707_v42 = vmax.f32 %v2611_v51, %v2659_v46  ;;  %2500 = vst.msk [vmem:[#allocation2 + $0x112] sm:$0xff] %vm815_vm3, %v2468_v47  ;;  %v8614_v11 = vld [vmem:[#allocation7_spill] sm:$0xff]  ;;  %v7922_v54 = vld [vmem:[#allocation2 + $0xd0] sm:$0xf]  ;;  %5592 = vmatmul.mubr.msk.f32.gmra.mrb[2].mxu1 %vm815_vm3, %v2468_v47  ;;  %v2136_v9 = vmax.f32 %v2040_v40, %v7801_v26  ;;  %v2139_v50 = vmax.f32 %v2043_v29, %v7798_v1 }
 0x200   : > { %5515 = vmatmul.mubr.msk.f32.vlgmr.msra.gmra.mrb[32].mxu0 %vm815_vm3, %v8613_v45  ;;  %v2869_v7 = vld [vmem:[#allocation2 + $0x100] sm:$0xf]  ;;  %v2897_v51 = vmax.f32 %v2801_v41, %v7902_v13  ;;  %v2635_v8 = vmax.f32 %v7922_v54, %v7891_v32  ;;  %v2376_v44 = vld [vmem:[#allocation3 + $0x113] sm:$0xff]  ;;  %5594 = vmatprep.mubr.msk.f32.mxu1 %vm815_vm3, %v7654_v0  ;;  %v2042_v26 = vmax.f32 %v7882_v62, %v7893_v59  ;;  %v1904_v30 = vld [vmem:[#allocation2 + $0x1a8] sm:$0xf] }
 0x201   : > { %v7917_v58 = vld [vmem:[#allocation2 + $0x1c0] sm:$0xf]  ;;  %5517 = vmatprep.mubr.msk.f32.mxu0 %vm815_vm3, %v8614_v11  ;;  %v2917_v12 = vmax.f32 %v2821_v18, %v2869_v7  ;;  %v2851_v43 = vld [vmem:[#allocation2 + $0x70] sm:$0xf]  ;;  %v2096_v31 = vld [vmem:[#allocation2 + $0x1d8] sm:$0xf]  ;;  %v2408_v35 = vmax.f32 %v2344_v48, %v2376_v44  ;;  %v2803_v10 = vmax.f32 %v2707_v42, %v2755_v21  ;;  %v2804_v0 = vmax.f32 %v7915_v56, %v7902_v13 }
 0x202   : > { %v2438_v28 = vld [vmem:[#allocation3 + $0xfc] sm:$0xff]  ;;  %v2250_v55 = vld [vmem:[#allocation3 + $0x129] sm:$0xff]  ;;  %2184 = vst.msk [vmem:[#allocation3 + $0x138] sm:$0xff] %vm815_vm3, %v2136_v9  ;;  %2187 = vst.msk [vmem:[#allocation3 + $0x150] sm:$0xff] %vm815_vm3, %v2139_v50  ;;  %v1952_v62 = vmax.f32 %v1856_v61, %v1904_v30 }
 0x203   : > { %v2470_v49 = vmax.f32 %v2406_v6, %v2438_v28  ;;  %v1903_v1 = vld [vmem:[#allocation2 + $0x1a0] sm:$0xff]  ;;  %2945 = vst.msk [vmem:[#allocation3] sm:$0xff] %vm815_vm3, %v2897_v51  ;;  %v2440_v57 = vld [vmem:[#allocation3 + $0x114] sm:$0xff]  ;;  %v2282_v33 = vmax.f32 %v2218_v37, %v2250_v55  ;;  %v2090_v61 = vld [vmem:[#allocation2 + $0x1a8] sm:$0xf]  ;;  %v2899_v19 = vmax.f32 %v2803_v10, %v2851_v43 }
 0x204   : > { %2965 = vst.msk [vmem:[#allocation3 + $0xa0] sm:$0xf] %vm818_vm2, %v2917_v12  ;;  %v1951_v18 = vmax.f32 %v1855_v27, %v1903_v1  ;;  %v2044_v32 = vmax.f32 %v7861_v23, %v1903_v1  ;;  %v2137_v14 = vmax.f32 %v2041_v3, %v1903_v1  ;;  %v2776_v59 = vld [vmem:[#allocation2 + $0x100] sm:$0xf]  ;;  %5518 = vmatmul.mubr.msk.f32.gmra.mrb[34].mxu0 %vm815_vm3, %v8615_v39  ;;  %v7958_v52 = vld [vmem:[#allocation2 + $0x78] sm:$0xff]  ;;  %v8616_v27 = vld [vmem:[#allocation9_spill] sm:$0xff] }
 0x205   : > { %2502 = vst.msk [vmem:[#allocation2 + $0x12a] sm:$0xff] %vm815_vm3, %v2470_v49  ;;  %v2683_v24 = vld [vmem:[#allocation2 + $0x100] sm:$0xf]  ;;  %5520 = vmatprep.mubr.msk.f32.mxu0 %vm815_vm3, %v8616_v27  ;;  %v2472_v16 = vmax.f32 %v2408_v35, %v2440_v57  ;;  %5595 = vmatmul.mubr.msk.f32.gmra.mrb[4].mxu1 %vm815_vm3, %v2470_v49  ;;  %v1997_v25 = vld [vmem:[#allocation2 + $0x1a8] sm:$0xf]  ;;  %v7963_v23 = vld [vmem:[#allocation2 + $0x1b8] sm:$0xff]  ;;  %v2048_v2 = vmax.f32 %v1952_v62, %v7917_v58 }
 0x206   : > { %v2047_v3 = vmax.f32 %v1951_v18, %v7963_v23  ;;  %v2140_v47 = vmax.f32 %v2044_v32, %v7963_v23  ;;  %2185 = vst.msk [vmem:[#allocation3 + $0x140] sm:$0xff] %vm815_vm3, %v2137_v14  ;;  %v2542_v4 = vld [vmem:[#allocation2 + $0xe8] sm:$0xf]  ;;  %v2590_v53 = vld [vmem:[#allocation2 + $0x100] sm:$0xf]  ;;  %5597 = vmatprep.mubr.msk.f32.mxu1 %vm815_vm3, %v7656_v63  ;;  %v2138_v29 = vmax.f32 %v2042_v26, %v2090_v61  ;;  %v7976_v56 = vld [vmem:[#allocation2 + $0x1d0] sm:$0xff] }
 0x207   : > { %v2314_v40 = vld [vmem:[#allocation3 + $0x12a] sm:$0xff]  ;;  %v2093_v41 = vld [vmem:[#allocation2 + $0x1c0] sm:$0xf]  ;;  %v2824_v46 = vmax.f32 %v7871_v34, %v2776_v59  ;;  %2504 = vst.msk [vmem:[#allocation2 + $0x142] sm:$0xff] %vm815_vm3, %v2472_v16  ;;  %v2045_v42 = vmax.f32 %v7939_v17, %v1997_v25  ;;  %v2900_v21 = vmax.f32 %v2804_v0, %v7958_v52  ;;  %v2144_v7 = vmax.f32 %v2048_v2, %v2096_v31  ;;  %v2872_v34 = vld [vmem:[#allocation2 + $0x118] sm:$0xf] }
 0x208   : > { %v2346_v45 = vmax.f32 %v2282_v33, %v2314_v40  ;;  %v2378_v6 = vld [vmem:[#allocation3 + $0x12b] sm:$0xff]  ;;  %v2217_v48 = vld [vmem:[#allocation3 + $0x120] sm:$0xff]  ;;  %2947 = vst.msk [vmem:[#allocation3 + $0x10] sm:$0xf] %vm818_vm2, %v2899_v19  ;;  %v2143_v63 = vmax.f32 %v2047_v3, %v7976_v56  ;;  %v2731_v58 = vmax.f32 %v2635_v8, %v2683_v24  ;;  %v2779_v11 = vld [vmem:[#allocation2 + $0x118] sm:$0xf]  ;;  %v2638_v51 = vmax.f32 %v2542_v4, %v2590_v53 }
 0x209   : > { %v2249_v36 = vld [vmem:[#allocation3 + $0x121] sm:$0xff]  ;;  %2188 = vst.msk [vmem:[#allocation3 + $0x158] sm:$0xff] %vm815_vm3, %v2140_v47  ;;  %v2686_v28 = vld [vmem:[#allocation2 + $0x118] sm:$0xf]  ;;  %v2920_v50 = vmax.f32 %v2824_v46, %v2872_v34  ;;  %2948 = vst.msk [vmem:[#allocation3 + $0x18] sm:$0xff] %vm815_vm3, %v2900_v21  ;;  %5598 = vmatmul.mubr.msk.f32.gmra.mrb[6].mxu1 %vm815_vm3, %v2472_v16  ;;  %v2141_v30 = vmax.f32 %v2045_v42, %v2093_v41  ;;  %v2615_v31 = vmax.f32 %v7887_v20, %v7900_v60 }
 0x20a   : > { %v8617_v54 = vld [vmem:[#allocation8_spill] sm:$0xff]  ;;  %2186 = vst.msk [vmem:[#allocation3 + $0x148] sm:$0xf] %vm818_vm2, %v2138_v29  ;;  %v2281_v9 = vmax.f32 %v2217_v48, %v2249_v36  ;;  %v8618_v12 = vld [vmem:[#allocation15_spill] sm:$0xff]  ;;  %v2410_v49 = vmax.f32 %v2346_v45, %v2378_v6  ;;  %2192 = vst.msk [vmem:[#allocation3 + $0x178] sm:$0xf] %vm818_vm2, %v2144_v7  ;;  %v2827_v8 = vmax.f32 %v2731_v58, %v2779_v11 }
 0x20b   : > { %5521 = vmatmul.mubr.msk.f32.gmra.mrb[36].mxu0 %vm815_vm3, %v8617_v54  ;;  %v2313_v44 = vld [vmem:[#allocation3 + $0x122] sm:$0xff]  ;;  %2191 = vst.msk [vmem:[#allocation3 + $0x170] sm:$0xff] %vm815_vm3, %v2143_v63  ;;  %v2442_v37 = vld [vmem:[#allocation3 + $0x12c] sm:$0xff]  ;;  %v2593_v26 = vld [vmem:[#allocation2 + $0x118] sm:$0xf]  ;;  %v2734_v55 = vmax.f32 %v2638_v51, %v2686_v28  ;;  %v2711_v20 = vmax.f32 %v2615_v31, %v7902_v13 }
 0x20c   : > { %5523 = vmatprep.mubr.msk.f32.mxu0 %vm815_vm3, %v8618_v12  ;;  %v2345_v43 = vmax.f32 %v2281_v9, %v2313_v44  ;;  %v2377_v1 = vld [vmem:[#allocation3 + $0x123] sm:$0xff]  ;;  %2968 = vst.msk [vmem:[#allocation3 + $0xb8] sm:$0xf] %vm818_vm2, %v2920_v50  ;;  %v2875_v35 = vld [vmem:[#allocation2 + $0x130] sm:$0xf]  ;;  %v2474_v10 = vmax.f32 %v2410_v49, %v2442_v37  ;;  %v2219_v0 = vld [vmem:[#allocation3 + $0x138] sm:$0xff] }
 0x20d   : > { %v2782_v17 = vld [vmem:[#allocation2 + $0x130] sm:$0xf]  ;;  %v2923_v18 = vmax.f32 %v2827_v8, %v2875_v35  ;;  %v2545_v62 = vld [vmem:[#allocation2 + $0x100] sm:$0xf]  ;;  %2189 = vst.msk [vmem:[#allocation3 + $0x160] sm:$0xf] %vm818_vm2, %v2141_v30  ;;  %v2807_v53 = vmax.f32 %v2711_v20, %v7958_v52 }
 0x20e   : > { %v2689_v32 = vld [vmem:[#allocation2 + $0x130] sm:$0xf]  ;;  %v2409_v59 = vmax.f32 %v2345_v43, %v2377_v1  ;;  %v7995_v39 = vld [vmem:[#allocation3 + $0x20] sm:$0xff]  ;;  %v2830_v24 = vmax.f32 %v2734_v55, %v2782_v17  ;;  %2506 = vst.msk [vmem:[#allocation2 + $0x15a] sm:$0xff] %vm815_vm3, %v2474_v10  ;;  %v2641_v27 = vmax.f32 %v2545_v62, %v2593_v26  ;;  %v8620_v16 = vld [vmem:[#allocation17_spill] sm:$0xff] }
 0x20f   : > { %v8619_v14 = vld [vmem:[#allocation14_spill] sm:$0xff]  ;;  %v2220_v33 = vld [vmem:[#allocation3 + $0x140] sm:$0xff]  ;;  %2971 = vst.msk [vmem:[#allocation3 + $0xd0] sm:$0xf] %vm818_vm2, %v2923_v18  ;;  %v2878_v19 = vld [vmem:[#allocation2 + $0x148] sm:$0xf] }
 0x210   : > { %5524 = vmatmul.mubr.msk.f32.gmra.mrb[38].mxu0 %vm815_vm3, %v8619_v14  ;;  %v7998_v57 = vld [vmem:[#allocation2 + $0x90] sm:$0xff]  ;;  %v2441_v61 = vld [vmem:[#allocation3 + $0x124] sm:$0xff]  ;;  %v2251_v25 = vld [vmem:[#allocation3 + $0x139] sm:$0xff]  ;;  %v2926_v40 = vmax.f32 %v2830_v24, %v2878_v19  ;;  %v2737_v29 = vmax.f32 %v2641_v27, %v2689_v32 }
 0x211   : > { %5526 = vmatprep.mubr.msk.f32.mxu0 %vm815_vm3, %v8620_v16  ;;  %v2785_v3 = vld [vmem:[#allocation2 + $0x148] sm:$0xf]  ;;  %v2473_v2 = vmax.f32 %v2409_v59, %v2441_v61  ;;  %v2283_v47 = vmax.f32 %v2219_v0, %v2251_v25  ;;  %v2315_v46 = vld [vmem:[#allocation3 + $0x13a] sm:$0xff]  ;;  %v2221_v45 = vld [vmem:[#allocation3 + $0x150] sm:$0xff]  ;;  %v2903_v21 = vmax.f32 %v2807_v53, %v7998_v57 }
 0x212   : > { %v3028_v4 = vld [vmem:[#allocation3 + $0x21] sm:$0xff]  ;;  %v2596_v48 = vld [vmem:[#allocation2 + $0x130] sm:$0xf]  ;;  %2974 = vst.msk [vmem:[#allocation3 + $0xe8] sm:$0xf] %vm818_vm2, %v2926_v40  ;;  %v2833_v63 = vmax.f32 %v2737_v29, %v2785_v3  ;;  %v8622_v34 = vld [vmem:[#allocation19_spill] sm:$0xff] }
 0x213   : > { %v2252_v41 = vld [vmem:[#allocation3 + $0x141] sm:$0xff]  ;;  %5600 = vmatprep.mubr.msk.f32.mxu1 %vm815_vm3, %v2473_v2  ;;  %v2347_v42 = vmax.f32 %v2283_v47, %v2315_v46  ;;  %2505 = vst.msk [vmem:[#allocation2 + $0x152] sm:$0xff] %vm815_vm3, %v2473_v2  ;;  %v2253_v11 = vld [vmem:[#allocation3 + $0x151] sm:$0xff]  ;;  %v3060_v54 = vmax.f32 %v7995_v39, %v3028_v4  ;;  %2951 = vst.msk [vmem:[#allocation3 + $0x30] sm:$0xff] %vm815_vm3, %v2903_v21 }
 0x214   : > { %v2284_v6 = vmax.f32 %v2220_v33, %v2252_v41  ;;  %v8621_v36 = vld [vmem:[#allocation16_spill] sm:$0xff]  ;;  %5601 = vmatmul.mubr.msk.f32.gmra.mrb[8].mxu1 %vm815_vm3, %v2474_v10  ;;  %v8014_v28 = vld [vmem:[#allocation3 + $0x168] sm:$0xff]  ;;  %v8017_v9 = vld [vmem:[#allocation2 + $0x138] sm:$0xff]  ;;  %v2285_v8 = vmax.f32 %v2221_v45, %v2253_v11 }
 0x215   : > { %5527 = vmatmul.mubr.msk.f32.gmra.mrb[40].mxu0 %vm815_vm3, %v8621_v36  ;;  %v2316_v7 = vld [vmem:[#allocation3 + $0x142] sm:$0xff]  ;;  %v2548_v12 = vld [vmem:[#allocation2 + $0x118] sm:$0xf]  ;;  %v8623_v10 = vld [vmem:[#allocation18_spill] sm:$0xff]  ;;  %v2831_v40 = vmax.f32 %v7720_v5, %v8017_v9  ;;  %v2618_v36 = vmax.f32 %v7900_v60, %v7902_v13 }
 0x216   : > { %5529 = vmatprep.mubr.msk.f32.mxu0 %vm815_vm3, %v8622_v34  ;;  %v2379_v58 = vld [vmem:[#allocation3 + $0x13b] sm:$0xff]  ;;  %v2348_v50 = vmax.f32 %v2284_v6, %v2316_v7  ;;  %v2380_v51 = vld [vmem:[#allocation3 + $0x143] sm:$0xff]  ;;  %v2317_v1 = vld [vmem:[#allocation3 + $0x152] sm:$0xff]  ;;  %v2644_v59 = vmax.f32 %v2548_v12, %v2596_v48 }
 0x217   : > { %v2692_v49 = vld [vmem:[#allocation2 + $0x148] sm:$0xf]  ;;  %v2411_v44 = vmax.f32 %v2347_v42, %v2379_v58  ;;  %v2222_v37 = vld [vmem:[#allocation3 + $0x158] sm:$0xff]  ;;  %v2881_v31 = vld [vmem:[#allocation2 + $0x160] sm:$0xf]  ;;  %v2349_v0 = vmax.f32 %v2285_v8, %v2317_v1 }
 0x218   : > { %v3092_v26 = vld [vmem:[#allocation3 + $0x22] sm:$0xff]  ;;  %v2254_v30 = vld [vmem:[#allocation3 + $0x159] sm:$0xff]  ;;  %v2412_v35 = vmax.f32 %v2348_v50, %v2380_v51  ;;  %v2929_v14 = vmax.f32 %v2833_v63, %v2881_v31  ;;  %v2224_v4 = vld [vmem:[#allocation3 + $0x170] sm:$0xff]  ;;  %v8036_v29 = vmax.f32 %v2644_v59, %v2692_v49  ;;  %v8061_v31 = vmax.f32 %v2618_v36, %v7958_v52 }
 0x219   : > { %v2443_v43 = vld [vmem:[#allocation3 + $0x13c] sm:$0xff]  ;;  %v2444_v55 = vld [vmem:[#allocation3 + $0x144] sm:$0xff]  ;;  %5530 = vmatmul.mubr.msk.f32.gmra.mrb[42].mxu0 %vm815_vm3, %v8623_v10  ;;  %v2381_v18 = vld [vmem:[#allocation3 + $0x153] sm:$0xff]  ;;  %v2286_v62 = vmax.f32 %v2222_v37, %v2254_v30  ;;  %v8028_v61 = vmax.f32 %v3060_v54, %v3092_v26 }
 0x21a   : > { %v2475_v17 = vmax.f32 %v2411_v44, %v2443_v43  ;;  %v2993_v32 = vld [vmem:[#allocation3] sm:$0xff]  ;;  %v8624_v39 = vld [vmem:[#allocation21_spill] sm:$0xff]  ;;  %v2476_v25 = vmax.f32 %v2412_v35, %v2444_v55  ;;  %v2413_v19 = vmax.f32 %v2349_v0, %v2381_v18  ;;  %v2445_v3 = vld [vmem:[#allocation3 + $0x154] sm:$0xff]  ;;  %2977 = vst.msk [vmem:[#allocation3 + $0x100] sm:$0xf] %vm818_vm2, %v2929_v14  ;;  %v2621_v44 = vmax.f32 %v7902_v13, %v7958_v52 }
 0x21b   : > { %5532 = vmatprep.mubr.msk.f32.mxu0 %vm815_vm3, %v8624_v39  ;;  %v2318_v20 = vld [vmem:[#allocation3 + $0x15a] sm:$0xff]  ;;  %v8024_v24 = vld [vmem:[#allocation2 + $0x128] sm:$0xff]  ;;  %v2256_v53 = vld [vmem:[#allocation3 + $0x171] sm:$0xff] }
 0x21c   : > { %v8026_v27 = vld [vmem:[#allocation2 + $0x140] sm:$0xff]  ;;  %v2255_v16 = vld [vmem:[#allocation3 + $0x169] sm:$0xff]  ;;  %5603 = vmatprep.mubr.msk.f32.mxu1 %vm815_vm3, %v2475_v17  ;;  %2507 = vst.msk [vmem:[#allocation2 + $0x16a] sm:$0xff] %vm815_vm3, %v2475_v17  ;;  %v2350_v2 = vmax.f32 %v2286_v62, %v2318_v20  ;;  %v2288_v6 = vmax.f32 %v2224_v4, %v2256_v53  ;;  %2508 = vst.msk [vmem:[#allocation2 + $0x172] sm:$0xff] %vm815_vm3, %v2476_v25  ;;  %v2477_v42 = vmax.f32 %v2413_v19, %v2445_v3 }
 0x21d   : > { %v2994_v33 = vld [vmem:[#allocation3 + $0x8] sm:$0xff]  ;;  %v2287_v47 = vmax.f32 %v8014_v28, %v2255_v16  ;;  %v8038_v41 = vld [vmem:[#allocation2 + $0x160] sm:$0xf]  ;;  %5604 = vmatmul.mubr.msk.f32.gmra.mrb[10].mxu1 %vm815_vm3, %v2476_v25  ;;  %v2646_v7 = vmax.f32 %v8024_v24, %v8026_v27  ;;  %v2320_v58 = vld [vmem:[#allocation3 + $0x172] sm:$0xff] }
 0x21e   : > { %v2382_v46 = vld [vmem:[#allocation3 + $0x15b] sm:$0xff]  ;;  %v8040_v48 = vld [vmem:[#allocation3 + $0x23] sm:$0xff]  ;;  %v2383_v50 = vld [vmem:[#allocation3 + $0x16b] sm:$0xff]  ;;  %v2352_v51 = vmax.f32 %v2288_v6, %v2320_v58  ;;  %2509 = vst.msk [vmem:[#allocation2 + $0x182] sm:$0xff] %vm815_vm3, %v2477_v42  ;;  %5606 = vmatprep.mubr.msk.f32.mxu1 %vm815_vm3, %v2477_v42  ;;  %v2836_v35 = vmax.f32 %v8036_v29, %v8038_v41 }
 0x21f   : > { %v2446_v45 = vld [vmem:[#allocation3 + $0x15c] sm:$0xff]  ;;  %v2414_v63 = vmax.f32 %v2350_v2, %v2382_v46  ;;  %v2319_v34 = vld [vmem:[#allocation3 + $0x16a] sm:$0xff]  ;;  %v2384_v26 = vld [vmem:[#allocation3 + $0x173] sm:$0xff]  ;;  %v3188_v30 = vmax.f32 %v8028_v61, %v8040_v48  ;;  %v8075_v48 = vmax.f32 %v2621_v44, %v7998_v57 }
 0x220   : > { %v8625_v21 = vld [vmem:[#allocation20_spill] sm:$0xff]  ;;  %v8626_v28 = vld [vmem:[#allocation23_spill] sm:$0xff]  ;;  %v2351_v60 = vmax.f32 %v2287_v47, %v2319_v34  ;;  %v3026_v49 = vld [vmem:[#allocation3 + $0x9] sm:$0xff]  ;;  %v2416_v13 = vmax.f32 %v2352_v51, %v2384_v26 }
 0x221   : > { %5533 = vmatmul.mubr.msk.f32.gmra.mrb[44].mxu0 %vm815_vm3, %v8625_v21  ;;  %v3025_v11 = vld [vmem:[#allocation3 + $0x1] sm:$0xff]  ;;  %v8052_v54 = vld [vmem:[#allocation2 + $0x158] sm:$0xff]  ;;  %v2478_v8 = vmax.f32 %v2414_v63, %v2446_v45  ;;  %v2447_v37 = vld [vmem:[#allocation3 + $0x16c] sm:$0xff]  ;;  %v3058_v1 = vmax.f32 %v2994_v33, %v3026_v49 }
 0x222   : > { %5535 = vmatprep.mubr.msk.f32.mxu0 %vm815_vm3, %v8626_v28  ;;  %v3057_v12 = vmax.f32 %v2993_v32, %v3025_v11  ;;  %v3089_v43 = vld [vmem:[#allocation3 + $0x2] sm:$0xff]  ;;  %v2415_v55 = vmax.f32 %v2351_v60, %v2383_v50  ;;  %v3090_v10 = vld [vmem:[#allocation3 + $0xa] sm:$0xff]  ;;  %v2995_v0 = vld [vmem:[#allocation3 + $0x18] sm:$0xff]  ;;  %v8067_v62 = vmax.f32 %v2646_v7, %v8052_v54  ;;  %v2649_v19 = vmax.f32 %v8026_v27, %v8052_v54 }
 0x223   : > { %v3027_v18 = vld [vmem:[#allocation3 + $0x19] sm:$0xff]  ;;  %2510 = vst.msk [vmem:[#allocation2 + $0x18a] sm:$0xff] %vm815_vm3, %v2478_v8  ;;  %5607 = vmatmul.mubr.msk.f32.gmra.mrb[12].mxu1 %vm815_vm3, %v2478_v8  ;;  %v8627_v32 = vld [vmem:[#allocation22_spill] sm:$0xff]  ;;  %v3153_v59 = vld [vmem:[#allocation3 + $0x3] sm:$0xff]  ;;  %v3122_v39 = vmax.f32 %v3058_v1, %v3090_v10  ;;  %v2624_v11 = vmax.f32 %v7958_v52, %v7998_v57  ;;  %v2810_v8 = vmax.f32 %v8061_v31, %v7998_v57 }
 0x224   : > { %v3121_v17 = vmax.f32 %v3057_v12, %v3089_v43  ;;  %v2448_v14 = vld [vmem:[#allocation3 + $0x174] sm:$0xff]  ;;  %v3059_v20 = vmax.f32 %v2995_v0, %v3027_v18  ;;  %v3220_v16 = vld [vmem:[#allocation3 + $0x24] sm:$0xff]  ;;  %v2479_v61 = vmax.f32 %v2415_v55, %v2447_v37  ;;  %v3218_v63 = vld [vmem:[#allocation3 + $0xc] sm:$0xff] }
 0x225   : > { %5536 = vmatmul.mubr.msk.f32.gmra.mrb[46].mxu0 %vm815_vm3, %v8627_v32  ;;  %v2997_v33 = vld [vmem:[#allocation3 + $0x30] sm:$0xff]  ;;  %v2480_v25 = vmax.f32 %v2416_v13, %v2448_v14  ;;  %v3091_v47 = vld [vmem:[#allocation3 + $0x1a] sm:$0xff]  ;;  %v3217_v53 = vld [vmem:[#allocation3 + $0x4] sm:$0xff]  ;;  %v8082_v34 = vmax.f32 %v3188_v30, %v3220_v16 }
 0x226   : > { %v3185_v3 = vmax.f32 %v3121_v17, %v3153_v59  ;;  %v3154_v2 = vld [vmem:[#allocation3 + $0xb] sm:$0xff]  ;;  %v3123_v41 = vmax.f32 %v3059_v20, %v3091_v47  ;;  %v2998_v45 = vld [vmem:[#allocation3 + $0x38] sm:$0xff]  ;;  %2511 = vst.msk [vmem:[#allocation2 + $0x19a] sm:$0xff] %vm815_vm3, %v2479_v61  ;;  %5609 = vmatprep.mubr.msk.f32.mxu1 %vm815_vm3, %v2479_v61 }
 0x227   : > { %v3029_v4 = vld [vmem:[#allocation3 + $0x31] sm:$0xff]  ;;  %v3186_v29 = vmax.f32 %v3122_v39, %v3154_v2  ;;  %v3030_v6 = vld [vmem:[#allocation3 + $0x39] sm:$0xff]  ;;  %2512 = vst.msk [vmem:[#allocation2 + $0x1a2] sm:$0xff] %vm815_vm3, %v2480_v25  ;;  %5610 = vmatmul.mubr.msk.f32.gmra.mrb[14].mxu1 %vm815_vm3, %v2480_v25  ;;  %v2858_v1 = vld [vmem:[#allocation2 + $0xa8] sm:$0xff] }
 0x228   : > { %v3061_v46 = vmax.f32 %v2997_v33, %v3029_v4  ;;  %v2884_v36 = vld [vmem:[#allocation2 + $0x178] sm:$0xf]  ;;  %v8077_v42 = vld [vmem:[#allocation2 + $0x170] sm:$0xff]  ;;  %v3249_v21 = vmax.f32 %v3185_v3, %v3217_v53  ;;  %v3062_v58 = vmax.f32 %v2998_v45, %v3030_v6  ;;  %v3219_v51 = vld [vmem:[#allocation3 + $0x1c] sm:$0xff]  ;;  %v2906_v18 = vmax.f32 %v2810_v8, %v2858_v1 }
 0x229   : > { %v3155_v7 = vld [vmem:[#allocation3 + $0x1b] sm:$0xff]  ;;  %v2932_v28 = vmax.f32 %v2836_v35, %v2884_v36  ;;  %v2838_v60 = vmax.f32 %v8067_v62, %v8077_v42  ;;  %v2652_v50 = vmax.f32 %v8052_v54, %v8077_v42  ;;  %v3093_v12 = vld [vmem:[#allocation3 + $0x32] sm:$0xff]  ;;  %v2745_v37 = vmax.f32 %v2649_v19, %v8077_v42  ;;  %v2526_v3 = vld [vmem:[#allocation2 + $0x68] sm:$0xff] }
 0x22a   : > { %v3157_v49 = vld [vmem:[#allocation3 + $0x33] sm:$0xff]  ;;  %5614 = vmatprep.mubr.msk.f32.mxu1 %vm815_vm3, %v3249_v21  ;;  %v3187_v52 = vmax.f32 %v3123_v41, %v3155_v7  ;;  %v3125_v26 = vmax.f32 %v3061_v46, %v3093_v12  ;;  %v3250_v13 = vmax.f32 %v3186_v29, %v3218_v63  ;;  %v3158_v10 = vld [vmem:[#allocation3 + $0x3b] sm:$0xff]  ;;  %v2813_v57 = vmax.f32 %v8075_v48, %v2858_v1  ;;  %v2886_v31 = vld [vmem:[#allocation2 + $0x188] sm:$0xff] }
 0x22b   : > { %v3094_v44 = vld [vmem:[#allocation3 + $0x3a] sm:$0xff]  ;;  %v3000_v30 = vld [vmem:[#allocation3 + $0x50] sm:$0xff]  ;;  %2980 = vst.msk [vmem:[#allocation3 + $0x118] sm:$0xf] %vm818_vm2, %v2932_v28  ;;  %v2720_v16 = vmax.f32 %v2624_v11, %v2858_v1  ;;  %v2934_v33 = vmax.f32 %v2838_v60, %v2886_v31  ;;  %v2655_v61 = vmax.f32 %v8077_v42, %v2886_v31  ;;  %v2748_v19 = vmax.f32 %v2652_v50, %v2886_v31  ;;  %v2599_v15 = vld [vmem:[#allocation2 + $0x148] sm:$0xf] }
 0x22c   : > { %v3126_v43 = vmax.f32 %v3062_v58, %v3094_v44  ;;  %v3032_v35 = vld [vmem:[#allocation3 + $0x51] sm:$0xff]  ;;  %v3222_v0 = vld [vmem:[#allocation3 + $0x3c] sm:$0xff]  ;;  %v3251_v14 = vmax.f32 %v3187_v52, %v3219_v51  ;;  %v3189_v59 = vmax.f32 %v3125_v26, %v3157_v49  ;;  %5615 = vmatmul.mubr.msk.f32.vlgmr.msra.gmra.mrb[16].mxu1 %vm815_vm3, %v3250_v13  ;;  %2954 = vst.msk [vmem:[#allocation3 + $0x48] sm:$0xff] %vm815_vm3, %v2906_v18  ;;  %v2862_v49 = vld [vmem:[#allocation2 + $0xc8] sm:$0xff] }
 0x22d   : > { %v2560_v55 = vld [vmem:[#allocation2 + $0x178] sm:$0xf]  ;;  %v3064_v62 = vmax.f32 %v3000_v30, %v3032_v35  ;;  %v2608_v32 = vld [vmem:[#allocation2 + $0x190] sm:$0xf]  ;;  %v2574_v2 = vld [vmem:[#allocation2 + $0x80] sm:$0xff]  ;;  %v2841_v4 = vmax.f32 %v2745_v37, %v2886_v31  ;;  %2982 = vst.msk [vmem:[#allocation3 + $0x128] sm:$0xff] %vm815_vm3, %v2934_v33 }
 0x22e   : > { %v3221_v17 = vld [vmem:[#allocation3 + $0x34] sm:$0xff]  ;;  %v3190_v39 = vmax.f32 %v3126_v43, %v3158_v10  ;;  %v2656_v25 = vmax.f32 %v2560_v55, %v2608_v32  ;;  %5617 = vmatprep.mubr.msk.f32.mxu1 %vm815_vm3, %v3251_v14  ;;  %v2861_v45 = vld [vmem:[#allocation2 + $0xc0] sm:$0xff]  ;;  %v2704_v36 = vld [vmem:[#allocation2 + $0x1a8] sm:$0xf]  ;;  %v2622_v63 = vmax.f32 %v2526_v3, %v2574_v2 }
 0x22f   : > { %v3096_v20 = vld [vmem:[#allocation3 + $0x52] sm:$0xff]  ;;  %v3253_v53 = vmax.f32 %v3189_v59, %v3221_v17  ;;  %v2703_v48 = vld [vmem:[#allocation2 + $0x1a0] sm:$0xff]  ;;  %v2909_v7 = vmax.f32 %v2813_v57, %v2861_v45  ;;  %v2816_v11 = vmax.f32 %v2720_v16, %v2861_v45  ;;  %v2546_v45 = vld [vmem:[#allocation2 + $0x108] sm:$0xff] }
 0x230   : > { %v2670_v47 = vld [vmem:[#allocation2 + $0x98] sm:$0xff]  ;;  %v3254_v29 = vmax.f32 %v3190_v39, %v3222_v0  ;;  %v3128_v41 = vmax.f32 %v3064_v62, %v3096_v20  ;;  %v2766_v46 = vld [vmem:[#allocation2 + $0xb0] sm:$0xff]  ;;  %v2800_v21 = vld [vmem:[#allocation2 + $0x1c0] sm:$0xf]  ;;  %v2751_v28 = vmax.f32 %v2655_v61, %v2703_v48  ;;  %v2752_v60 = vmax.f32 %v2656_v25, %v2704_v36  ;;  %5618 = vmatmul.mubr.msk.f32.gmra.mrb[18].mxu1 %vm815_vm3, %v8082_v34 }
 0x231   : > { %v2864_v6 = vld [vmem:[#allocation2 + $0xd8] sm:$0xff]  ;;  %v2625_v58 = vmax.f32 %v2574_v2, %v2670_v47  ;;  %v2844_v50 = vmax.f32 %v2748_v19, %v2703_v48  ;;  %v2937_v51 = vmax.f32 %v2841_v4, %v2703_v48  ;;  %v2718_v37 = vmax.f32 %v2622_v63, %v2670_v47  ;;  %2957 = vst.msk [vmem:[#allocation3 + $0x60] sm:$0xff] %vm815_vm3, %v2909_v7  ;;  %v2865_v26 = vld [vmem:[#allocation2 + $0xe0] sm:$0xff]  ;;  %v2871_v62 = vld [vmem:[#allocation2 + $0x110] sm:$0xff] }
 0x232   : > { %v3160_v12 = vld [vmem:[#allocation3 + $0x53] sm:$0xff]  ;;  %v2912_v43 = vmax.f32 %v2816_v11, %v2864_v6  ;;  %v2847_v1 = vmax.f32 %v2751_v28, %v7963_v23  ;;  %v2848_v30 = vmax.f32 %v2752_v60, %v2800_v21  ;;  %5620 = vmatprep.mubr.msk.f32.mxu1 %vm815_vm3, %v3253_v53  ;;  %v2628_v13 = vmax.f32 %v2670_v47, %v2766_v46  ;;  %v2594_v19 = vld [vmem:[#allocation2 + $0x120] sm:$0xff] }
 0x233   : > { %v2896_v44 = vld [vmem:[#allocation2 + $0x1d8] sm:$0xf]  ;;  %v3192_v8 = vmax.f32 %v3128_v41, %v3160_v12  ;;  %v2721_v52 = vmax.f32 %v2625_v58, %v2766_v46  ;;  %v2940_v35 = vmax.f32 %v2844_v50, %v7963_v23  ;;  %2985 = vst.msk [vmem:[#allocation3 + $0x140] sm:$0xff] %vm815_vm3, %v2937_v51  ;;  %v2814_v34 = vmax.f32 %v2718_v37, %v2766_v46  ;;  %v2999_v32 = vld [vmem:[#allocation3 + $0x48] sm:$0xff]  ;;  %v8116_v20 = vld [vmem:[#allocation2 + $0x150] sm:$0xff] }
 0x234   : > { %v3224_v55 = vld [vmem:[#allocation3 + $0x54] sm:$0xff]  ;;  %2960 = vst.msk [vmem:[#allocation3 + $0x78] sm:$0xff] %vm815_vm3, %v2912_v43  ;;  %v2631_v18 = vmax.f32 %v2766_v46, %v2862_v49  ;;  %v2943_v31 = vmax.f32 %v2847_v1, %v7976_v56  ;;  %v2944_v23 = vmax.f32 %v2848_v30, %v2896_v44  ;;  %v3031_v14 = vld [vmem:[#allocation3 + $0x49] sm:$0xff]  ;;  %v2724_v59 = vmax.f32 %v2628_v13, %v2862_v49  ;;  %v2695_v50 = vld [vmem:[#allocation2 + $0x160] sm:$0xf] }
 0x235   : > { %v8109_v17 = vmax.f32 %v3192_v8, %v3224_v55  ;;  %v2817_v10 = vmax.f32 %v2721_v52, %v2862_v49  ;;  %v2868_v0 = vld [vmem:[#allocation2 + $0xf8] sm:$0xff]  ;;  %2988 = vst.msk [vmem:[#allocation3 + $0x158] sm:$0xff] %vm815_vm3, %v2940_v35  ;;  %v2634_v39 = vmax.f32 %v2862_v49, %v2865_v26  ;;  %5621 = vmatmul.mubr.msk.f32.gmra.mrb[20].mxu1 %vm815_vm3, %v3254_v29  ;;  %v3095_v56 = vld [vmem:[#allocation3 + $0x4a] sm:$0xff]  ;;  %v2602_v51 = vld [vmem:[#allocation2 + $0x160] sm:$0xf] }
 0x236   : > { %v8112_v57 = vld [vmem:[#allocation2 + $0x138] sm:$0xff]  ;;  %v3063_v16 = vmax.f32 %v2999_v32, %v3031_v14  ;;  %v2910_v33 = vmax.f32 %v2814_v34, %v2862_v49  ;;  %v2727_v25 = vmax.f32 %v2631_v18, %v2865_v26  ;;  %2992 = vst.msk [vmem:[#allocation3 + $0x178] sm:$0xf] %vm818_vm2, %v2944_v23  ;;  %v2820_v3 = vmax.f32 %v2724_v59, %v2865_v26  ;;  %v3159_v6 = vld [vmem:[#allocation3 + $0x4b] sm:$0xff]  ;;  %v8145_v37 = vld [vmem:[#allocation2 + $0x180] sm:$0xff] }
 0x237   : > { %v2913_v61 = vmax.f32 %v2817_v10, %v2865_v26  ;;  %2991 = vst.msk [vmem:[#allocation3 + $0x170] sm:$0xff] %vm815_vm3, %v2943_v31  ;;  %v2730_v2 = vmax.f32 %v2634_v39, %v2868_v0  ;;  %v2637_v47 = vmax.f32 %v2865_v26, %v2868_v0  ;;  %v2924_v4 = vmax.f32 %v2828_v38, %v8112_v57  ;;  %v2551_v11 = vld [vmem:[#allocation2 + $0x130] sm:$0xf]  ;;  %v8143_v8 = vld [vmem:[#allocation2 + $0x168] sm:$0xff]  ;;  %v2791_v26 = vld [vmem:[#allocation2 + $0x178] sm:$0xf] }
 0x238   : > { %v3127_v53 = vmax.f32 %v3063_v16, %v3095_v56  ;;  %2958 = vst.msk [vmem:[#allocation3 + $0x68] sm:$0xff] %vm815_vm3, %v2910_v33  ;;  %v2823_v29 = vmax.f32 %v2727_v25, %v2868_v0  ;;  %v2640_v41 = vmax.f32 %v2868_v0, %v2871_v62  ;;  %v2927_v46 = vmax.f32 %v2831_v40, %v8116_v20  ;;  %v3223_v5 = vld [vmem:[#allocation3 + $0x4c] sm:$0xff]  ;;  %v2554_v55 = vld [vmem:[#allocation2 + $0x148] sm:$0xf]  ;;  %v2698_v13 = vld [vmem:[#allocation2 + $0x178] sm:$0xf] }
 0x239   : > { %2961 = vst.msk [vmem:[#allocation3 + $0x80] sm:$0xff] %vm815_vm3, %v2913_v61  ;;  %v2916_v48 = vmax.f32 %v2820_v3, %v2868_v0  ;;  %v2826_v36 = vmax.f32 %v2730_v2, %v2871_v62  ;;  %v2733_v21 = vmax.f32 %v2637_v47, %v2871_v62  ;;  %2972 = vst.msk [vmem:[#allocation3 + $0xd8] sm:$0xff] %vm815_vm3, %v2924_v4  ;;  %v2887_v18 = vld [vmem:[#allocation2 + $0x190] sm:$0xf]  ;;  %v2890_v59 = vld [vmem:[#allocation2 + $0x1a8] sm:$0xf] }
 0x23a   : > { %v2642_v22 = vmax.f32 %v2546_v45, %v2594_v19  ;;  %v3191_v38 = vmax.f32 %v3127_v53, %v3159_v6  ;;  %v2919_v63 = vmax.f32 %v2823_v29, %v2871_v62  ;;  %v2736_v7 = vmax.f32 %v2640_v41, %v8024_v24  ;;  %2975 = vst.msk [vmem:[#allocation3 + $0xf0] sm:$0xff] %vm815_vm3, %v2927_v46  ;;  %v2794_v31 = vld [vmem:[#allocation2 + $0x190] sm:$0xf]  ;;  %v2605_v39 = vld [vmem:[#allocation2 + $0x178] sm:$0xf] }
 0x23b   : > { %v2643_v58 = vmax.f32 %v2871_v62, %v8024_v24  ;;  %2964 = vst.msk [vmem:[#allocation3 + $0x98] sm:$0xff] %vm815_vm3, %v2916_v48  ;;  %v2922_v9 = vmax.f32 %v2826_v36, %v8024_v24  ;;  %v2829_v40 = vmax.f32 %v2733_v21, %v8024_v24  ;;  %v2645_v60 = vmax.f32 %v2594_v19, %v8112_v57  ;;  %v3001_v24 = vld [vmem:[#allocation3 + $0x60] sm:$0xff]  ;;  %v8156_v62 = vld [vmem:[#allocation2 + $0x198] sm:$0xff]  ;;  %v3005_v47 = vld [vmem:[#allocation3 + $0x90] sm:$0xff] }
 0x23c   : > { %v2738_v28 = vmax.f32 %v2642_v22, %v8112_v57  ;;  %v3255_v12 = vmax.f32 %v3191_v38, %v3223_v5  ;;  %2967 = vst.msk [vmem:[#allocation3 + $0xb0] sm:$0xff] %vm815_vm3, %v2919_v63  ;;  %v2832_v49 = vmax.f32 %v2736_v7, %v8026_v27  ;;  %v2647_v52 = vmax.f32 %v2551_v11, %v2599_v15  ;;  %v3003_v25 = vld [vmem:[#allocation3 + $0x78] sm:$0xff]  ;;  %v2557_v29 = vld [vmem:[#allocation2 + $0x160] sm:$0xf]  ;;  %v2701_v41 = vld [vmem:[#allocation2 + $0x190] sm:$0xf] }
 0x23d   : > { %v2739_v44 = vmax.f32 %v2643_v58, %v8026_v27  ;;  %2970 = vst.msk [vmem:[#allocation3 + $0xc8] sm:$0xff] %vm815_vm3, %v2922_v9  ;;  %v2925_v43 = vmax.f32 %v2829_v40, %v8026_v27  ;;  %v2741_v30 = vmax.f32 %v2645_v60, %v8116_v20  ;;  %v2648_v35 = vmax.f32 %v8112_v57, %v8116_v20  ;;  %v2797_v21 = vld [vmem:[#allocation2 + $0x1a8] sm:$0xf]  ;;  %v2893_v5 = vld [vmem:[#allocation2 + $0x1c0] sm:$0xf] }
 0x23e   : > { %v2834_v1 = vmax.f32 %v2738_v28, %v8116_v20  ;;  %5623 = vmatprep.mubr.msk.f32.mxu1 %vm815_vm3, %v3255_v12  ;;  %v2928_v34 = vmax.f32 %v2832_v49, %v8052_v54  ;;  %v2743_v0 = vmax.f32 %v2647_v52, %v2695_v50  ;;  %v2650_v27 = vmax.f32 %v2554_v55, %v2602_v51  ;;  %v3007_v51 = vld [vmem:[#allocation3 + $0xa8] sm:$0xff] }
 0x23f   : > { %v2835_v10 = vmax.f32 %v2739_v44, %v8052_v54  ;;  %5624 = vmatmul.mubr.msk.f32.gmra.mrb[22].mxu1 %vm815_vm3, %v8109_v17  ;;  %v3033_v23 = vld [vmem:[#allocation3 + $0x61] sm:$0xff]  ;;  %2973 = vst.msk [vmem:[#allocation3 + $0xe0] sm:$0xff] %vm815_vm3, %v2925_v43  ;;  %v2837_v32 = vmax.f32 %v2741_v30, %v8143_v8  ;;  %v2744_v14 = vmax.f32 %v2648_v35, %v8143_v8  ;;  %v3034_v61 = vld [vmem:[#allocation3 + $0x69] sm:$0xff] }
 0x240   : > { %v2930_v57 = vmax.f32 %v2834_v1, %v8143_v8  ;;  %v2651_v54 = vmax.f32 %v8116_v20, %v8143_v8  ;;  %v3065_v16 = vmax.f32 %v3001_v24, %v3033_v23  ;;  %v3002_v33 = vld [vmem:[#allocation3 + $0x68] sm:$0xff]  ;;  %2976 = vst.msk [vmem:[#allocation3 + $0xf8] sm:$0xff] %vm815_vm3, %v2928_v34  ;;  %v2839_v19 = vmax.f32 %v2743_v0, %v2791_v26  ;;  %v3035_v6 = vld [vmem:[#allocation3 + $0x79] sm:$0xff]  ;;  %v6034_v1 = vld [vmem:[#allocation2 + $0x1b0] sm:$0xff] }
 0x241   : > { %v2931_v17 = vmax.f32 %v2835_v10, %v8077_v42  ;;  %v2746_v56 = vmax.f32 %v2650_v27, %v2698_v13  ;;  %v3097_v3 = vld [vmem:[#allocation3 + $0x62] sm:$0xff]  ;;  %v3066_v2 = vmax.f32 %v3002_v33, %v3034_v61  ;;  %v2933_v4 = vmax.f32 %v2837_v32, %v8145_v37  ;;  %v3098_v45 = vld [vmem:[#allocation3 + $0x6a] sm:$0xff]  ;;  %v3099_v60 = vld [vmem:[#allocation3 + $0x7a] sm:$0xff] }
 0x242   : > { %2978 = vst.msk [vmem:[#allocation3 + $0x108] sm:$0xff] %vm815_vm3, %v2930_v57  ;;  %v2840_v20 = vmax.f32 %v2744_v14, %v8145_v37  ;;  %v2747_v53 = vmax.f32 %v2651_v54, %v8145_v37  ;;  %v3129_v46 = vmax.f32 %v3065_v16, %v3097_v3  ;;  %v2935_v42 = vmax.f32 %v2839_v19, %v2887_v18  ;;  %v3161_v22 = vld [vmem:[#allocation3 + $0x63] sm:$0xff]  ;;  %v3162_v28 = vld [vmem:[#allocation3 + $0x6b] sm:$0xff]  ;;  %v3163_v13 = vld [vmem:[#allocation3 + $0x7b] sm:$0xff] }
 0x243   : > { %2979 = vst.msk [vmem:[#allocation3 + $0x110] sm:$0xff] %vm815_vm3, %v2931_v17  ;;  %v2842_v48 = vmax.f32 %v2746_v56, %v2794_v31  ;;  %v2653_v36 = vmax.f32 %v2557_v29, %v2605_v39  ;;  %v3130_v15 = vmax.f32 %v3066_v2, %v3098_v45  ;;  %v3067_v38 = vmax.f32 %v3003_v25, %v3035_v6  ;;  %v3004_v63 = vld [vmem:[#allocation3 + $0x80] sm:$0xff]  ;;  %v3226_v52 = vld [vmem:[#allocation3 + $0x6c] sm:$0xff]  ;;  %v3006_v0 = vld [vmem:[#allocation3 + $0x98] sm:$0xff] }
 0x244   : > { %v3036_v7 = vld [vmem:[#allocation3 + $0x81] sm:$0xff]  ;;  %2981 = vst.msk [vmem:[#allocation3 + $0x120] sm:$0xff] %vm815_vm3, %v2933_v4  ;;  %v2936_v58 = vmax.f32 %v2840_v20, %v8156_v62  ;;  %v2843_v11 = vmax.f32 %v2747_v53, %v8156_v62  ;;  %v3193_v9 = vmax.f32 %v3129_v46, %v3161_v22  ;;  %v3037_v43 = vld [vmem:[#allocation3 + $0x91] sm:$0xff]  ;;  %v2654_v35 = vmax.f32 %v8143_v8, %v8145_v37  ;;  %v3038_v18 = vld [vmem:[#allocation3 + $0x99] sm:$0xff] }
 0x245   : > { %v3225_v40 = vld [vmem:[#allocation3 + $0x64] sm:$0xff]  ;;  %v3068_v50 = vmax.f32 %v3004_v63, %v3036_v7  ;;  %2983 = vst.msk [vmem:[#allocation3 + $0x130] sm:$0xf] %vm818_vm2, %v2935_v42  ;;  %v2938_v12 = vmax.f32 %v2842_v48, %v2890_v59  ;;  %v2749_v49 = vmax.f32 %v2653_v36, %v2701_v41  ;;  %v3194_v44 = vmax.f32 %v3130_v15, %v3162_v28  ;;  %v3101_v32 = vld [vmem:[#allocation3 + $0x92] sm:$0xff]  ;;  %v3227_v8 = vld [vmem:[#allocation3 + $0x7c] sm:$0xff] }
 0x246   : > { %v3131_v26 = vmax.f32 %v3067_v38, %v3099_v60  ;;  %v3100_v24 = vld [vmem:[#allocation3 + $0x82] sm:$0xff]  ;;  %2984 = vst.msk [vmem:[#allocation3 + $0x138] sm:$0xff] %vm815_vm3, %v2936_v58  ;;  %v2939_v30 = vmax.f32 %v2843_v11, %v6034_v1  ;;  %v3257_v55 = vmax.f32 %v3193_v9, %v3225_v40  ;;  %v3069_v10 = vmax.f32 %v3005_v47, %v3037_v43  ;;  %v3102_v16 = vld [vmem:[#allocation3 + $0x9a] sm:$0xff]  ;;  %v3008_v3 = vld [vmem:[#allocation3 + $0xb0] sm:$0xff] }
 0x247   : > { %v3132_v34 = vmax.f32 %v3068_v50, %v3100_v24  ;;  %2986 = vst.msk [vmem:[#allocation3 + $0x148] sm:$0xf] %vm818_vm2, %v2938_v12  ;;  %v2845_v27 = vmax.f32 %v2749_v49, %v2797_v21  ;;  %v3258_v31 = vmax.f32 %v3194_v44, %v3226_v52  ;;  %v3164_v57 = vld [vmem:[#allocation3 + $0x83] sm:$0xff]  ;;  %v3070_v14 = vmax.f32 %v3006_v0, %v3038_v18  ;;  %v3165_v17 = vld [vmem:[#allocation3 + $0x93] sm:$0xff]  ;;  %v3167_v15 = vld [vmem:[#allocation3 + $0xab] sm:$0xff] }
 0x248   : > { %v3195_v23 = vmax.f32 %v3131_v26, %v3163_v13  ;;  %v3009_v59 = vld [vmem:[#allocation3 + $0xc0] sm:$0xff]  ;;  %2987 = vst.msk [vmem:[#allocation3 + $0x150] sm:$0xff] %vm815_vm3, %v2939_v30  ;;  %v2750_v54 = vmax.f32 %v2654_v35, %v8156_v62  ;;  %5626 = vmatprep.mubr.msk.f32.mxu1 %vm815_vm3, %v3257_v55  ;;  %v3133_v39 = vmax.f32 %v3069_v10, %v3101_v32  ;;  %v3039_v33 = vld [vmem:[#allocation3 + $0xa9] sm:$0xff]  ;;  %v3040_v2 = vld [vmem:[#allocation3 + $0xb1] sm:$0xff] }
 0x249   : > { %v3196_v37 = vmax.f32 %v3132_v34, %v3164_v57  ;;  %v2941_v61 = vmax.f32 %v2845_v27, %v2893_v5  ;;  %5627 = vmatmul.mubr.msk.f32.gmra.mrb[24].mxu1 %vm815_vm3, %v3258_v31  ;;  %v3134_v19 = vmax.f32 %v3070_v14, %v3102_v16  ;;  %v3071_v56 = vmax.f32 %v3007_v51, %v3039_v33  ;;  %v3228_v4 = vld [vmem:[#allocation3 + $0x84] sm:$0xff]  ;;  %v3166_v62 = vld [vmem:[#allocation3 + $0x9b] sm:$0xff]  ;;  %v3104_v42 = vld [vmem:[#allocation3 + $0xb2] sm:$0xff] }
 0x24a   : > { %v3259_v25 = vmax.f32 %v3195_v23, %v3227_v8  ;;  %v2846_v47 = vmax.f32 %v2750_v54, %v6034_v1  ;;  %v3197_v20 = vmax.f32 %v3133_v39, %v3165_v17  ;;  %v3103_v53 = vld [vmem:[#allocation3 + $0xaa] sm:$0xff]  ;;  %v3072_v29 = vmax.f32 %v3008_v3, %v3040_v2  ;;  %v3229_v46 = vld [vmem:[#allocation3 + $0x94] sm:$0xff]  ;;  %v3041_v48 = vld [vmem:[#allocation3 + $0xc1] sm:$0xff] }
 0x24b   : > { %2989 = vst.msk [vmem:[#allocation3 + $0x160] sm:$0xf] %vm818_vm2, %v2941_v61  ;;  %v3260_v41 = vmax.f32 %v3196_v37, %v3228_v4  ;;  %v3198_v45 = vmax.f32 %v3134_v19, %v3166_v62  ;;  %v3135_v6 = vmax.f32 %v3071_v56, %v3103_v53  ;;  %v6035_v36 = vld [vmem:[#allocation2 + $0x1c8] sm:$0xff]  ;;  %v3073_v63 = vmax.f32 %v3009_v59, %v3041_v48  ;;  %v3230_v11 = vld [vmem:[#allocation3 + $0x9c] sm:$0xff]  ;;  %v3168_v9 = vld [vmem:[#allocation3 + $0xb3] sm:$0xff] }
 0x24c   : > { %5629 = vmatprep.mubr.msk.f32.mxu1 %vm815_vm3, %v3259_v25  ;;  %v2942_v21 = vmax.f32 %v2846_v47, %v6035_v36  ;;  %v3261_v22 = vmax.f32 %v3197_v20, %v3229_v46  ;;  %v3136_v38 = vmax.f32 %v3072_v29, %v3104_v42  ;;  %v3010_v7 = vld [vmem:[#allocation3 + $0xc8] sm:$0xff]  ;;  %v3011_v51 = vld [vmem:[#allocation3 + $0xd8] sm:$0xff]  ;;  %v3012_v1 = vld [vmem:[#allocation3 + $0xe0] sm:$0xff] }
 0x24d   : > { %v3042_v58 = vld [vmem:[#allocation3 + $0xc9] sm:$0xff]  ;;  %5630 = vmatmul.mubr.msk.f32.gmra.mrb[26].mxu1 %vm815_vm3, %v3260_v41  ;;  %v3199_v5 = vmax.f32 %v3135_v6, %v3167_v15  ;;  %v3043_v12 = vld [vmem:[#allocation3 + $0xd9] sm:$0xff]  ;;  %v3262_v49 = vmax.f32 %v3198_v45, %v3230_v11  ;;  %v3044_v34 = vld [vmem:[#allocation3 + $0xe1] sm:$0xff] }
 0x24e   : > { %v3105_v40 = vld [vmem:[#allocation3 + $0xc2] sm:$0xff]  ;;  %v3074_v28 = vmax.f32 %v3010_v7, %v3042_v58  ;;  %2990 = vst.msk [vmem:[#allocation3 + $0x168] sm:$0xff] %vm815_vm3, %v2942_v21  ;;  %5632 = vmatprep.mubr.msk.f32.mxu1 %vm815_vm3, %v3261_v22  ;;  %v3106_v50 = vld [vmem:[#allocation3 + $0xca] sm:$0xff]  ;;  %v3200_v52 = vmax.f32 %v3136_v38, %v3168_v9  ;;  %v3075_v43 = vmax.f32 %v3011_v51, %v3043_v12  ;;  %v3232_v35 = vld [vmem:[#allocation3 + $0xb4] sm:$0xff] }
 0x24f   : > { %v3137_v60 = vmax.f32 %v3073_v63, %v3105_v40  ;;  %v3231_v44 = vld [vmem:[#allocation3 + $0xac] sm:$0xff]  ;;  %v3169_v26 = vld [vmem:[#allocation3 + $0xc3] sm:$0xff]  ;;  %v3107_v13 = vld [vmem:[#allocation3 + $0xda] sm:$0xff]  ;;  %v3076_v18 = vmax.f32 %v3012_v1, %v3044_v34 }
 0x250   : > { %v3138_v24 = vmax.f32 %v3074_v28, %v3106_v50  ;;  %v3263_v30 = vmax.f32 %v3199_v5, %v3231_v44  ;;  %v3233_v10 = vld [vmem:[#allocation3 + $0xc4] sm:$0xff]  ;;  %v3139_v0 = vmax.f32 %v3075_v43, %v3107_v13  ;;  %v3013_v27 = vld [vmem:[#allocation3 + $0xf0] sm:$0xff]  ;;  %v3171_v57 = vld [vmem:[#allocation3 + $0xdb] sm:$0xff]  ;;  %v3264_v59 = vmax.f32 %v3200_v52, %v3232_v35 }
 0x251   : > { %v3201_v55 = vmax.f32 %v3137_v60, %v3169_v26  ;;  %5633 = vmatmul.mubr.msk.f32.gmra.mrb[28].mxu1 %vm815_vm3, %v3262_v49  ;;  %v3045_v31 = vld [vmem:[#allocation3 + $0xf1] sm:$0xff]  ;;  %v3108_v32 = vld [vmem:[#allocation3 + $0xe2] sm:$0xff]  ;;  %v3046_v16 = vld [vmem:[#allocation3 + $0xf9] sm:$0xff] }
 0x252   : > { %5635 = vmatprep.mubr.msk.f32.mxu1 %vm815_vm3, %v3263_v30  ;;  %v3170_v23 = vld [vmem:[#allocation3 + $0xcb] sm:$0xff]  ;;  %v3077_v14 = vmax.f32 %v3013_v27, %v3045_v31  ;;  %v3140_v8 = vmax.f32 %v3076_v18, %v3108_v32  ;;  %v3014_v39 = vld [vmem:[#allocation3 + $0xf8] sm:$0xff]  ;;  %v3203_v61 = vmax.f32 %v3139_v0, %v3171_v57  ;;  %v3172_v3 = vld [vmem:[#allocation3 + $0xe3] sm:$0xff] }
 0x253   : > { %v3202_v54 = vmax.f32 %v3138_v24, %v3170_v23  ;;  %v3109_v37 = vld [vmem:[#allocation3 + $0xf2] sm:$0xff]  ;;  %v3265_v33 = vmax.f32 %v3201_v55, %v3233_v10  ;;  %v3078_v17 = vmax.f32 %v3014_v39, %v3046_v16  ;;  %v3015_v19 = vld [vmem:[#allocation3 + $0x108] sm:$0xff]  ;;  %v3110_v47 = vld [vmem:[#allocation3 + $0xfa] sm:$0xff] }
 0x254   : > { %v3141_v25 = vmax.f32 %v3077_v14, %v3109_v37  ;;  %v3234_v56 = vld [vmem:[#allocation3 + $0xcc] sm:$0xff]  ;;  %v3235_v29 = vld [vmem:[#allocation3 + $0xdc] sm:$0xff]  ;;  %v3204_v41 = vmax.f32 %v3140_v8, %v3172_v3  ;;  %v3236_v63 = vld [vmem:[#allocation3 + $0xe4] sm:$0xff] }
 0x255   : > { %5636 = vmatmul.mubr.msk.f32.gmra.mrb[30].mxu1 %vm815_vm3, %v3264_v59  ;;  %v3047_v2 = vld [vmem:[#allocation3 + $0x109] sm:$0xff]  ;;  %v3048_v62 = vld [vmem:[#allocation3 + $0x111] sm:$0xff]  ;;  %v3266_v53 = vmax.f32 %v3202_v54, %v3234_v56  ;;  %v3142_v45 = vmax.f32 %v3078_v17, %v3110_v47  ;;  %v3267_v48 = vmax.f32 %v3203_v61, %v3235_v29  ;;  %v3017_v22 = vld [vmem:[#allocation3 + $0x120] sm:$0xff] }
 0x256   : > { %5638 = vmatprep.mubr.msk.f32.mxu1 %vm815_vm3, %v3265_v33  ;;  %v3079_v4 = vmax.f32 %v3015_v19, %v3047_v2  ;;  %v3016_v20 = vld [vmem:[#allocation3 + $0x110] sm:$0xff]  ;;  %v3049_v15 = vld [vmem:[#allocation3 + $0x121] sm:$0xff]  ;;  %v3268_v28 = vmax.f32 %v3204_v41, %v3236_v63  ;;  %v3019_v49 = vld [vmem:[#allocation3 + $0x138] sm:$0xff] }
 0x257   : > { %v3173_v46 = vld [vmem:[#allocation3 + $0xf3] sm:$0xff]  ;;  %v3111_v6 = vld [vmem:[#allocation3 + $0x10a] sm:$0xff]  ;;  %v3080_v42 = vmax.f32 %v3016_v20, %v3048_v62  ;;  %v3081_v58 = vmax.f32 %v3017_v22, %v3049_v15  ;;  %v3174_v5 = vld [vmem:[#allocation3 + $0xfb] sm:$0xff] }
 0x258   : > { %v3205_v36 = vmax.f32 %v3141_v25, %v3173_v46  ;;  %v3143_v21 = vmax.f32 %v3079_v4, %v3111_v6  ;;  %v3018_v38 = vld [vmem:[#allocation3 + $0x128] sm:$0xff]  ;;  %v3237_v7 = vld [vmem:[#allocation3 + $0xf4] sm:$0xff]  ;;  %v3206_v60 = vmax.f32 %v3142_v45, %v3174_v5  ;;  %v3020_v1 = vld [vmem:[#allocation3 + $0x140] sm:$0xff] }
 0x259   : > { %5639 = vmatmul.mubr.msk.f32.gmra.mrb[0].mxu1 %vm815_vm3, %v3266_v53  ;;  %v3050_v11 = vld [vmem:[#allocation3 + $0x129] sm:$0xff]  ;;  %v3112_v40 = vld [vmem:[#allocation3 + $0x112] sm:$0xff]  ;;  %v3052_v30 = vld [vmem:[#allocation3 + $0x141] sm:$0xff] }
 0x25a   : > { %5641 = vmatprep.mubr.msk.f32.mxu1 %vm815_vm3, %v3267_v48  ;;  %v3175_v9 = vld [vmem:[#allocation3 + $0x10b] sm:$0xff]  ;;  %v3144_v50 = vmax.f32 %v3080_v42, %v3112_v40  ;;  %v3113_v51 = vld [vmem:[#allocation3 + $0x122] sm:$0xff]  ;;  %v3082_v12 = vmax.f32 %v3018_v38, %v3050_v11  ;;  %v3051_v44 = vld [vmem:[#allocation3 + $0x139] sm:$0xff]  ;;  %v3269_v52 = vmax.f32 %v3205_v36, %v3237_v7  ;;  %v3084_v32 = vmax.f32 %v3020_v1, %v3052_v30 }
 0x25b   : > { %v3207_v26 = vmax.f32 %v3143_v21, %v3175_v9  ;;  %v3145_v24 = vmax.f32 %v3081_v58, %v3113_v51  ;;  %v3083_v43 = vmax.f32 %v3019_v49, %v3051_v44  ;;  %v3238_v35 = vld [vmem:[#allocation3 + $0xfc] sm:$0xff]  ;;  %v3176_v55 = vld [vmem:[#allocation3 + $0x113] sm:$0xff]  ;;  %v3114_v13 = vld [vmem:[#allocation3 + $0x12a] sm:$0xff] }
 0x25c   : > { %v3021_v34 = vld [vmem:[#allocation3 + $0x150] sm:$0xff]  ;;  %v3270_v0 = vmax.f32 %v3206_v60, %v3238_v35  ;;  %v3208_v27 = vmax.f32 %v3144_v50, %v3176_v55  ;;  %v3177_v31 = vld [vmem:[#allocation3 + $0x123] sm:$0xff]  ;;  %v3146_v23 = vmax.f32 %v3082_v12, %v3114_v13  ;;  %v3115_v57 = vld [vmem:[#allocation3 + $0x13a] sm:$0xff] }
 0x25d   : > { %5642 = vmatmul.mubr.msk.f32.gmra.mrb[2].mxu1 %vm815_vm3, %v3268_v28  ;;  %v3053_v10 = vld [vmem:[#allocation3 + $0x151] sm:$0xff]  ;;  %v3209_v59 = vmax.f32 %v3145_v24, %v3177_v31  ;;  %v3147_v54 = vmax.f32 %v3083_v43, %v3115_v57  ;;  %v3054_v39 = vld [vmem:[#allocation3 + $0x159] sm:$0xff]  ;;  %v3023_v16 = vld [vmem:[#allocation3 + $0x168] sm:$0xff] }
 0x25e   : > { %5644 = vmatprep.mubr.msk.f32.mxu1 %vm815_vm3, %v3269_v52  ;;  %v3239_v18 = vld [vmem:[#allocation3 + $0x10c] sm:$0xff]  ;;  %v3085_v8 = vmax.f32 %v3021_v34, %v3053_v10  ;;  %v3022_v37 = vld [vmem:[#allocation3 + $0x158] sm:$0xff]  ;;  %v3116_v17 = vld [vmem:[#allocation3 + $0x142] sm:$0xff] }
 0x25f   : > { %v3271_v14 = vmax.f32 %v3207_v26, %v3239_v18  ;;  %v3055_v33 = vld [vmem:[#allocation3 + $0x169] sm:$0xff]  ;;  %v3240_v61 = vld [vmem:[#allocation3 + $0x114] sm:$0xff]  ;;  %v3148_v47 = vmax.f32 %v3084_v32, %v3116_v17  ;;  %v3086_v20 = vmax.f32 %v3022_v37, %v3054_v39  ;;  %v3243_v21 = vld [vmem:[#allocation3 + $0x13c] sm:$0xff] }
 0x260   : > { %v3178_v25 = vld [vmem:[#allocation3 + $0x12b] sm:$0xff]  ;;  %v3272_v19 = vmax.f32 %v3208_v27, %v3240_v61  ;;  %v3179_v2 = vld [vmem:[#allocation3 + $0x13b] sm:$0xff]  ;;  %v3087_v41 = vmax.f32 %v3023_v16, %v3055_v33  ;;  %v3180_v42 = vld [vmem:[#allocation3 + $0x143] sm:$0xff] }
 0x261   : > { %5645 = vmatmul.mubr.msk.f32.gmra.mrb[4].mxu1 %vm815_vm3, %v3270_v0  ;;  %v3241_v56 = vld [vmem:[#allocation3 + $0x124] sm:$0xff]  ;;  %v3210_v3 = vmax.f32 %v3146_v23, %v3178_v25  ;;  %v3117_v4 = vld [vmem:[#allocation3 + $0x152] sm:$0xff]  ;;  %v3211_v53 = vmax.f32 %v3147_v54, %v3179_v2  ;;  %v3118_v48 = vld [vmem:[#allocation3 + $0x15a] sm:$0xff]  ;;  %v3212_v22 = vmax.f32 %v3148_v47, %v3180_v42 }
 0x262   : > { %5647 = vmatprep.mubr.msk.f32.mxu1 %vm815_vm3, %v3271_v14  ;;  %v3273_v62 = vmax.f32 %v3209_v59, %v3241_v56  ;;  %v3149_v29 = vmax.f32 %v3085_v8, %v3117_v4  ;;  %v3024_v46 = vld [vmem:[#allocation3 + $0x170] sm:$0xff]  ;;  %v3150_v38 = vmax.f32 %v3086_v20, %v3118_v48  ;;  %v3244_v9 = vld [vmem:[#allocation3 + $0x144] sm:$0xff]  ;;  %v3182_v40 = vld [vmem:[#allocation3 + $0x15b] sm:$0xff] }
 0x263   : > { %v3056_v45 = vld [vmem:[#allocation3 + $0x171] sm:$0xff]  ;;  %v3275_v58 = vmax.f32 %v3211_v53, %v3243_v21  ;;  %v3276_v60 = vmax.f32 %v3212_v22, %v3244_v9  ;;  %v3246_v26 = vld [vmem:[#allocation3 + $0x15c] sm:$0xff] }
 0x264   : > { %v3242_v6 = vld [vmem:[#allocation3 + $0x12c] sm:$0xff]  ;;  %v3088_v7 = vmax.f32 %v3024_v46, %v3056_v45  ;;  %v3245_v50 = vld [vmem:[#allocation3 + $0x154] sm:$0xff]  ;;  %v3214_v51 = vmax.f32 %v3150_v38, %v3182_v40 }
 0x265   : > { %5648 = vmatmul.mubr.msk.f32.gmra.mrb[6].mxu1 %vm815_vm3, %v3272_v19  ;;  %v3274_v36 = vmax.f32 %v3210_v3, %v3242_v6  ;;  %v3181_v15 = vld [vmem:[#allocation3 + $0x153] sm:$0xff]  ;;  %v3119_v63 = vld [vmem:[#allocation3 + $0x16a] sm:$0xff]  ;;  %v8260_v6 = vld [vmem:[%s8524_s4] ss:$0 sm:$0xff] }
 0x266   : > { %5650 = vmatprep.mubr.msk.f32.mxu1 %vm815_vm3, %v3273_v62  ;;  %v3213_v11 = vmax.f32 %v3149_v29, %v3181_v15  ;;  %v3151_v5 = vmax.f32 %v3087_v41, %v3119_v63  ;;  %v3120_v28 = vld [vmem:[#allocation3 + $0x172] sm:$0xff]  ;;  %v3278_v43 = vmax.f32 %v3214_v51, %v3246_v26 }
 0x267   : > { %v3183_v12 = vld [vmem:[#allocation3 + $0x16b] sm:$0xff]  ;;  %v3152_v49 = vmax.f32 %v3088_v7, %v3120_v28  ;;  %v3184_v24 = vld [vmem:[#allocation3 + $0x173] sm:$0xff] }
 0x268   : > { %v3277_v44 = vmax.f32 %v3213_v11, %v3245_v50  ;;  %v3215_v52 = vmax.f32 %v3151_v5, %v3183_v12  ;;  %v3247_v1 = vld [vmem:[#allocation3 + $0x16c] sm:$0xff]  ;;  %v3248_v55 = vld [vmem:[#allocation3 + $0x174] sm:$0xff] }
 0x269   : > { %5651 = vmatmul.mubr.msk.f32.gmra.mrb[8].mxu1 %vm815_vm3, %v3274_v36  ;;  %v3216_v30 = vmax.f32 %v3152_v49, %v3184_v24 }
 0x26a   : > { %5653 = vmatprep.mubr.msk.f32.mxu1 %vm815_vm3, %v3275_v58  ;;  %v3279_v35 = vmax.f32 %v3215_v52, %v3247_v1 }
 0x26b   : > { %v3280_v13 = vmax.f32 %v3216_v30, %v3248_v55 }
 0x26d   : > { %5654 = vmatmul.mubr.msk.f32.gmra.mrb[10].mxu1 %vm815_vm3, %v3276_v60 }
 0x26e   : > { %5656 = vmatprep.mubr.msk.f32.mxu1 %vm815_vm3, %v3277_v44 }
 0x271   : > { %5657 = vmatmul.mubr.msk.f32.gmra.mrb[12].mxu1 %vm815_vm3, %v3278_v43 }
 0x272   : > { %5659 = vmatprep.mubr.msk.f32.mxu1 %vm815_vm3, %v3279_v35  ;;  %v8209_v34 = vpop.f32.mrb[48].mxu0 }
 0x273   : > { %v8211_v10 = vpop.f32.mrb[49].mxu0 }
 0x275   : > { %5660 = vmatmul.mubr.msk.f32.gmra.mrb[14].mxu1 %vm815_vm3, %v3280_v13 }
 0x277   : > { %v8213_v0 = vpop.f32.mrb[50].mxu0 }
 0x278   : > { %v8215_v18 = vpop.f32.mrb[51].mxu0 }
 0x27b   : > { %v8217_v27 = vpop.f32.mrb[52].mxu0 }
 0x27c   : > { %v8219_v31 = vpop.f32.mrb[53].mxu0 }
 0x28c   : > { %v8221_v23 = vpop.f32.mrb[54].mxu0 }
 0x28d   : > { %v8223_v57 = vpop.f32.mrb[55].mxu0 }
 0x291   : > { %v8225_v32 = vpop.f32.mrb[56].mxu0 }
 0x292   : > { %v8227_v14 = vpop.f32.mrb[57].mxu0 }
 0x296   : > { %v8229_v59 = vpop.f32.mrb[58].mxu0 }
 0x297   : > { %v8231_v54 = vpop.f32.mrb[59].mxu0 }
 0x2ac   : > { %v8233_v8 = vpop.f32.mrb[60].mxu0 }
 0x2ad   : > { %v8235_v37 = vpop.f32.mrb[61].mxu0 }
 0x2cc   : > { %v8237_v39 = vpop.f32.mrb[62].mxu0 }
 0x2cd   : > { %v8239_v16 = vpop.f32.mrb[63].mxu0 }
 0x2d3   : > { %v5516_v33 = vpop.f32.mrb[32].mxu0 }
 0x2d4   : > { %v3774_v61 = vpop.f32.mrb[33].mxu0 }
 0x2d7   : > { %v5519_v25 = vpop.f32.mrb[34].mxu0 }
 0x2d8   : > { %v3784_v17 = vpop.f32.mrb[35].mxu0 }
 0x2de   : > { %v5522_v19 = vpop.f32.mrb[36].mxu0 }
 0x2df   : > { %v3794_v56 = vpop.f32.mrb[37].mxu0 }
 0x2e3   : > { %v5525_v3 = vpop.f32.mrb[38].mxu0 }
 0x2e4   : > { %v3804_v2 = vpop.f32.mrb[39].mxu0 }
 0x2e8   : > { %v8241_v47 = vpop.f32.mrb[40].mxu0 }
 0x2e9   : > { %v8243_v4 = vpop.f32.mrb[41].mxu0 }
 0x2ec   : > { %v8245_v20 = vpop.f32.mrb[42].mxu0 }
 0x2ed   : > { %v8247_v62 = vpop.f32.mrb[43].mxu0 }
 0x2f4   : > { %v8249_v53 = vpop.f32.mrb[44].mxu0 }
 0x2f5   : > { %v8251_v29 = vpop.f32.mrb[45].mxu0 }
 0x2f8   : > { %v8253_v41 = vpop.f32.mrb[46].mxu0 }
 0x2f9   : > { %v8255_v46 = vpop.f32.mrb[47].mxu0 }
 0x2ff   : > { %v5616_v45 = vpop.f32.mrb[16].mxu1 }
 0x300   : > { %v5664_v42 = vadd.f32 %v5616_v45, %v5516_v33  ;;  %v4458_v48 = vpop.f32.mrb[17].mxu1 }
 0x301   : > { %v5665_v36 = vadd.f32 %v4458_v48, %v3774_v61 }
 0x302   : > { %v8263_v21 = vadd.f32 %v5664_v42, %v8260_v6 }
 0x303   : > { %v8266_v22 = vadd.f32 %v5665_v36, %v8260_v6  ;;  %v5619_v15 = vpop.f32.mrb[18].mxu1 }
 0x304   : > { %v5212_v38 = vmul.f32 -1.442695, %v8263_v21  ;;  %v5666_v63 = vadd.f32 %v5619_v15, %v5519_v25  ;;  %v4468_v7 = vpop.f32.mrb[19].mxu1 }
 0x305   : > { %v5211_v58 = vmul.f32 -1.442695, %v8266_v22  ;;  %v5667_v11 = vadd.f32 %v4468_v7, %v3784_v17 }
 0x306   : > { %5897 = vpow2.f32 %v5212_v38  ;;  %v8271_v5 = vadd.f32 %v5666_v63, %v8260_v6 }
 0x307   : > { %5899 = vpow2.f32 %v5211_v58  ;;  %v8274_v9 = vadd.f32 %v5667_v11, %v8260_v6 }
 0x308   : > { %v5622_v40 = vpop.f32.mrb[20].mxu1  ;;  %v5214_v28 = vmul.f32 -1.442695, %v8271_v5 }
 0x309   : > { %v5668_v60 = vadd.f32 %v5622_v40, %v5522_v19  ;;  %v4478_v50 = vpop.f32.mrb[21].mxu1  ;;  %v5213_v51 = vmul.f32 -1.442695, %v8274_v9 }
 0x30a   : > { %v5669_v12 = vadd.f32 %v4478_v50, %v3794_v56  ;;  %5901 = vpow2.f32 %v5214_v28 }
 0x30b   : > { %v8279_v49 = vadd.f32 %v5668_v60, %v8260_v6  ;;  %5903 = vpow2.f32 %v5213_v51 }
 0x30c   : > { %v8282_v44 = vadd.f32 %v5669_v12, %v8260_v6 }
 0x30d   : > { %v5216_v52 = vmul.f32 -1.442695, %v8279_v49 }
 0x30e   : > { %v5215_v26 = vmul.f32 -1.442695, %v8282_v44 }
 0x30f   : > { %5905 = vpow2.f32 %v5216_v52 }
 0x310   : > { %5907 = vpow2.f32 %v5215_v26  ;;  %v5898_v24 = vpop.eup %5897 }
 0x311   : > { %v5900_v1 = vpop.eup %5899  ;;  %v4785_v30 = vadd.f32 1.0, %v5898_v24 }
 0x312   : > { %v5625_v43 = vpop.f32.mrb[22].mxu1  ;;  %v4784_v13 = vadd.f32 1.0, %v5900_v1 }
 0x313   : > { %v5670_v35 = vadd.f32 %v5625_v43, %v5525_v3  ;;  %v4488_v55 = vpop.f32.mrb[23].mxu1  ;;  %5909 = vrcp.f32 %v4785_v30 }
 0x314   : > { %v5671_v33 = vadd.f32 %v4488_v55, %v3804_v2  ;;  %v5902_v25 = vpop.eup %5901  ;;  %5911 = vrcp.f32 %v4784_v13 }
 0x315   : > { %v8287_v61 = vadd.f32 %v5670_v35, %v8260_v6  ;;  %v5904_v19 = vpop.eup %5903  ;;  %v4787_v56 = vadd.f32 1.0, %v5902_v25 }
 0x316   : > { %v8290_v17 = vadd.f32 %v5671_v33, %v8260_v6  ;;  %v4786_v42 = vadd.f32 1.0, %v5904_v19 }
 0x317   : > { %v5218_v45 = vmul.f32 -1.442695, %v8287_v61  ;;  %5913 = vrcp.f32 %v4787_v56 }
 0x318   : > { %v5217_v48 = vmul.f32 -1.442695, %v8290_v17  ;;  %5915 = vrcp.f32 %v4786_v42 }
 0x319   : > { %v5906_v3 = vpop.eup %5905  ;;  %5917 = vpow2.f32 %v5218_v45 }
 0x31a   : > { %v5908_v2 = vpop.eup %5907  ;;  %v4789_v36 = vadd.f32 1.0, %v5906_v3  ;;  %5919 = vpow2.f32 %v5217_v48 }
 0x31b   : > { %v4788_v15 = vadd.f32 1.0, %v5908_v2 }
 0x31c   : > { %v5628_v38 = vpop.f32.mrb[24].mxu1  ;;  %5921 = vrcp.f32 %v4789_v36 }
 0x31d   : > { %v5672_v63 = vadd.f32 %v5628_v38, %v8241_v47  ;;  %v4498_v7 = vpop.f32.mrb[25].mxu1  ;;  %5923 = vrcp.f32 %v4788_v15  ;;  %v5910_v11 = vpop.eup %5909 }
 0x31e   : > { %v5673_v58 = vadd.f32 %v4498_v7, %v8243_v4  ;;  %v5912_v28 = vpop.eup %5911  ;;  %v4881_v47 = vmul.f32 %v5910_v11, %v8263_v21 }
 0x31f   : > { %v8304_v40 = vadd.f32 %v5672_v63, %v8260_v6  ;;  %v4880_v50 = vmul.f32 %v5912_v28, %v8266_v22 }
 0x320   : > { %v8308_v60 = vadd.f32 %v5673_v58, %v8260_v6  ;;  %v5631_v4 = vpop.f32.mrb[26].mxu1  ;;  %4914 = vst.msk [vmem:[%s8301_s21 + $0x8] sm:$0xff] %vm4912_vm5, %v4881_v47 }
 0x321   : > { %v5220_v51 = vmul.f32 -1.442695, %v8304_v40  ;;  %v5674_v12 = vadd.f32 %v5631_v4, %v8245_v20  ;;  %v4508_v52 = vpop.f32.mrb[27].mxu1  ;;  %v5914_v43 = vpop.eup %5913  ;;  %4913 = vst.msk [vmem:[%s8301_s21] sm:$0xff] %vm4912_vm5, %v4880_v50 }
 0x322   : > { %v5219_v26 = vmul.f32 -1.442695, %v8308_v60  ;;  %v5675_v24 = vadd.f32 %v4508_v52, %v8247_v62  ;;  %v5916_v22 = vpop.eup %5915  ;;  %v4883_v1 = vmul.f32 %v5914_v43, %v8271_v5 }
 0x323   : > { %5925 = vpow2.f32 %v5220_v51  ;;  %v8320_v21 = vadd.f32 %v5674_v12, %v8260_v6  ;;  %v5918_v35 = vpop.eup %5917  ;;  %v4882_v62 = vmul.f32 %v5916_v22, %v8274_v9 }
 0x324   : > { %5927 = vpow2.f32 %v5219_v26  ;;  %v8324_v20 = vadd.f32 %v5675_v24, %v8260_v6  ;;  %v5634_v30 = vpop.f32.mrb[28].mxu1  ;;  %v5920_v25 = vpop.eup %5919  ;;  %4916 = vst.msk [vmem:[%s8301_s21 + $0x18] sm:$0xff] %vm4912_vm5, %v4883_v1  ;;  %v4791_v19 = vadd.f32 1.0, %v5918_v35 }
 0x325   : > { %v5222_v55 = vmul.f32 -1.442695, %v8320_v21  ;;  %v5676_v13 = vadd.f32 %v5634_v30, %v8249_v53  ;;  %v4518_v33 = vpop.f32.mrb[29].mxu1  ;;  %4915 = vst.msk [vmem:[%s8301_s21 + $0x10] sm:$0xff] %vm4912_vm5, %v4882_v62  ;;  %v4790_v42 = vadd.f32 1.0, %v5920_v25 }
 0x326   : > { %v5221_v56 = vmul.f32 -1.442695, %v8324_v20  ;;  %v5677_v5 = vadd.f32 %v4518_v33, %v8251_v29  ;;  %v5922_v45 = vpop.eup %5921 }
 0x327   : > { %5929 = vpow2.f32 %v5222_v55  ;;  %v8336_v9 = vadd.f32 %v5676_v13, %v8260_v6  ;;  %v5924_v53 = vpop.eup %5923  ;;  %v4885_v48 = vmul.f32 %v5922_v45, %v8279_v49 }
 0x328   : > { %5931 = vrcp.f32 %v4791_v19  ;;  %v8340_v3 = vadd.f32 %v5677_v5, %v8260_v6  ;;  %v5637_v2 = vpop.f32.mrb[30].mxu1  ;;  %v4884_v29 = vmul.f32 %v5924_v53, %v8282_v44 }
 0x329   : > { %5933 = vrcp.f32 %v4790_v42  ;;  %v5224_v36 = vmul.f32 -1.442695, %v8336_v9  ;;  %v5678_v15 = vadd.f32 %v5637_v2, %v8253_v41  ;;  %v4528_v38 = vpop.f32.mrb[31].mxu1  ;;  %4918 = vst.msk [vmem:[%s8301_s21 + $0x28] sm:$0xff] %vm4912_vm5, %v4885_v48 }
 0x32a   : > { %5935 = vpow2.f32 %v5221_v56  ;;  %v5223_v63 = vmul.f32 -1.442695, %v8340_v3  ;;  %v5679_v49 = vadd.f32 %v4528_v38, %v8255_v46  ;;  %4917 = vst.msk [vmem:[%s8301_s21 + $0x20] sm:$0xff] %vm4912_vm5, %v4884_v29 }
 0x32b   : > { %5937 = vpow2.f32 %v5224_v36  ;;  %v8352_v7 = vadd.f32 %v5678_v15, %v8260_v6 }
 0x32c   : > { %5939 = vpow2.f32 %v5223_v63  ;;  %v8355_v44 = vadd.f32 %v5679_v49, %v8260_v6  ;;  %v5640_v58 = vpop.f32.mrb[0].mxu1 }
 0x32d   : > { %v5926_v41 = vpop.eup %5925  ;;  %v5226_v11 = vmul.f32 -1.442695, %v8352_v7  ;;  %v5680_v28 = vadd.f32 %v5640_v58, %v8209_v34  ;;  %v4538_v47 = vpop.f32.mrb[1].mxu1 }
 0x32e   : > { %v5928_v4 = vpop.eup %5927  ;;  %v4793_v50 = vadd.f32 1.0, %v5926_v41  ;;  %v5225_v46 = vmul.f32 -1.442695, %v8355_v44  ;;  %v5681_v51 = vadd.f32 %v4538_v47, %v8211_v10 }
 0x32f   : > { %v4792_v12 = vadd.f32 1.0, %v5928_v4  ;;  %5941 = vpow2.f32 %v5226_v11  ;;  %v8362_v52 = vadd.f32 %v5680_v28, %v8260_v6 }
 0x330   : > { %5943 = vrcp.f32 %v4793_v50  ;;  %v8365_v26 = vadd.f32 %v5681_v51, %v8260_v6  ;;  %v5643_v24 = vpop.f32.mrb[2].mxu1 }
 0x331   : > { %v5930_v43 = vpop.eup %5929  ;;  %5945 = vrcp.f32 %v4792_v12  ;;  %v5228_v34 = vmul.f32 -1.442695, %v8362_v52  ;;  %v5682_v22 = vadd.f32 %v5643_v24, %v8213_v0  ;;  %v4548_v1 = vpop.f32.mrb[3].mxu1 }
 0x332   : > { %v5932_v30 = vpop.eup %5931  ;;  %v4795_v10 = vadd.f32 1.0, %v5930_v43  ;;  %5947 = vpow2.f32 %v5225_v46  ;;  %v5227_v35 = vmul.f32 -1.442695, %v8365_v26  ;;  %v5683_v62 = vadd.f32 %v4548_v1, %v8215_v18 }
 0x333   : > { %v5934_v55 = vpop.eup %5933  ;;  %v4887_v13 = vmul.f32 %v5932_v30, %v8287_v61  ;;  %5949 = vpow2.f32 %v5228_v34  ;;  %v8373_v33 = vadd.f32 %v5682_v22, %v8260_v6 }
 0x334   : > { %v5936_v25 = vpop.eup %5935  ;;  %v4886_v0 = vmul.f32 %v5934_v55, %v8290_v17  ;;  %5951 = vrcp.f32 %v4795_v10  ;;  %v8377_v19 = vadd.f32 %v5683_v62, %v8260_v6  ;;  %v5646_v56 = vpop.f32.mrb[4].mxu1 }
 0x335   : > { %v5938_v5 = vpop.eup %5937  ;;  %4920 = vst.msk [vmem:[%s8301_s21 + $0x38] sm:$0xff] %vm4912_vm5, %v4887_v13  ;;  %v4794_v18 = vadd.f32 1.0, %v5936_v25  ;;  %5953 = vpow2.f32 %v5227_v35  ;;  %v5684_v45 = vadd.f32 %v5646_v56, %v8217_v27  ;;  %v4558_v61 = vpop.f32.mrb[5].mxu1  ;;  %v5230_v48 = vmul.f32 -1.442695, %v8373_v33 }
 0x336   : > { %v5940_v42 = vpop.eup %5939  ;;  %4919 = vst.msk [vmem:[%s8301_s21 + $0x30] sm:$0xff] %vm4912_vm5, %v4886_v0  ;;  %v4797_v53 = vadd.f32 1.0, %v5938_v5  ;;  %v5685_v17 = vadd.f32 %v4558_v61, %v8219_v31  ;;  %v5229_v29 = vmul.f32 -1.442695, %v8377_v19 }
 0x337   : > { %5955 = vrcp.f32 %v4794_v18  ;;  %v4796_v2 = vadd.f32 1.0, %v5940_v42  ;;  %v8388_v36 = vadd.f32 %v5684_v45, %v8260_v6 }
 0x338   : > { %5957 = vrcp.f32 %v4797_v53  ;;  %v8391_v15 = vadd.f32 %v5685_v17, %v8260_v6  ;;  %v5649_v27 = vpop.f32.mrb[6].mxu1 }
 0x339   : > { %v5942_v38 = vpop.eup %5941  ;;  %5959 = vrcp.f32 %v4796_v2  ;;  %v5232_v63 = vmul.f32 -1.442695, %v8388_v36  ;;  %v5686_v49 = vadd.f32 %v5649_v27, %v8221_v23  ;;  %v4568_v58 = vpop.f32.mrb[7].mxu1 }
 0x33a   : > { %v5944_v31 = vpop.eup %5943  ;;  %v4799_v41 = vadd.f32 1.0, %v5942_v38  ;;  %5961 = vpow2.f32 %v5230_v48  ;;  %v5231_v11 = vmul.f32 -1.442695, %v8391_v15  ;;  %v5687_v28 = vadd.f32 %v4568_v58, %v8223_v57 }
 0x33b   : > { %v5946_v47 = vpop.eup %5945  ;;  %v4889_v4 = vmul.f32 %v5944_v31, %v8304_v40  ;;  %5963 = vpow2.f32 %v5229_v29  ;;  %v8399_v50 = vadd.f32 %v5686_v49, %v8260_v6 }
 0x33c   : > { %v5948_v46 = vpop.eup %5947  ;;  %v4888_v23 = vmul.f32 %v5946_v47, %v8308_v60  ;;  %5965 = vrcp.f32 %v4799_v41  ;;  %v8403_v51 = vadd.f32 %v5687_v28, %v8260_v6  ;;  %v5652_v12 = vpop.f32.mrb[8].mxu1 }
 0x33d   : > { %v5950_v24 = vpop.eup %5949  ;;  %4922 = vst.msk [vmem:[%s8301_s21 + $0x48] sm:$0xff] %vm4912_vm5, %v4889_v4  ;;  %v4798_v57 = vadd.f32 1.0, %v5948_v46  ;;  %5967 = vpow2.f32 %v5232_v63  ;;  %v5234_v40 = vmul.f32 -1.442695, %v8399_v50  ;;  %v5688_v43 = vadd.f32 %v5652_v12, %v8225_v32  ;;  %v4578_v34 = vpop.f32.mrb[9].mxu1 }
 0x33e   : > { %v5952_v22 = vpop.eup %5951  ;;  %4921 = vst.msk [vmem:[%s8301_s21 + $0x40] sm:$0xff] %vm4912_vm5, %v4888_v23  ;;  %v4801_v60 = vadd.f32 1.0, %v5950_v24  ;;  %5969 = vpow2.f32 %v5231_v11  ;;  %v5689_v1 = vadd.f32 %v4578_v34, %v8227_v14  ;;  %v5233_v35 = vmul.f32 -1.442695, %v8403_v51 }
 0x33f   : > { %v5954_v30 = vpop.eup %5953  ;;  %v4891_v10 = vmul.f32 %v5952_v22, %v8320_v21  ;;  %5971 = vrcp.f32 %v4798_v57  ;;  %v8415_v62 = vadd.f32 %v5688_v43, %v8260_v6 }
 0x340   : > { %5973 = vrcp.f32 %v4801_v60  ;;  %v4800_v32 = vadd.f32 1.0, %v5954_v30  ;;  %v8418_v55 = vadd.f32 %v5689_v1, %v8260_v6  ;;  %v5655_v13 = vpop.f32.mrb[10].mxu1 }
 0x341   : > { %v5956_v25 = vpop.eup %5955  ;;  %4924 = vst.msk [vmem:[%s8301_s21 + $0x58] sm:$0xff] %vm4912_vm5, %v4891_v10  ;;  %5975 = vpow2.f32 %v5234_v40  ;;  %v5236_v14 = vmul.f32 -1.442695, %v8415_v62  ;;  %v5690_v21 = vadd.f32 %v5655_v13, %v8229_v59  ;;  %v4588_v0 = vpop.f32.mrb[11].mxu1 }
 0x342   : > { %v5958_v56 = vpop.eup %5957  ;;  %v4890_v5 = vmul.f32 %v5956_v25, %v8324_v20  ;;  %5977 = vrcp.f32 %v4800_v32  ;;  %v5235_v18 = vmul.f32 -1.442695, %v8418_v55  ;;  %v5691_v45 = vadd.f32 %v4588_v0, %v8231_v54 }
 0x343   : > { %v5960_v61 = vpop.eup %5959  ;;  %v4893_v42 = vmul.f32 %v5958_v56, %v8336_v9  ;;  %5979 = vpow2.f32 %v5233_v35  ;;  %v8429_v53 = vadd.f32 %v5690_v21, %v8260_v6 }
 0x344   : > { %v5962_v48 = vpop.eup %5961  ;;  %4923 = vst.msk [vmem:[%s8301_s21 + $0x50] sm:$0xff] %vm4912_vm5, %v4890_v5  ;;  %v4892_v59 = vmul.f32 %v5960_v61, %v8340_v3  ;;  %5981 = vpow2.f32 %v5236_v14  ;;  %v8435_v20 = vadd.f32 %v5691_v45, %v8260_v6  ;;  %v5658_v17 = vpop.f32.mrb[12].mxu1 }
 0x345   : > { %v5964_v2 = vpop.eup %5963  ;;  %4926 = vst.msk [vmem:[%s8301_s21 + $0x68] sm:$0xff] %vm4912_vm5, %v4893_v42  ;;  %v4803_v54 = vadd.f32 1.0, %v5962_v48  ;;  %5983 = vpow2.f32 %v5235_v18  ;;  %v5238_v9 = vmul.f32 -1.442695, %v8429_v53  ;;  %v5692_v29 = vadd.f32 %v5658_v17, %v8233_v8  ;;  %v4598_v27 = vpop.f32.mrb[13].mxu1 }
 0x346   : > { %v5966_v38 = vpop.eup %5965  ;;  %4925 = vst.msk [vmem:[%s8301_s21 + $0x60] sm:$0xff] %vm4912_vm5, %v4892_v59  ;;  %v4802_v3 = vadd.f32 1.0, %v5964_v2  ;;  %v5693_v63 = vadd.f32 %v4598_v27, %v8235_v37  ;;  %v5237_v8 = vmul.f32 -1.442695, %v8435_v20 }
 0x347   : > { %v5968_v49 = vpop.eup %5967  ;;  %v4895_v58 = vmul.f32 %v5966_v38, %v8352_v7  ;;  %5985 = vrcp.f32 %v4803_v54  ;;  %v8446_v31 = vadd.f32 %v5692_v29, %v8260_v6 }
 0x348   : > { %v5970_v41 = vpop.eup %5969  ;;  %5987 = vrcp.f32 %v4802_v3  ;;  %v4805_v11 = vadd.f32 1.0, %v5968_v49  ;;  %v8450_v28 = vadd.f32 %v5693_v63, %v8260_v6  ;;  %v5661_v47 = vpop.f32.mrb[14].mxu1 }
 0x349   : > { %v5972_v4 = vpop.eup %5971  ;;  %4928 = vst.msk [vmem:[%s8301_s21 + $0x78] sm:$0xff] %vm4912_vm5, %v4895_v58  ;;  %v4804_v37 = vadd.f32 1.0, %v5970_v41  ;;  %5989 = vpow2.f32 %v5238_v9  ;;  %v5240_v7 = vmul.f32 -1.442695, %v8446_v31  ;;  %v5694_v46 = vadd.f32 %v5661_v47, %v8237_v39  ;;  %v4608_v23 = vpop.f32.mrb[15].mxu1 }
 0x34a   : > { %v5974_v12 = vpop.eup %5973  ;;  %v4894_v24 = vmul.f32 %v5972_v4, %v8355_v44  ;;  %5991 = vrcp.f32 %v4805_v11  ;;  %v5695_v57 = vadd.f32 %v4608_v23, %v8239_v16  ;;  %v5239_v34 = vmul.f32 -1.442695, %v8450_v28 }
 0x34b   : > { %v5976_v40 = vpop.eup %5975  ;;  %v4897_v43 = vmul.f32 %v5974_v12, %v8362_v52  ;;  %5993 = vrcp.f32 %v4804_v37  ;;  %v8461_v22 = vadd.f32 %v5694_v46, %v8260_v6 }
 0x34c   : > { %v5978_v60 = vpop.eup %5977  ;;  %4927 = vst.msk [vmem:[%s8301_s21 + $0x70] sm:$0xff] %vm4912_vm5, %v4894_v24  ;;  %v4807_v39 = vadd.f32 1.0, %v5976_v40  ;;  %5995 = vpow2.f32 %v5237_v8  ;;  %v8466_v44 = vadd.f32 %v5695_v57, %v8260_v6 }
 0x34d   : > { %v5980_v1 = vpop.eup %5979  ;;  %4930 = vst.msk [vmem:[%s8301_s21 + $0x88] sm:$0xff] %vm4912_vm5, %v4897_v43  ;;  %v4896_v16 = vmul.f32 %v5978_v60, %v8365_v26  ;;  %5997 = vpow2.f32 %v5240_v7  ;;  %v5242_v32 = vmul.f32 -1.442695, %v8461_v22 }
 0x34e   : > { %v5982_v52 = vpop.eup %5981  ;;  %5999 = vrcp.f32 %v4807_v39  ;;  %v4806_v30 = vadd.f32 1.0, %v5980_v1  ;;  %v5241_v13 = vmul.f32 -1.442695, %v8466_v44 }
 0x34f   : > { %v5984_v10 = vpop.eup %5983  ;;  %4929 = vst.msk [vmem:[%s8301_s21 + $0x80] sm:$0xff] %vm4912_vm5, %v4896_v16  ;;  %v4809_v35 = vadd.f32 1.0, %v5982_v52  ;;  %6001 = vpow2.f32 %v5239_v34 }
 0x350   : > { %6003 = vrcp.f32 %v4806_v30  ;;  %v4808_v6 = vadd.f32 1.0, %v5984_v10 }
 0x351   : > { %v5986_v25 = vpop.eup %5985  ;;  %6005 = vrcp.f32 %v4809_v35 }
 0x352   : > { %v5988_v26 = vpop.eup %5987  ;;  %v4899_v14 = vmul.f32 %v5986_v25, %v8373_v33  ;;  %6007 = vrcp.f32 %v4808_v6 }
 0x353   : > { %v5990_v21 = vpop.eup %5989  ;;  %v4898_v0 = vmul.f32 %v5988_v26, %v8377_v19  ;;  %6009 = vpow2.f32 %v5242_v32 }
 0x354   : > { %v5992_v56 = vpop.eup %5991  ;;  %4932 = vst.msk [vmem:[%s8301_s21 + $0x98] sm:$0xff] %vm4912_vm5, %v4899_v14  ;;  %v4811_v5 = vadd.f32 1.0, %v5990_v21  ;;  %6011 = vpow2.f32 %v5241_v13 }
 0x355   : > { %v5994_v18 = vpop.eup %5993  ;;  %4931 = vst.msk [vmem:[%s8301_s21 + $0x90] sm:$0xff] %vm4912_vm5, %v4898_v0  ;;  %v4901_v45 = vmul.f32 %v5992_v56, %v8388_v36 }
 0x356   : > { %v5996_v61 = vpop.eup %5995  ;;  %v4900_v33 = vmul.f32 %v5994_v18, %v8391_v15  ;;  %6013 = vrcp.f32 %v4811_v5 }
 0x357   : > { %v5998_v42 = vpop.eup %5997  ;;  %4934 = vst.msk [vmem:[%s8301_s21 + $0xa8] sm:$0xff] %vm4912_vm5, %v4901_v45  ;;  %v4810_v19 = vadd.f32 1.0, %v5996_v61 }
 0x358   : > { %v6000_v48 = vpop.eup %5999  ;;  %4933 = vst.msk [vmem:[%s8301_s21 + $0xa0] sm:$0xff] %vm4912_vm5, %v4900_v33  ;;  %v4813_v59 = vadd.f32 1.0, %v5998_v42 }
 0x359   : > { %v6002_v17 = vpop.eup %6001  ;;  %v4903_v2 = vmul.f32 %v6000_v48, %v8399_v50  ;;  %6015 = vrcp.f32 %v4810_v19 }
 0x35a   : > { %v6004_v36 = vpop.eup %6003  ;;  %6017 = vrcp.f32 %v4813_v59  ;;  %v4812_v54 = vadd.f32 1.0, %v6002_v17 }
 0x35b   : > { %v6006_v15 = vpop.eup %6005  ;;  %4936 = vst.msk [vmem:[%s8301_s21 + $0xb8] sm:$0xff] %vm4912_vm5, %v4903_v2  ;;  %v4902_v9 = vmul.f32 %v6004_v36, %v8403_v51 }
 0x35c   : > { %v6008_v29 = vpop.eup %6007  ;;  %v4905_v27 = vmul.f32 %v6006_v15, %v8415_v62  ;;  %6019 = vrcp.f32 %v4812_v54 }
 0x35d   : > { %v6010_v38 = vpop.eup %6009  ;;  %4935 = vst.msk [vmem:[%s8301_s21 + $0xb0] sm:$0xff] %vm4912_vm5, %v4902_v9  ;;  %v4904_v50 = vmul.f32 %v6008_v29, %v8418_v55 }
 0x35e   : > { %v6012_v3 = vpop.eup %6011  ;;  %4938 = vst.msk [vmem:[%s8301_s21 + $0xc8] sm:$0xff] %vm4912_vm5, %v4905_v27  ;;  %v4815_v63 = vadd.f32 1.0, %v6010_v38 }
 0x35f   : > { %4937 = vst.msk [vmem:[%s8301_s21 + $0xc0] sm:$0xff] %vm4912_vm5, %v4904_v50  ;;  %v4814_v51 = vadd.f32 1.0, %v6012_v3 }
 0x360   : > { %v6014_v49 = vpop.eup %6013  ;;  %6021 = vrcp.f32 %v4815_v63 }
 0x361   : > { %v4907_v62 = vmul.f32 %v6014_v49, %v8429_v53  ;;  %6023 = vrcp.f32 %v4814_v51 }
 0x363   : > { %v6016_v58 = vpop.eup %6015  ;;  %4940 = vst.msk [vmem:[%s8301_s21 + $0xd8] sm:$0xff] %vm4912_vm5, %v4907_v62 }
 0x364   : > { %v6018_v55 = vpop.eup %6017  ;;  %v4906_v41 = vmul.f32 %v6016_v58, %v8435_v20 }
 0x365   : > { %v4909_v11 = vmul.f32 %v6018_v55, %v8446_v31 }
 0x366   : > { %v6020_v8 = vpop.eup %6019  ;;  %4939 = vst.msk [vmem:[%s8301_s21 + $0xd0] sm:$0xff] %vm4912_vm5, %v4906_v41 }
 0x367   : > { %4942 = vst.msk [vmem:[%s8301_s21 + $0xe8] sm:$0xff] %vm4912_vm5, %v4909_v11  ;;  %v4908_v47 = vmul.f32 %v6020_v8, %v8450_v28 }
 0x369   : > { %4941 = vst.msk [vmem:[%s8301_s21 + $0xe0] sm:$0xff] %vm4912_vm5, %v4908_v47 }
 0x36a   : > { %v6022_v53 = vpop.eup %6021 }
 0x36b   : > { %v6024_v4 = vpop.eup %6023  ;;  %v4911_v37 = vmul.f32 %v6022_v53, %v8461_v22 }
 0x36c   : > { %v4910_v7 = vmul.f32 %v6024_v4, %v8466_v44 }
 0x36d   : > { %4944 = vst.msk [vmem:[%s8301_s21 + $0xf8] sm:$0xff] %vm4912_vm5, %v4911_v37 }
 0x36e   : > { %4943 = vst.msk [vmem:[%s8301_s21 + $0xf0] sm:$0xff] %vm4912_vm5, %v4910_v7 }
 0x36f PF: > { %s15_s18 = sadd.s32 1, %s6042_s18  }
 0x370   : > { %p12_p4 = scmp.ge.s32.totalorder %s15_s18, 4  }
 0x372   :  { %14 = sbr.rel (!%p12_p4) target bundleno = 1 (0x1), region = 77 }

</bundles_post_ra>
